<compile_context>
chip_gen: v7x
topology: tpu7x:2x2x1
jax: 0.10.0
libtpu: 0.0.40
codegen_flags: <defaults>
</compile_context>

<pallas_src>
import functools

import numpy as np
import jax
import jax.numpy as jnp
from jax.experimental import pallas as pl
from jax.experimental.pallas import tpu as pltpu

# ---- synthetic config (stands in for cfg.DATA_SET / cfg.TRAIN) -------------
H_WM, W_WM = 8, 16                # watermark grid
NUM_WM = H_WM * W_WM              # 128 (lane-aligned)
C_FEAT = 512                      # resnet18 final channel count
HF, WF = 8, 8                     # backbone output spatial size (small)
S_FEAT = HF * WF                  # 64
BN_EPS = 1e-5


# ---------------------------------------------------------------------------
# Pallas kernel: fused 1x1 conv (BN/bias folded) + ReLU + global pool + FC
# for a block of Bt batch elements per grid step, reading f32 NCHW directly.
# ---------------------------------------------------------------------------
def _decoder_head_kernel(feat_ref, w1_ref, b1_ref, w2_ref, b2_ref, out_ref, p_ref):
    """
      feat_ref : (Bt, C, S) f32   backbone features, NCHW with spatial flattened
      w1_ref   : (N, C)     bf16  conv1x1 weight * BN scale (PyTorch (out,in) layout)
      b1_ref   : (N, 1)     f32   conv bias * BN scale + BN shift
      w2_ref   : (N, N)     f32   fc weight transposed (in,out), pre-divided by S
      b2_ref   : (1, N)     f32   fc bias
      out_ref  : (Bt, N)    f32   output block (lane-dense)
      p_ref    : (N, Bt)    f32   scratch: spatially-summed activations
    """
    Bt = feat_ref.shape[0]
    w1 = w1_ref[...]
    b1 = b1_ref[...]
    for b in range(Bt):  # static unroll: one (N,C)@(C,S) MXU matmul per element
        xb = feat_ref[b].astype(jnp.bfloat16)                         # (C, S), cast in-kernel
        yb = jnp.dot(w1, xb, preferred_element_type=jnp.float32)      # (N, S) f32 acc
        yb = jnp.maximum(yb + b1, 0.0)                                # folded conv-bias+BN, ReLU
        # AdaptiveAvgPool2d((1,1)) == mean over spatial; the 1/S factor is
        # folded into w2, so only the spatial sum (XLU lane reduce) is needed.
        p_ref[:, b:b + 1] = jnp.sum(yb, axis=1, keepdims=True)        # (N, 1)
    p = p_ref[...].T                                                  # (Bt, N): one small transpose
    out = jnp.dot(p, w2_ref[...], preferred_element_type=jnp.float32) + b2_ref[...]
    out_ref[...] = out.astype(out_ref.dtype)


def _pick_block_b(batch, block_b):
    """Largest block size <= block_b that divides batch (avoids any padding)."""
    bt = max(1, min(block_b, batch))
    while bt > 1 and batch % bt != 0:
        bt -= 1
    return bt


def _decoder_head_pallas(feat_bcs, w1, b1, w2, b2, *, block_b=8):
    B, C, S = feat_bcs.shape
    N = w1.shape[0]
    # Batch block chosen as a divisor of B: no jnp.pad remainder path (a pad
    # would add a full extra HBM read+write of the dominant feature stream).
    # On single-TC chips (v5e/v6e) with large B, block_b can be raised to
    # 16-32 to amortize per-grid-step overhead; VMEM use stays small.
    Bt = _pick_block_b(B, block_b)

    return pl.pallas_call(
        _decoder_head_kernel,
        out_shape=jax.ShapeDtypeStruct((B, N), jnp.float32),
        grid_spec=pltpu.PrefetchScalarGridSpec(
            num_scalar_prefetch=0,
            grid=(B // Bt,),
            in_specs=[
                # f32 NCHW features straight from HBM -- no wrapper transpose/cast.
                pl.BlockSpec((Bt, C, S), lambda b: (b, 0, 0)),
                pl.BlockSpec((N, C), lambda b: (0, 0)),   # folded conv1x1 weight (bf16)
                pl.BlockSpec((N, 1), lambda b: (0, 0)),   # folded conv bias + BN shift (f32)
                pl.BlockSpec((N, N), lambda b: (0, 0)),   # fc weight (transposed, /S, f32)
                pl.BlockSpec((1, N), lambda b: (0, 0)),   # fc bias (f32)
            ],
            out_specs=pl.BlockSpec((Bt, N), lambda b: (b, 0)),  # lane/sublane-dense slab
            scratch_shapes=[pltpu.VMEM((N, Bt), jnp.float32)],
        ),
        # "parallel" lets multi-TC parts shard the batch blocks across cores;
        # keep >= 2 blocks per core so the next feature DMA pipelines.
        compiler_params=pltpu.CompilerParams(
            dimension_semantics=("parallel",)),
    )(feat_bcs, w1, b1, w2, b2)


# ---------------------------------------------------------------------------
# Wrapper: takes the backbone feature map in PyTorch NCHW layout, returns
# (B, 1, H_wm, W_wm) exactly like LJJ_Decoder.forward.
# ---------------------------------------------------------------------------
@functools.partial(jax.jit, static_argnames=("block_b",))
def ljj_decoder_forward(feat_nchw, folded_params, *, block_b=8):
    B, C, Hf, Wf = feat_nchw.shape
    # Contiguous reshape only (no transpose, no cast, no extra HBM traffic).
    feat_bcs = feat_nchw.reshape(B, C, Hf * Wf)
    wm = _decoder_head_pallas(
        feat_bcs,
        folded_params["w1"], folded_params["b1"],
        folded_params["w2"], folded_params["b2"],
        block_b=block_b,
    )                                                            # (B, Num_wm) f32
    return wm.reshape(B, 1, H_WM, W_WM)


# ---------------------------------------------------------------------------
# Deterministic raw parameters (mirror the PyTorch __init__ shapes) and the
# eval-time folding into kernel-ready tensors.
# ---------------------------------------------------------------------------
def init_params(key):
    ks = jax.random.split(key, 8)
    # Conv2d(512, Num_wm, 1): PyTorch weight (Num_wm, 512, 1, 1) -> (Num_wm, 512)
    conv_w = jax.random.normal(ks[0], (NUM_WM, C_FEAT), jnp.float32) * 0.02
    conv_b = jax.random.normal(ks[1], (NUM_WM,), jnp.float32) * 0.01
    # BatchNorm2d(Num_wm) affine + running stats (eval semantics)
    gamma = 1.0 + 0.1 * jax.random.normal(ks[2], (NUM_WM,), jnp.float32)
    beta = 0.1 * jax.random.normal(ks[3], (NUM_WM,), jnp.float32)
    run_mean = 0.05 * jax.random.normal(ks[4], (NUM_WM,), jnp.float32)
    run_var = 1.0 + 0.1 * jax.nn.softplus(jax.random.normal(ks[5], (NUM_WM,), jnp.float32))
    # Linear(Num_wm, Num_wm): PyTorch weight (out, in)
    fc_w = jax.random.normal(ks[6], (NUM_WM, NUM_WM), jnp.float32) * 0.05
    fc_b = jax.random.normal(ks[7], (NUM_WM,), jnp.float32) * 0.01
    return {"conv_w": conv_w, "conv_b": conv_b, "gamma": gamma, "beta": beta,
            "run_mean": run_mean, "run_var": run_var, "fc_w": fc_w, "fc_b": fc_b}


def fold_params(p, spatial_size):
    """Fold conv bias + BN(eval) into the conv weight/bias, and the pooling
    1/S into the FC weight.  Conv weight in bf16; FC weight/biases in f32."""
    bn_scale = p["gamma"] / jnp.sqrt(p["run_var"] + BN_EPS)                       # (N,)
    bn_shift = p["beta"] - p["run_mean"] * bn_scale                               # (N,)
    w1 = (p["conv_w"] * bn_scale[:, None]).astype(jnp.bfloat16)                   # (N, C)
    b1 = (p["conv_b"] * bn_scale + bn_shift).reshape(-1, 1).astype(jnp.float32)   # (N, 1)
    w2 = (p["fc_w"].T / float(spatial_size)).astype(jnp.float32)                  # (N_in, N_out), f32
    b2 = p["fc_b"].reshape(1, -1).astype(jnp.float32)                             # (1, N)
    return {"w1": w1, "b1": b1, "w2": w2, "b2": b2}


# Pure-JAX f32 reference of the original (unfolded) module semantics.
def _reference(feat_nchw, p):
    B, C, Hf, Wf = feat_nchw.shape
    x = feat_nchw.reshape(B, C, Hf * Wf)                                  # (B, C, S)
    y = jnp.einsum("nc,bcs->bns", p["conv_w"], x) + p["conv_b"][None, :, None]
    bn_scale = p["gamma"] / jnp.sqrt(p["run_var"] + BN_EPS)
    bn_shift = p["beta"] - p["run_mean"] * bn_scale
    y = y * bn_scale[None, :, None] + bn_shift[None, :, None]
    y = jnp.maximum(y, 0.0)
    pool = jnp.mean(y, axis=2)                                            # (B, N)
    wm = pool @ p["fc_w"].T + p["fc_b"]
    return wm.reshape(B, 1, H_WM, W_WM)


if __name__ == "__main__":
    key = jax.random.PRNGKey(0)
    k_feat, k_param = jax.random.split(key)

    B = 32   # block_b=8 -> grid of 4 batch blocks (>= 2 per core on 2-TC parts)
    # Backbone (resnet18_dilation) output feature map, PyTorch NCHW layout, f32.
    feat = jax.random.normal(k_feat, (B, C_FEAT, HF, WF), jnp.float32)
    raw_params = init_params(k_param)
    folded = fold_params(raw_params, S_FEAT)

    out = ljj_decoder_forward(feat, folded, block_b=8)
    out = jax.block_until_ready(out)

    ref = jax.block_until_ready(_reference(feat, raw_params))
    assert out.shape == (B, 1, H_WM, W_WM), out.shape
    # bf16 conv path (f32 accumulation; FC fully in f32) vs f32 reference.
    np.testing.assert_allclose(np.asarray(out), np.asarray(ref), rtol=2e-2, atol=2e-2)

    print("KERNEL_OK")
</pallas_src>

<mosaic_0001>
module attributes {stable_mosaic.version = 11 : i64} {
  func.func @_decoder_head_kernel(%arg0: i32, %arg1: memref<8x512x64xf32, #tpu.memory_space<vmem>>, %arg2: memref<128x512xbf16, #tpu.memory_space<vmem>>, %arg3: memref<128x1xf32, #tpu.memory_space<vmem>>, %arg4: memref<128x128xf32, #tpu.memory_space<vmem>>, %arg5: memref<1x128xf32, #tpu.memory_space<vmem>>, %arg6: memref<8x128xf32, #tpu.memory_space<vmem>>, %arg7: memref<128x8xf32, #tpu.memory_space<vmem>>) attributes {dimension_semantics = [#tpu.dimension_semantics<parallel>], iteration_bounds = array<i64: 4>, scalar_prefetch = 0 : i64, scratch_operands = 1 : i64, tpu.core_type = #tpu.core_type<tc>, window_params = [{transform_indices = @transform_0, window_bounds = array<i64: 8, 512, 64>}, {pipeline_mode = #tpu.pipeline_mode<synchronous>, transform_indices = @transform_1, window_bounds = array<i64: 128, 512>}, {pipeline_mode = #tpu.pipeline_mode<synchronous>, transform_indices = @transform_2, window_bounds = array<i64: 128, 1>}, {pipeline_mode = #tpu.pipeline_mode<synchronous>, transform_indices = @transform_3, window_bounds = array<i64: 128, 128>}, {pipeline_mode = #tpu.pipeline_mode<synchronous>, transform_indices = @transform_4, window_bounds = array<i64: 1, 128>}, {transform_indices = @transform_5, window_bounds = array<i64: 8, 128>}]} {
    %c0 = arith.constant 0 : index
    %c0_0 = arith.constant 0 : index
    %0 = vector.load %arg2[%c0, %c0_0] : memref<128x512xbf16, #tpu.memory_space<vmem>>, vector<128x512xbf16>
    %c0_1 = arith.constant 0 : index
    %c0_2 = arith.constant 0 : index
    %1 = vector.load %arg3[%c0_1, %c0_2] : memref<128x1xf32, #tpu.memory_space<vmem>>, vector<128x1xf32>
    %c0_3 = arith.constant 0 : index
    %c0_4 = arith.constant 0 : index
    %c0_5 = arith.constant 0 : index
    %2 = vector.load %arg1[%c0_3, %c0_4, %c0_5] : memref<8x512x64xf32, #tpu.memory_space<vmem>>, vector<1x512x64xf32>
    %3 = vector.shape_cast %2 : vector<1x512x64xf32> to vector<512x64xf32>
    %4 = arith.truncf %3 : vector<512x64xf32> to vector<512x64xbf16>
    %cst = arith.constant dense<0.000000e+00> : vector<128x64xf32>
    %5 = tpu.matmul %0, %4, %cst {dimension_numbers = #tpu.dot_dimension_numbers<[1], [0], [0], [1], [0, 0, 1, 1], [], []>} : vector<128x512xbf16>, vector<512x64xbf16>, vector<128x64xf32> -> vector<128x64xf32>
    %6 = vector.broadcast %1 : vector<128x1xf32> to vector<128x64xf32>
    %7 = arith.addf %5, %6 : vector<128x64xf32>
    %cst_6 = arith.constant 0.000000e+00 : f32
    %8 = vector.broadcast %cst_6 : f32 to vector<128x64xf32>
    %9 = arith.maximumf %7, %8 : vector<128x64xf32>
    %cst_7 = arith.constant dense<0.000000e+00> : vector<128xf32>
    %10 = vector.multi_reduction <add>, %9, %cst_7 [1] : vector<128x64xf32> to vector<128xf32>
    %11 = vector.shape_cast %10 : vector<128xf32> to vector<128x1xf32>
    %c0_8 = arith.constant 0 : index
    %c0_9 = arith.constant 0 : index
    %12 = vector.load %arg7[%c0_8, %c0_9] : memref<128x8xf32, #tpu.memory_space<vmem>>, vector<128x1xf32>
    tpu.vector_store %arg7[%c0_8, %c0_9], %11 {strides = array<i32>} : memref<128x8xf32, #tpu.memory_space<vmem>>, vector<128x1xf32>,
    %c1 = arith.constant 1 : index
    %c0_10 = arith.constant 0 : index
    %c0_11 = arith.constant 0 : index
    %13 = vector.load %arg1[%c1, %c0_10, %c0_11] : memref<8x512x64xf32, #tpu.memory_space<vmem>>, vector<1x512x64xf32>
    %14 = vector.shape_cast %13 : vector<1x512x64xf32> to vector<512x64xf32>
    %15 = arith.truncf %14 : vector<512x64xf32> to vector<512x64xbf16>
    %cst_12 = arith.constant dense<0.000000e+00> : vector<128x64xf32>
    %16 = tpu.matmul %0, %15, %cst_12 {dimension_numbers = #tpu.dot_dimension_numbers<[1], [0], [0], [1], [0, 0, 1, 1], [], []>} : vector<128x512xbf16>, vector<512x64xbf16>, vector<128x64xf32> -> vector<128x64xf32>
    %17 = vector.broadcast %1 : vector<128x1xf32> to vector<128x64xf32>
    %18 = arith.addf %16, %17 : vector<128x64xf32>
    %cst_13 = arith.constant 0.000000e+00 : f32
    %19 = vector.broadcast %cst_13 : f32 to vector<128x64xf32>
    %20 = arith.maximumf %18, %19 : vector<128x64xf32>
    %cst_14 = arith.constant dense<0.000000e+00> : vector<128xf32>
    %21 = vector.multi_reduction <add>, %20, %cst_14 [1] : vector<128x64xf32> to vector<128xf32>
    %22 = vector.shape_cast %21 : vector<128xf32> to vector<128x1xf32>
    %c0_15 = arith.constant 0 : index
    %c1_16 = arith.constant 1 : index
    %23 = vector.load %arg7[%c0_15, %c1_16] : memref<128x8xf32, #tpu.memory_space<vmem>>, vector<128x1xf32>
    tpu.vector_store %arg7[%c0_15, %c1_16], %22 {strides = array<i32>} : memref<128x8xf32, #tpu.memory_space<vmem>>, vector<128x1xf32>,
    %c2 = arith.constant 2 : index
    %c0_17 = arith.constant 0 : index
    %c0_18 = arith.constant 0 : index
    %24 = vector.load %arg1[%c2, %c0_17, %c0_18] : memref<8x512x64xf32, #tpu.memory_space<vmem>>, vector<1x512x64xf32>
    %25 = vector.shape_cast %24 : vector<1x512x64xf32> to vector<512x64xf32>
    %26 = arith.truncf %25 : vector<512x64xf32> to vector<512x64xbf16>
    %cst_19 = arith.constant dense<0.000000e+00> : vector<128x64xf32>
    %27 = tpu.matmul %0, %26, %cst_19 {dimension_numbers = #tpu.dot_dimension_numbers<[1], [0], [0], [1], [0, 0, 1, 1], [], []>} : vector<128x512xbf16>, vector<512x64xbf16>, vector<128x64xf32> -> vector<128x64xf32>
    %28 = vector.broadcast %1 : vector<128x1xf32> to vector<128x64xf32>
    %29 = arith.addf %27, %28 : vector<128x64xf32>
    %cst_20 = arith.constant 0.000000e+00 : f32
    %30 = vector.broadcast %cst_20 : f32 to vector<128x64xf32>
    %31 = arith.maximumf %29, %30 : vector<128x64xf32>
    %cst_21 = arith.constant dense<0.000000e+00> : vector<128xf32>
    %32 = vector.multi_reduction <add>, %31, %cst_21 [1] : vector<128x64xf32> to vector<128xf32>
    %33 = vector.shape_cast %32 : vector<128xf32> to vector<128x1xf32>
    %c0_22 = arith.constant 0 : index
    %c2_23 = arith.constant 2 : index
    %34 = vector.load %arg7[%c0_22, %c2_23] : memref<128x8xf32, #tpu.memory_space<vmem>>, vector<128x1xf32>
    tpu.vector_store %arg7[%c0_22, %c2_23], %33 {strides = array<i32>} : memref<128x8xf32, #tpu.memory_space<vmem>>, vector<128x1xf32>,
    %c3 = arith.constant 3 : index
    %c0_24 = arith.constant 0 : index
    %c0_25 = arith.constant 0 : index
    %35 = vector.load %arg1[%c3, %c0_24, %c0_25] : memref<8x512x64xf32, #tpu.memory_space<vmem>>, vector<1x512x64xf32>
    %36 = vector.shape_cast %35 : vector<1x512x64xf32> to vector<512x64xf32>
    %37 = arith.truncf %36 : vector<512x64xf32> to vector<512x64xbf16>
    %cst_26 = arith.constant dense<0.000000e+00> : vector<128x64xf32>
    %38 = tpu.matmul %0, %37, %cst_26 {dimension_numbers = #tpu.dot_dimension_numbers<[1], [0], [0], [1], [0, 0, 1, 1], [], []>} : vector<128x512xbf16>, vector<512x64xbf16>, vector<128x64xf32> -> vector<128x64xf32>
    %39 = vector.broadcast %1 : vector<128x1xf32> to vector<128x64xf32>
    %40 = arith.addf %38, %39 : vector<128x64xf32>
    %cst_27 = arith.constant 0.000000e+00 : f32
    %41 = vector.broadcast %cst_27 : f32 to vector<128x64xf32>
    %42 = arith.maximumf %40, %41 : vector<128x64xf32>
    %cst_28 = arith.constant dense<0.000000e+00> : vector<128xf32>
    %43 = vector.multi_reduction <add>, %42, %cst_28 [1] : vector<128x64xf32> to vector<128xf32>
    %44 = vector.shape_cast %43 : vector<128xf32> to vector<128x1xf32>
    %c0_29 = arith.constant 0 : index
    %c3_30 = arith.constant 3 : index
    %45 = vector.load %arg7[%c0_29, %c3_30] : memref<128x8xf32, #tpu.memory_space<vmem>>, vector<128x1xf32>
    tpu.vector_store %arg7[%c0_29, %c3_30], %44 {strides = array<i32>} : memref<128x8xf32, #tpu.memory_space<vmem>>, vector<128x1xf32>,
    %c4 = arith.constant 4 : index
    %c0_31 = arith.constant 0 : index
    %c0_32 = arith.constant 0 : index
    %46 = vector.load %arg1[%c4, %c0_31, %c0_32] : memref<8x512x64xf32, #tpu.memory_space<vmem>>, vector<1x512x64xf32>
    %47 = vector.shape_cast %46 : vector<1x512x64xf32> to vector<512x64xf32>
    %48 = arith.truncf %47 : vector<512x64xf32> to vector<512x64xbf16>
    %cst_33 = arith.constant dense<0.000000e+00> : vector<128x64xf32>
    %49 = tpu.matmul %0, %48, %cst_33 {dimension_numbers = #tpu.dot_dimension_numbers<[1], [0], [0], [1], [0, 0, 1, 1], [], []>} : vector<128x512xbf16>, vector<512x64xbf16>, vector<128x64xf32> -> vector<128x64xf32>
    %50 = vector.broadcast %1 : vector<128x1xf32> to vector<128x64xf32>
    %51 = arith.addf %49, %50 : vector<128x64xf32>
    %cst_34 = arith.constant 0.000000e+00 : f32
    %52 = vector.broadcast %cst_34 : f32 to vector<128x64xf32>
    %53 = arith.maximumf %51, %52 : vector<128x64xf32>
    %cst_35 = arith.constant dense<0.000000e+00> : vector<128xf32>
    %54 = vector.multi_reduction <add>, %53, %cst_35 [1] : vector<128x64xf32> to vector<128xf32>
    %55 = vector.shape_cast %54 : vector<128xf32> to vector<128x1xf32>
    %c0_36 = arith.constant 0 : index
    %c4_37 = arith.constant 4 : index
    %56 = vector.load %arg7[%c0_36, %c4_37] : memref<128x8xf32, #tpu.memory_space<vmem>>, vector<128x1xf32>
    tpu.vector_store %arg7[%c0_36, %c4_37], %55 {strides = array<i32>} : memref<128x8xf32, #tpu.memory_space<vmem>>, vector<128x1xf32>,
    %c5 = arith.constant 5 : index
    %c0_38 = arith.constant 0 : index
    %c0_39 = arith.constant 0 : index
    %57 = vector.load %arg1[%c5, %c0_38, %c0_39] : memref<8x512x64xf32, #tpu.memory_space<vmem>>, vector<1x512x64xf32>
    %58 = vector.shape_cast %57 : vector<1x512x64xf32> to vector<512x64xf32>
    %59 = arith.truncf %58 : vector<512x64xf32> to vector<512x64xbf16>
    %cst_40 = arith.constant dense<0.000000e+00> : vector<128x64xf32>
    %60 = tpu.matmul %0, %59, %cst_40 {dimension_numbers = #tpu.dot_dimension_numbers<[1], [0], [0], [1], [0, 0, 1, 1], [], []>} : vector<128x512xbf16>, vector<512x64xbf16>, vector<128x64xf32> -> vector<128x64xf32>
    %61 = vector.broadcast %1 : vector<128x1xf32> to vector<128x64xf32>
    %62 = arith.addf %60, %61 : vector<128x64xf32>
    %cst_41 = arith.constant 0.000000e+00 : f32
    %63 = vector.broadcast %cst_41 : f32 to vector<128x64xf32>
    %64 = arith.maximumf %62, %63 : vector<128x64xf32>
    %cst_42 = arith.constant dense<0.000000e+00> : vector<128xf32>
    %65 = vector.multi_reduction <add>, %64, %cst_42 [1] : vector<128x64xf32> to vector<128xf32>
    %66 = vector.shape_cast %65 : vector<128xf32> to vector<128x1xf32>
    %c0_43 = arith.constant 0 : index
    %c5_44 = arith.constant 5 : index
    %67 = vector.load %arg7[%c0_43, %c5_44] : memref<128x8xf32, #tpu.memory_space<vmem>>, vector<128x1xf32>
    tpu.vector_store %arg7[%c0_43, %c5_44], %66 {strides = array<i32>} : memref<128x8xf32, #tpu.memory_space<vmem>>, vector<128x1xf32>,
    %c6 = arith.constant 6 : index
    %c0_45 = arith.constant 0 : index
    %c0_46 = arith.constant 0 : index
    %68 = vector.load %arg1[%c6, %c0_45, %c0_46] : memref<8x512x64xf32, #tpu.memory_space<vmem>>, vector<1x512x64xf32>
    %69 = vector.shape_cast %68 : vector<1x512x64xf32> to vector<512x64xf32>
    %70 = arith.truncf %69 : vector<512x64xf32> to vector<512x64xbf16>
    %cst_47 = arith.constant dense<0.000000e+00> : vector<128x64xf32>
    %71 = tpu.matmul %0, %70, %cst_47 {dimension_numbers = #tpu.dot_dimension_numbers<[1], [0], [0], [1], [0, 0, 1, 1], [], []>} : vector<128x512xbf16>, vector<512x64xbf16>, vector<128x64xf32> -> vector<128x64xf32>
    %72 = vector.broadcast %1 : vector<128x1xf32> to vector<128x64xf32>
    %73 = arith.addf %71, %72 : vector<128x64xf32>
    %cst_48 = arith.constant 0.000000e+00 : f32
    %74 = vector.broadcast %cst_48 : f32 to vector<128x64xf32>
    %75 = arith.maximumf %73, %74 : vector<128x64xf32>
    %cst_49 = arith.constant dense<0.000000e+00> : vector<128xf32>
    %76 = vector.multi_reduction <add>, %75, %cst_49 [1] : vector<128x64xf32> to vector<128xf32>
    %77 = vector.shape_cast %76 : vector<128xf32> to vector<128x1xf32>
    %c0_50 = arith.constant 0 : index
    %c6_51 = arith.constant 6 : index
    %78 = vector.load %arg7[%c0_50, %c6_51] : memref<128x8xf32, #tpu.memory_space<vmem>>, vector<128x1xf32>
    tpu.vector_store %arg7[%c0_50, %c6_51], %77 {strides = array<i32>} : memref<128x8xf32, #tpu.memory_space<vmem>>, vector<128x1xf32>,
    %c7 = arith.constant 7 : index
    %c0_52 = arith.constant 0 : index
    %c0_53 = arith.constant 0 : index
    %79 = vector.load %arg1[%c7, %c0_52, %c0_53] : memref<8x512x64xf32, #tpu.memory_space<vmem>>, vector<1x512x64xf32>
    %80 = vector.shape_cast %79 : vector<1x512x64xf32> to vector<512x64xf32>
    %81 = arith.truncf %80 : vector<512x64xf32> to vector<512x64xbf16>
    %cst_54 = arith.constant dense<0.000000e+00> : vector<128x64xf32>
    %82 = tpu.matmul %0, %81, %cst_54 {dimension_numbers = #tpu.dot_dimension_numbers<[1], [0], [0], [1], [0, 0, 1, 1], [], []>} : vector<128x512xbf16>, vector<512x64xbf16>, vector<128x64xf32> -> vector<128x64xf32>
    %83 = vector.broadcast %1 : vector<128x1xf32> to vector<128x64xf32>
    %84 = arith.addf %82, %83 : vector<128x64xf32>
    %cst_55 = arith.constant 0.000000e+00 : f32
    %85 = vector.broadcast %cst_55 : f32 to vector<128x64xf32>
    %86 = arith.maximumf %84, %85 : vector<128x64xf32>
    %cst_56 = arith.constant dense<0.000000e+00> : vector<128xf32>
    %87 = vector.multi_reduction <add>, %86, %cst_56 [1] : vector<128x64xf32> to vector<128xf32>
    %88 = vector.shape_cast %87 : vector<128xf32> to vector<128x1xf32>
    %c0_57 = arith.constant 0 : index
    %c7_58 = arith.constant 7 : index
    %89 = vector.load %arg7[%c0_57, %c7_58] : memref<128x8xf32, #tpu.memory_space<vmem>>, vector<128x1xf32>
    tpu.vector_store %arg7[%c0_57, %c7_58], %88 {strides = array<i32>} : memref<128x8xf32, #tpu.memory_space<vmem>>, vector<128x1xf32>,
    %c0_59 = arith.constant 0 : index
    %c0_60 = arith.constant 0 : index
    %90 = vector.load %arg7[%c0_59, %c0_60] : memref<128x8xf32, #tpu.memory_space<vmem>>, vector<128x8xf32>
    %91 = tpu.transpose %90, [1, 0] : vector<128x8xf32> -> vector<8x128xf32>
    %c0_61 = arith.constant 0 : index
    %c0_62 = arith.constant 0 : index
    %92 = vector.load %arg4[%c0_61, %c0_62] : memref<128x128xf32, #tpu.memory_space<vmem>>, vector<128x128xf32>
    %cst_63 = arith.constant dense<0.000000e+00> : vector<8x128xf32>
    %93 = tpu.matmul %91, %92, %cst_63 {dimension_numbers = #tpu.dot_dimension_numbers<[1], [0], [0], [1], [0, 0, 1, 1], [], []>} : vector<8x128xf32>, vector<128x128xf32>, vector<8x128xf32> -> vector<8x128xf32>
    %c0_64 = arith.constant 0 : index
    %c0_65 = arith.constant 0 : index
    %94 = vector.load %arg5[%c0_64, %c0_65] : memref<1x128xf32, #tpu.memory_space<vmem>>, vector<1x128xf32>
    %95 = vector.broadcast %94 : vector<1x128xf32> to vector<8x128xf32>
    %96 = arith.addf %93, %95 : vector<8x128xf32>
    %c0_66 = arith.constant 0 : index
    %c0_67 = arith.constant 0 : index
    %97 = vector.load %arg6[%c0_66, %c0_67] : memref<8x128xf32, #tpu.memory_space<vmem>>, vector<8x128xf32>
    tpu.vector_store %arg6[%c0_66, %c0_67], %96 {strides = array<i32>} : memref<8x128xf32, #tpu.memory_space<vmem>>, vector<8x128xf32>,
    return
  }
  func.func @transform_0(%arg0: i32) -> (i32, i32, i32) {
    %c0_i32 = arith.constant 0 : i32
    %c0_i32_0 = arith.constant 0 : i32
    %c0_i32_1 = arith.constant 0 : i32
    return %arg0, %c0_i32, %c0_i32_0 : i32, i32, i32
  }
  func.func @transform_1(%arg0: i32) -> (i32, i32) {
    %c0_i32 = arith.constant 0 : i32
    %c0_i32_0 = arith.constant 0 : i32
    %c0_i32_1 = arith.constant 0 : i32
    return %c0_i32, %c0_i32_0 : i32, i32
  }
  func.func @transform_2(%arg0: i32) -> (i32, i32) {
    %c0_i32 = arith.constant 0 : i32
    %c0_i32_0 = arith.constant 0 : i32
    %c0_i32_1 = arith.constant 0 : i32
    return %c0_i32, %c0_i32_0 : i32, i32
  }
  func.func @transform_3(%arg0: i32) -> (i32, i32) {
    %c0_i32 = arith.constant 0 : i32
    %c0_i32_0 = arith.constant 0 : i32
    %c0_i32_1 = arith.constant 0 : i32
    return %c0_i32, %c0_i32_0 : i32, i32
  }
  func.func @transform_4(%arg0: i32) -> (i32, i32) {
    %c0_i32 = arith.constant 0 : i32
    %c0_i32_0 = arith.constant 0 : i32
    %c0_i32_1 = arith.constant 0 : i32
    return %c0_i32, %c0_i32_0 : i32, i32
  }
  func.func @transform_5(%arg0: i32) -> (i32, i32) {
    %c0_i32 = arith.constant 0 : i32
    %c0_i32_0 = arith.constant 0 : i32
    return %arg0, %c0_i32 : i32, i32
  }
}

</mosaic_0001>

<bundles_post_ra>
// kernel: ljj_decoder_forward.1
= control target key start
LH: loop header
LB: loop body
LE: loop exit
PB: predicated region body
PF: predicated region fallthrough
CT: control target
= control target key end

     0   :  { %s5481_s18 = smov 0   ;;  %s7332_s0 = inlined_call_operand.vmem [shape: f32[32,512,64], index: 0, kind: input, shape index: {}]   ;;  %s7333_s1 = inlined_call_operand.vmem [shape: bf16[128,512], index: 1, kind: input, shape index: {}]   ;;  %s7334_s2 = inlined_call_operand.vmem [shape: f32[128,1], index: 2, kind: input, shape index: {}]   ;;  %s7335_s3 = inlined_call_operand.vmem [shape: f32[128,128], index: 3, kind: input, shape index: {}]   ;;  %s7336_s4 = inlined_call_operand.vmem [shape: f32[1,128], index: 4, kind: input, shape index: {}]   ;;  %s7337_s5 = inlined_call_operand.vmem [shape: f32[32,128], index: 5, kind: output, shape index: {}]  }
   0x1 LB: > { %s5487_s19 = sadd.s32 4294967295, %s5445_s18   ;;  %p3692_p0 = scmp.ge.s32.totalorder %s5445_s18, 1  ;;  %s5445_s18 = sphi %s5481_s18, %s15_s18  }
   0x2   : > { %p189_p1 = scmp.lt.s32.totalorder %s5445_s18, 5 }
   0x4   : > { %p190_p2 = pnand %p3692_p0, %p189_p1 }
   0x6   : > { %193 = sbr.rel (%p190_p2) target bundleno = 1219 (0x4c3), region = 40 }
   0xd   : > { %s3693_s20 = sshll.u32 %s5487_s19, 3  ;;  %v5495_v0 = vld [vmem:[%s7333_s1 + $0x4] ss:$16 sps:$4 sm:$0xff]   ;;  %v5500_v1 = vld [vmem:[%s7333_s1 + $0xc] ss:$16 sps:$4 sm:$0xff]   ;;  %v5447_v2 = vmov 0  }
   0xe   : > { %p218_p3 = scmp.lt.s32.totalorder %s3693_s20, 31  ;;  %5293 = vset.pattern.permute.xlu0 %v5447_v2  ;;  %5294 = vset.pattern.permute.xlu1 %v5447_v2  ;;  %vm823_vm0 = vcmask 523264   ;;  %vm872_vm1 = vcmask 7168   ;;  %vm1244_vm2 = vcmask 15368   ;;  %vm1616_vm3 = vcmask 23568   ;;  %p224_p4 = scmp.lt.s32.totalorder %s5487_s19, 3 }
   0xf   : > { %645 = vmatprep.mubr.bf16.mxu0 %v5495_v0  ;;  %742 = vmatprep.mubr.bf16.mxu1 %v5500_v1  ;;  %vm1988_vm4 = vcmask 31768   ;;  %vm2360_vm5 = vcmask 39968   ;;  %vm2732_vm6 = vcmask 48168   ;;  %vm3104_vm7 = vcmask 56368  }
  0x10   : > { %s7392_s20 = smov (!%p218_p3, %s3693_s20), 31  ;;  %vm5449_vm8 = vmmov 0   ;;  %vm3476_vm9 = vcmask 64568   ;;  %s7394_s19 = smov (!%p224_p4, %s5487_s19), 3 }
  0x11   : > { %s4180_s25 = sshll.u32 %s7392_s20, 9  ;;  %s3696_s7 = sshll.u32 %s7394_s19, 3 }
  0x12   : > { %s5507_s28 = scalar_lea.vmem %s7332_s0, %s4180_s25  ;;  %s227_s12 = scalar_lea.vmem %s7337_s5, %s3696_s7 }
  0x13   : > { %v293_v3 = vld [vmem:[%s5507_s28 + $0x80] sm:$0xff]  ;;  %v294_v4 = vld [vmem:[%s5507_s28 + $0x88] sm:$0xff]  ;;  %v295_v14 = vld [vmem:[%s5507_s28 + $0x90] sm:$0xff] }
  0x14   : > { %v325_v5 = vld [vmem:[%s5507_s28 + $0x180] sm:$0xff]  ;;  %v349_v6 = vpack.c.bf16 %v294_v4, %v293_v3  ;;  %v326_v7 = vld [vmem:[%s5507_s28 + $0x188] sm:$0xff]  ;;  %v296_v16 = vld [vmem:[%s5507_s28 + $0x98] sm:$0xff] }
  0x15   : > { %v277_v8 = vld [vmem:[%s5507_s28] sm:$0xff]  ;;  %v278_v9 = vld [vmem:[%s5507_s28 + $0x8] sm:$0xff]  ;;  %v365_v10 = vpack.c.bf16 %v326_v7, %v325_v5  ;;  %v327_v17 = vld [vmem:[%s5507_s28 + $0x190] sm:$0xff]  ;;  %v350_v19 = vpack.c.bf16 %v296_v16, %v295_v14 }
  0x16   : > { %v341_v11 = vpack.c.bf16 %v278_v9, %v277_v8  ;;  %v309_v12 = vld [vmem:[%s5507_s28 + $0x100] sm:$0xff]  ;;  %v310_v13 = vld [vmem:[%s5507_s28 + $0x108] sm:$0xff]  ;;  %4181 = vmatprep.subr.bf16.mxu0 %v349_v6  ;;  %v328_v18 = vld [vmem:[%s5507_s28 + $0x198] sm:$0xff] }
  0x17   : > { %v357_v15 = vpack.c.bf16 %v310_v13, %v309_v12  ;;  %4245 = vmatprep.subr.bf16.mxu1 %v365_v10  ;;  %v366_v20 = vpack.c.bf16 %v328_v18, %v327_v17  ;;  %v279_v21 = vld [vmem:[%s5507_s28 + $0x10] sm:$0xff]  ;;  %v280_v22 = vld [vmem:[%s5507_s28 + $0x18] sm:$0xff]  ;;  %v297_v26 = vld [vmem:[%s5507_s28 + $0xa0] sm:$0xff] }
  0x18   : > { %4182 = vmatpush3.bf16.msra.mxu0 %v341_v11  ;;  %v311_v23 = vld [vmem:[%s5507_s28 + $0x110] sm:$0xff]  ;;  %v342_v24 = vpack.c.bf16 %v280_v22, %v279_v21  ;;  %v312_v25 = vld [vmem:[%s5507_s28 + $0x118] sm:$0xff]  ;;  %v298_v27 = vld [vmem:[%s5507_s28 + $0xa8] sm:$0xff] }
  0x19   : > { %4246 = vmatpush3.bf16.msra.mxu1 %v357_v15  ;;  %4183 = vmatprep.subr.bf16.mxu0 %v350_v19  ;;  %v358_v28 = vpack.c.bf16 %v312_v25, %v311_v23  ;;  %v351_v29 = vpack.c.bf16 %v298_v27, %v297_v26  ;;  %v329_v30 = vld [vmem:[%s5507_s28 + $0x1a0] sm:$0xff]  ;;  %v330_v31 = vld [vmem:[%s5507_s28 + $0x1a8] sm:$0xff]  ;;  %v299_v38 = vld [vmem:[%s5507_s28 + $0xb0] sm:$0xff] }
  0x1a   : > { %4247 = vmatprep.subr.bf16.mxu1 %v366_v20  ;;  %v281_v32 = vld [vmem:[%s5507_s28 + $0x20] sm:$0xff]  ;;  %v367_v33 = vpack.c.bf16 %v330_v31, %v329_v30  ;;  %v282_v34 = vld [vmem:[%s5507_s28 + $0x28] sm:$0xff]  ;;  %v300_v39 = vld [vmem:[%s5507_s28 + $0xb8] sm:$0xff] }
  0x1b   : > { %v313_v35 = vld [vmem:[%s5507_s28 + $0x120] sm:$0xff]  ;;  %v314_v36 = vld [vmem:[%s5507_s28 + $0x128] sm:$0xff]  ;;  %v343_v37 = vpack.c.bf16 %v282_v34, %v281_v32  ;;  %v331_v40 = vld [vmem:[%s5507_s28 + $0x1b0] sm:$0xff]  ;;  %v352_v42 = vpack.c.bf16 %v300_v39, %v299_v38 }
  0x1c   : > { %4184 = vmatpush3.bf16.msra.mxu0 %v342_v24  ;;  %v359_v41 = vpack.c.bf16 %v314_v36, %v313_v35  ;;  %v332_v43 = vld [vmem:[%s5507_s28 + $0x1b8] sm:$0xff]  ;;  %v283_v44 = vld [vmem:[%s5507_s28 + $0x30] sm:$0xff]  ;;  %v301_v49 = vld [vmem:[%s5507_s28 + $0xc0] sm:$0xff] }
  0x1d   : > { %4248 = vmatpush3.bf16.msra.mxu1 %v358_v28  ;;  %4185 = vmatprep.subr.bf16.mxu0 %v351_v29  ;;  %v284_v45 = vld [vmem:[%s5507_s28 + $0x38] sm:$0xff]  ;;  %v368_v46 = vpack.c.bf16 %v332_v43, %v331_v40  ;;  %v315_v47 = vld [vmem:[%s5507_s28 + $0x130] sm:$0xff]  ;;  %v302_v50 = vld [vmem:[%s5507_s28 + $0xc8] sm:$0xff] }
  0x1e   : > { %4249 = vmatprep.subr.bf16.mxu1 %v367_v33  ;;  %v316_v48 = vld [vmem:[%s5507_s28 + $0x138] sm:$0xff]  ;;  %v333_v51 = vld [vmem:[%s5507_s28 + $0x1c0] sm:$0xff]  ;;  %v334_v52 = vld [vmem:[%s5507_s28 + $0x1c8] sm:$0xff]  ;;  %v344_v53 = vpack.c.bf16 %v284_v45, %v283_v44  ;;  %v353_v55 = vpack.c.bf16 %v302_v50, %v301_v49 }
  0x1f   : > { %v360_v54 = vpack.c.bf16 %v316_v48, %v315_v47  ;;  %v285_v56 = vld [vmem:[%s5507_s28 + $0x40] sm:$0xff]  ;;  %v286_v57 = vld [vmem:[%s5507_s28 + $0x48] sm:$0xff]  ;;  %v369_v59 = vpack.c.bf16 %v334_v52, %v333_v51  ;;  %v303_v61 = vld [vmem:[%s5507_s28 + $0xd0] sm:$0xff] }
  0x20   : > { %4186 = vmatpush3.bf16.msra.mxu0 %v343_v37  ;;  %v317_v58 = vld [vmem:[%s5507_s28 + $0x140] sm:$0xff]  ;;  %v318_v60 = vld [vmem:[%s5507_s28 + $0x148] sm:$0xff]  ;;  %v304_v62 = vld [vmem:[%s5507_s28 + $0xd8] sm:$0xff]  ;;  %v345_v3 = vpack.c.bf16 %v286_v57, %v285_v56 }
  0x21   : > { %4250 = vmatpush3.bf16.msra.mxu1 %v359_v41  ;;  %4187 = vmatprep.subr.bf16.mxu0 %v352_v42  ;;  %v335_v63 = vld [vmem:[%s5507_s28 + $0x1d0] sm:$0xff]  ;;  %v336_v2 = vld [vmem:[%s5507_s28 + $0x1d8] sm:$0xff]  ;;  %v361_v4 = vpack.c.bf16 %v318_v60, %v317_v58  ;;  %v354_v5 = vpack.c.bf16 %v304_v62, %v303_v61  ;;  %v305_v11 = vld [vmem:[%s5507_s28 + $0xe0] sm:$0xff] }
  0x22   : > { %4251 = vmatprep.subr.bf16.mxu1 %v368_v46  ;;  %v287_v6 = vld [vmem:[%s5507_s28 + $0x50] sm:$0xff]  ;;  %v288_v7 = vld [vmem:[%s5507_s28 + $0x58] sm:$0xff]  ;;  %v370_v9 = vpack.c.bf16 %v336_v2, %v335_v63  ;;  %v306_v12 = vld [vmem:[%s5507_s28 + $0xe8] sm:$0xff] }
  0x23   : > { %v319_v8 = vld [vmem:[%s5507_s28 + $0x150] sm:$0xff]  ;;  %v320_v10 = vld [vmem:[%s5507_s28 + $0x158] sm:$0xff]  ;;  %v337_v13 = vld [vmem:[%s5507_s28 + $0x1e0] sm:$0xff]  ;;  %v346_v15 = vpack.c.bf16 %v288_v7, %v287_v6  ;;  %v355_v17 = vpack.c.bf16 %v306_v12, %v305_v11 }
  0x24   : > { %4188 = vmatpush3.bf16.msra.mxu0 %v344_v53  ;;  %v338_v14 = vld [vmem:[%s5507_s28 + $0x1e8] sm:$0xff]  ;;  %v362_v16 = vpack.c.bf16 %v320_v10, %v319_v8  ;;  %v289_v18 = vld [vmem:[%s5507_s28 + $0x60] sm:$0xff]  ;;  %v307_v23 = vld [vmem:[%s5507_s28 + $0xf0] sm:$0xff] }
  0x25   : > { %4252 = vmatpush3.bf16.msra.mxu1 %v360_v54  ;;  %4189 = vmatprep.subr.bf16.mxu0 %v353_v55  ;;  %v290_v19 = vld [vmem:[%s5507_s28 + $0x68] sm:$0xff]  ;;  %v321_v20 = vld [vmem:[%s5507_s28 + $0x160] sm:$0xff]  ;;  %v371_v21 = vpack.c.bf16 %v338_v14, %v337_v13  ;;  %v308_v24 = vld [vmem:[%s5507_s28 + $0xf8] sm:$0xff] }
  0x26   : > { %4253 = vmatprep.subr.bf16.mxu1 %v369_v59  ;;  %v322_v22 = vld [vmem:[%s5507_s28 + $0x168] sm:$0xff]  ;;  %v339_v25 = vld [vmem:[%s5507_s28 + $0x1f0] sm:$0xff]  ;;  %v340_v26 = vld [vmem:[%s5507_s28 + $0x1f8] sm:$0xff]  ;;  %v347_v27 = vpack.c.bf16 %v290_v19, %v289_v18  ;;  %v356_v29 = vpack.c.bf16 %v308_v24, %v307_v23 }
  0x27   : > { %v363_v28 = vpack.c.bf16 %v322_v22, %v321_v20  ;;  %v291_v30 = vld [vmem:[%s5507_s28 + $0x70] sm:$0xff]  ;;  %v292_v31 = vld [vmem:[%s5507_s28 + $0x78] sm:$0xff]  ;;  %v372_v33 = vpack.c.bf16 %v340_v26, %v339_v25  ;;  %v3745_v35 = vld [vmem:[%s5507_s28 + $0x280] sm:$0xff] }
  0x28   : > { %4190 = vmatpush3.bf16.msra.mxu0 %v345_v3  ;;  %v323_v32 = vld [vmem:[%s5507_s28 + $0x170] sm:$0xff]  ;;  %v324_v34 = vld [vmem:[%s5507_s28 + $0x178] sm:$0xff]  ;;  %v3746_v36 = vld [vmem:[%s5507_s28 + $0x288] sm:$0xff]  ;;  %v348_v39 = vpack.c.bf16 %v292_v31, %v291_v30 }
  0x29   : > { %4254 = vmatpush3.bf16.msra.mxu1 %v361_v4  ;;  %4191 = vmatprep.subr.bf16.mxu0 %v354_v5  ;;  %v3777_v37 = vld [vmem:[%s5507_s28 + $0x380] sm:$0xff]  ;;  %v3778_v38 = vld [vmem:[%s5507_s28 + $0x388] sm:$0xff]  ;;  %v364_v41 = vpack.c.bf16 %v324_v34, %v323_v32  ;;  %v962_v43 = vpack.c.bf16 %v3746_v36, %v3745_v35  ;;  %v3747_v49 = vld [vmem:[%s5507_s28 + $0x290] sm:$0xff] }
  0x2a   : > { %4255 = vmatprep.subr.bf16.mxu1 %v370_v9  ;;  %v3729_v40 = vld [vmem:[%s5507_s28 + $0x200] sm:$0xff]  ;;  %v3730_v44 = vld [vmem:[%s5507_s28 + $0x208] sm:$0xff]  ;;  %v978_v48 = vpack.c.bf16 %v3778_v38, %v3777_v37  ;;  %v3748_v51 = vld [vmem:[%s5507_s28 + $0x298] sm:$0xff] }
  0x2b   : > { %v5581_v42 = vld [vmem:[%s7333_s1] ss:$16 sps:$4 sm:$0xff]   ;;  %v3762_v46 = vld [vmem:[%s5507_s28 + $0x308] sm:$0xff]  ;;  %v5595_v50 = vld [vmem:[%s7333_s1 + $0x24] ss:$16 sps:$4 sm:$0xff]   ;;  %v954_v52 = vpack.c.bf16 %v3730_v44, %v3729_v40  ;;  %v963_v60 = vpack.c.bf16 %v3748_v51, %v3747_v49 }
  0x2c   : > { %4192 = vmatpush3.bf16.msra.mxu0 %v346_v15  ;;  %v3761_v45 = vld [vmem:[%s5507_s28 + $0x300] sm:$0xff]  ;;  %v5589_v47 = vld [vmem:[%s7333_s1 + $0x8] ss:$16 sps:$4 sm:$0xff]   ;;  %v5601_v53 = vld [vmem:[%s7333_s1 + $0x2c] ss:$16 sps:$4 sm:$0xff]  }
  0x2d   : > { %4256 = vmatpush3.bf16.msra.mxu1 %v362_v16  ;;  %4193 = vmatprep.subr.bf16.mxu0 %v355_v17  ;;  %v3779_v54 = vld [vmem:[%s5507_s28 + $0x390] sm:$0xff]  ;;  %v3780_v55 = vld [vmem:[%s5507_s28 + $0x398] sm:$0xff]  ;;  %v970_v56 = vpack.c.bf16 %v3762_v46, %v3761_v45  ;;  %v3749_v62 = vld [vmem:[%s5507_s28 + $0x2a0] sm:$0xff] }
  0x2e   : > { %4257 = vmatprep.subr.bf16.mxu1 %v371_v21  ;;  %v3731_v57 = vld [vmem:[%s5507_s28 + $0x210] sm:$0xff]  ;;  %v3732_v58 = vld [vmem:[%s5507_s28 + $0x218] sm:$0xff]  ;;  %v3750_v63 = vld [vmem:[%s5507_s28 + $0x2a8] sm:$0xff]  ;;  %v979_v2 = vpack.c.bf16 %v3780_v55, %v3779_v54 }
  0x2f   : > { %v3763_v59 = vld [vmem:[%s5507_s28 + $0x310] sm:$0xff]  ;;  %v3764_v61 = vld [vmem:[%s5507_s28 + $0x318] sm:$0xff]  ;;  %v3781_v3 = vld [vmem:[%s5507_s28 + $0x3a0] sm:$0xff]  ;;  %v955_v5 = vpack.c.bf16 %v3732_v58, %v3731_v57  ;;  %v964_v8 = vpack.c.bf16 %v3750_v63, %v3749_v62 }
  0x30   : > { %4194 = vmatpush3.bf16.msra.mxu0 %v347_v27  ;;  %v3782_v4 = vld [vmem:[%s5507_s28 + $0x3a8] sm:$0xff]  ;;  %v5619_v6 = vld [vmem:[%s7333_s1 + $0x20] ss:$16 sps:$4 sm:$0xff]   ;;  %v971_v7 = vpack.c.bf16 %v3764_v61, %v3763_v59  ;;  %v5630_v10 = vld [vmem:[%s7333_s1 + $0x44] ss:$16 sps:$4 sm:$0xff]  }
  0x31   : > { %4258 = vmatpush3.bf16.msra.mxu1 %v363_v28  ;;  %4195 = vmatprep.subr.bf16.mxu0 %v356_v29  ;;  %v5625_v9 = vld [vmem:[%s7333_s1 + $0x28] ss:$16 sps:$4 sm:$0xff]   ;;  %v3733_v11 = vld [vmem:[%s5507_s28 + $0x220] sm:$0xff]  ;;  %v980_v13 = vpack.c.bf16 %v3782_v4, %v3781_v3  ;;  %v5638_v15 = vld [vmem:[%s7333_s1 + $0x4c] ss:$16 sps:$4 sm:$0xff]  }
  0x32   : > { %4259 = vmatprep.subr.bf16.mxu1 %v372_v33  ;;  %v3734_v12 = vld [vmem:[%s5507_s28 + $0x228] sm:$0xff]  ;;  %v3765_v14 = vld [vmem:[%s5507_s28 + $0x320] sm:$0xff]  ;;  %v3751_v17 = vld [vmem:[%s5507_s28 + $0x2b0] sm:$0xff] }
  0x33   : > { %v3766_v16 = vld [vmem:[%s5507_s28 + $0x328] sm:$0xff]  ;;  %v3752_v18 = vld [vmem:[%s5507_s28 + $0x2b8] sm:$0xff]  ;;  %v3735_v19 = vld [vmem:[%s5507_s28 + $0x230] sm:$0xff]  ;;  %v956_v22 = vpack.c.bf16 %v3734_v12, %v3733_v11 }
  0x34   : > { %4196 = vmatpush3.bf16.msra.mxu0 %v348_v39  ;;  %v3783_v20 = vld [vmem:[%s5507_s28 + $0x3b0] sm:$0xff]  ;;  %v3784_v21 = vld [vmem:[%s5507_s28 + $0x3b8] sm:$0xff]  ;;  %v972_v24 = vpack.c.bf16 %v3766_v16, %v3765_v14  ;;  %v965_v25 = vpack.c.bf16 %v3752_v18, %v3751_v17  ;;  %v3753_v29 = vld [vmem:[%s5507_s28 + $0x2c0] sm:$0xff] }
  0x35   : > { %4260 = vmatpush3.bf16.msra.mxu1 %v364_v41  ;;  %4309 = vmatprep.subr.bf16.mxu0 %v962_v43  ;;  %v3736_v23 = vld [vmem:[%s5507_s28 + $0x238] sm:$0xff]  ;;  %v3767_v26 = vld [vmem:[%s5507_s28 + $0x330] sm:$0xff]  ;;  %v981_v27 = vpack.c.bf16 %v3784_v21, %v3783_v20  ;;  %v3754_v30 = vld [vmem:[%s5507_s28 + $0x2c8] sm:$0xff] }
  0x36   : > { %4373 = vmatprep.subr.bf16.mxu1 %v978_v48  ;;  %v3768_v28 = vld [vmem:[%s5507_s28 + $0x338] sm:$0xff]  ;;  %v3737_v31 = vld [vmem:[%s5507_s28 + $0x240] sm:$0xff]  ;;  %v3786_v33 = vld [vmem:[%s5507_s28 + $0x3c8] sm:$0xff]  ;;  %v957_v35 = vpack.c.bf16 %v3736_v23, %v3735_v19  ;;  %v966_v41 = vpack.c.bf16 %v3754_v30, %v3753_v29 }
  0x37   : > { %646 = vmatmul.mubr.bf16.vlgmr.msra.gmra.mrb[0].mxu0 %v5581_v42  ;;  %v3785_v32 = vld [vmem:[%s5507_s28 + $0x3c0] sm:$0xff]  ;;  %v3738_v36 = vld [vmem:[%s5507_s28 + $0x248] sm:$0xff]  ;;  %v973_v40 = vpack.c.bf16 %v3768_v28, %v3767_v26  ;;  %v3755_v43 = vld [vmem:[%s5507_s28 + $0x2d0] sm:$0xff] }
  0x38   : > { %743 = vmatmul.mubr.bf16.vlgmr.msra.gmra.mrb[0].mxu1 %v5589_v47  ;;  %4310 = vmatpush3.bf16.msra.mxu0 %v954_v52  ;;  %v5661_v34 = vld [vmem:[%s7333_s1 + $0x40] ss:$16 sps:$4 sm:$0xff]   ;;  %v3770_v38 = vld [vmem:[%s5507_s28 + $0x348] sm:$0xff]  ;;  %v982_v44 = vpack.c.bf16 %v3786_v33, %v3785_v32  ;;  %v3756_v45 = vld [vmem:[%s5507_s28 + $0x2d8] sm:$0xff]  ;;  %v958_v52 = vpack.c.bf16 %v3738_v36, %v3737_v31 }
  0x39   : > { %4374 = vmatpush3.bf16.msra.mxu1 %v970_v56  ;;  %653 = vmatprep.mubr.bf16.mxu0 %v5595_v50  ;;  %v3769_v37 = vld [vmem:[%s5507_s28 + $0x340] sm:$0xff]  ;;  %v5669_v39 = vld [vmem:[%s7333_s1 + $0x48] ss:$16 sps:$4 sm:$0xff]   ;;  %v3787_v48 = vld [vmem:[%s5507_s28 + $0x3d0] sm:$0xff]  ;;  %v967_v57 = vpack.c.bf16 %v3756_v45, %v3755_v43 }
  0x3a   : > { %750 = vmatprep.mubr.bf16.mxu1 %v5601_v53  ;;  %4311 = vmatprep.subr.bf16.mxu0 %v963_v60  ;;  %v5676_v46 = vld [vmem:[%s7333_s1 + $0x64] ss:$16 sps:$4 sm:$0xff]   ;;  %v3788_v49 = vld [vmem:[%s5507_s28 + $0x3d8] sm:$0xff]  ;;  %v974_v56 = vpack.c.bf16 %v3770_v38, %v3769_v37  ;;  %v3758_v62 = vld [vmem:[%s5507_s28 + $0x2e8] sm:$0xff] }
  0x3b   : > { %4375 = vmatprep.subr.bf16.mxu1 %v979_v2  ;;  %v5683_v51 = vld [vmem:[%s7333_s1 + $0x6c] ss:$16 sps:$4 sm:$0xff]   ;;  %v3739_v54 = vld [vmem:[%s5507_s28 + $0x250] sm:$0xff]  ;;  %v3757_v60 = vld [vmem:[%s5507_s28 + $0x2e0] sm:$0xff]  ;;  %v983_v61 = vpack.c.bf16 %v3788_v49, %v3787_v48 }
  0x3c   : > { %4312 = vmatpush3.bf16.msra.mxu0 %v955_v5  ;;  %v3740_v55 = vld [vmem:[%s5507_s28 + $0x258] sm:$0xff]  ;;  %v3771_v58 = vld [vmem:[%s5507_s28 + $0x350] sm:$0xff]  ;;  %v3789_v63 = vld [vmem:[%s5507_s28 + $0x3e0] sm:$0xff] }
  0x3d   : > { %4376 = vmatpush3.bf16.msra.mxu1 %v971_v7  ;;  %4313 = vmatprep.subr.bf16.mxu0 %v964_v8  ;;  %v3772_v59 = vld [vmem:[%s5507_s28 + $0x358] sm:$0xff]  ;;  %v3790_v2 = vld [vmem:[%s5507_s28 + $0x3e8] sm:$0xff]  ;;  %v5700_v3 = vld [vmem:[%s7333_s1 + $0x60] ss:$16 sps:$4 sm:$0xff]   ;;  %v959_v4 = vpack.c.bf16 %v3740_v55, %v3739_v54  ;;  %v968_v8 = vpack.c.bf16 %v3758_v62, %v3757_v60 }
  0x3e   : > { %4377 = vmatprep.subr.bf16.mxu1 %v980_v13  ;;  %v5705_v5 = vld [vmem:[%s7333_s1 + $0x68] ss:$16 sps:$4 sm:$0xff]   ;;  %v975_v7 = vpack.c.bf16 %v3772_v59, %v3771_v58  ;;  %v3741_v11 = vld [vmem:[%s5507_s28 + $0x260] sm:$0xff]  ;;  %v984_v14 = vpack.c.bf16 %v3790_v2, %v3789_v63  ;;  %v3759_v17 = vld [vmem:[%s5507_s28 + $0x2f0] sm:$0xff] }
  0x3f   : > { %654 = vmatmul.mubr.bf16.gmra.mrb[4].mxu0 %v5619_v6  ;;  %v3742_v12 = vld [vmem:[%s5507_s28 + $0x268] sm:$0xff]  ;;  %v3773_v13 = vld [vmem:[%s5507_s28 + $0x360] sm:$0xff]  ;;  %v3760_v18 = vld [vmem:[%s5507_s28 + $0x2f8] sm:$0xff] }
  0x40   : > { %751 = vmatmul.mubr.bf16.gmra.mrb[4].mxu1 %v5625_v9  ;;  %661 = vmatprep.mubr.bf16.mxu0 %v5630_v10  ;;  %v3774_v16 = vld [vmem:[%s5507_s28 + $0x368] sm:$0xff]  ;;  %v5716_v19 = vld [vmem:[%s7333_s1 + $0x84] ss:$16 sps:$4 sm:$0xff]   ;;  %v3792_v21 = vld [vmem:[%s5507_s28 + $0x3f8] sm:$0xff]  ;;  %v960_v23 = vpack.c.bf16 %v3742_v12, %v3741_v11 }
  0x41   : > { %758 = vmatprep.mubr.bf16.mxu1 %v5638_v15  ;;  %4314 = vmatpush3.bf16.msra.mxu0 %v956_v22  ;;  %v3791_v20 = vld [vmem:[%s5507_s28 + $0x3f0] sm:$0xff]  ;;  %v5723_v22 = vld [vmem:[%s7333_s1 + $0x8c] ss:$16 sps:$4 sm:$0xff]   ;;  %v3809_v31 = vld [vmem:[%s5507_s28 + $0x480] sm:$0xff] }
  0x42   : > { %4378 = vmatpush3.bf16.msra.mxu1 %v972_v24  ;;  %4315 = vmatprep.subr.bf16.mxu0 %v965_v25  ;;  %v976_v24 = vpack.c.bf16 %v3774_v16, %v3773_v13  ;;  %v969_v25 = vpack.c.bf16 %v3760_v18, %v3759_v17  ;;  %v3743_v26 = vld [vmem:[%s5507_s28 + $0x270] sm:$0xff]  ;;  %v985_v29 = vpack.c.bf16 %v3792_v21, %v3791_v20  ;;  %v3776_v30 = vld [vmem:[%s5507_s28 + $0x378] sm:$0xff]  ;;  %v3810_v32 = vld [vmem:[%s5507_s28 + $0x488] sm:$0xff] }
  0x43   : > { %4379 = vmatprep.subr.bf16.mxu1 %v981_v27  ;;  %v3744_v27 = vld [vmem:[%s5507_s28 + $0x278] sm:$0xff]  ;;  %v3775_v28 = vld [vmem:[%s5507_s28 + $0x370] sm:$0xff]  ;;  %v3841_v33 = vld [vmem:[%s5507_s28 + $0x580] sm:$0xff]  ;;  %v1334_v38 = vpack.c.bf16 %v3810_v32, %v3809_v31 }
  0x44   : > { %v961_v36 = vpack.c.bf16 %v3744_v27, %v3743_v26  ;;  %v977_v37 = vpack.c.bf16 %v3776_v30, %v3775_v28  ;;  %v5745_v43 = vld [vmem:[%s7333_s1 + $0x88] ss:$16 sps:$4 sm:$0xff]   ;;  %v5755_v45 = vld [vmem:[%s7333_s1 + $0xac] ss:$16 sps:$4 sm:$0xff]   ;;  %v261_v48 = vld [vmem:[%s7334_s2] sm:$0xff] }
  0x45   : > { %4316 = vmatpush3.bf16.msra.mxu0 %v957_v35  ;;  %v3842_v35 = vld [vmem:[%s5507_s28 + $0x588] sm:$0xff]  ;;  %v263_v49 = vld [vmem:[%s7334_s2 + $0x10] sm:$0xff]  ;;  %375 = vperm.xlu0 %5293, %v261_v48   ;;  %v264_v55 = vld [vmem:[%s7334_s2 + $0x18] sm:$0xff] }
  0x46   : > { %4380 = vmatpush3.bf16.msra.mxu1 %v973_v40  ;;  %4317 = vmatprep.subr.bf16.mxu0 %v966_v41  ;;  %v5740_v40 = vld [vmem:[%s7333_s1 + $0x80] ss:$16 sps:$4 sm:$0xff]   ;;  %v1350_v41 = vpack.c.bf16 %v3842_v35, %v3841_v33  ;;  %v5791_v58 = vld [vmem:[%s7333_s1 + $0xcc] ss:$16 sps:$4 sm:$0xff]   ;;  %v5817_v2 = vld [vmem:[%s7333_s1 + $0xc8] ss:$16 sps:$4 sm:$0xff]  }
  0x47   : > { %662 = vmatmul.mubr.bf16.gmra.mrb[8].mxu0 %v5661_v34  ;;  %4381 = vmatprep.subr.bf16.mxu1 %v982_v44  ;;  %v5750_v44 = vld [vmem:[%s7333_s1 + $0xa4] ss:$16 sps:$4 sm:$0xff]   ;;  %v5773_v54 = vld [vmem:[%s7333_s1 + $0xa0] ss:$16 sps:$4 sm:$0xff]   ;;  %v266_v60 = vld [vmem:[%s7334_s2 + $0x28] sm:$0xff] }
  0x48   : > { %759 = vmatmul.mubr.bf16.gmra.mrb[8].mxu1 %v5669_v39  ;;  %669 = vmatprep.mubr.bf16.mxu0 %v5676_v46  ;;  %v265_v59 = vld [vmem:[%s7334_s2 + $0x20] sm:$0xff]  ;;  %v268_v63 = vld [vmem:[%s7334_s2 + $0x38] sm:$0xff]  ;;  %v270_v11 = vld [vmem:[%s7334_s2 + $0x48] sm:$0xff] }
  0x49   : > { %766 = vmatprep.mubr.bf16.mxu1 %v5683_v51  ;;  %4318 = vmatpush3.bf16.msra.mxu0 %v958_v52  ;;  %v262_v52 = vld [vmem:[%s7334_s2 + $0x8] sm:$0xff]  ;;  %v5809_v62 = vld [vmem:[%s7333_s1 + $0xc0] ss:$16 sps:$4 sm:$0xff]   ;;  %v3796_v32 = vld [vmem:[%s5507_s28 + $0x418] sm:$0xff] }
  0x4a   : > { %4382 = vmatpush3.bf16.msra.mxu1 %v974_v56  ;;  %4319 = vmatprep.subr.bf16.mxu0 %v967_v57  ;;  %v5781_v56 = vld [vmem:[%s7333_s1 + $0xa8] ss:$16 sps:$4 sm:$0xff]   ;;  %v5786_v57 = vld [vmem:[%s7333_s1 + $0xc4] ss:$16 sps:$4 sm:$0xff]   ;;  %v5845_v13 = vld [vmem:[%s7333_s1 + $0xe0] ss:$16 sps:$4 sm:$0xff]  }
  0x4b   : > { %4383 = vmatprep.subr.bf16.mxu1 %v983_v61  ;;  %385 = vperm.xlu1 %5294, %v263_v49   ;;  %v267_v61 = vld [vmem:[%s7334_s2 + $0x30] sm:$0xff]  ;;  %v5853_v16 = vld [vmem:[%s7333_s1 + $0xe8] ss:$16 sps:$4 sm:$0xff]   ;;  %v273_v17 = vld [vmem:[%s7334_s2 + $0x60] sm:$0xff] }
  0x4c   : > { %380 = vperm.xlu0 %5293, %v262_v52   ;;  %v271_v12 = vld [vmem:[%s7334_s2 + $0x50] sm:$0xff]  ;;  %v274_v18 = vld [vmem:[%s7334_s2 + $0x68] sm:$0xff]  ;;  %v3793_v20 = vld [vmem:[%s5507_s28 + $0x400] sm:$0xff] }
  0x4d   : > { %4320 = vmatpush3.bf16.msra.mxu0 %v959_v4  ;;  %v5822_v4 = vld [vmem:[%s7333_s1 + $0xe4] ss:$16 sps:$4 sm:$0xff]   ;;  %v3794_v21 = vld [vmem:[%s5507_s28 + $0x408] sm:$0xff] }
  0x4e   : > { %4384 = vmatpush3.bf16.msra.mxu1 %v975_v7  ;;  %4321 = vmatprep.subr.bf16.mxu0 %v968_v8  ;;  %v5827_v7 = vld [vmem:[%s7333_s1 + $0xec] ss:$16 sps:$4 sm:$0xff]   ;;  %v269_v8 = vld [vmem:[%s7334_s2 + $0x40] sm:$0xff]  ;;  %v3811_v26 = vld [vmem:[%s5507_s28 + $0x490] sm:$0xff]  ;;  %v1326_v27 = vpack.c.bf16 %v3794_v21, %v3793_v20 }
  0x4f   : > { %670 = vmatmul.mubr.bf16.gmra.mrb[12].mxu0 %v5700_v3  ;;  %4385 = vmatprep.subr.bf16.mxu1 %v984_v14  ;;  %v272_v14 = vld [vmem:[%s7334_s2 + $0x58] sm:$0xff]  ;;  %v3843_v28 = vld [vmem:[%s5507_s28 + $0x590] sm:$0xff]  ;;  %v3845_v48 = vld [vmem:[%s5507_s28 + $0x5a0] sm:$0xff] }
  0x50   : > { %767 = vmatmul.mubr.bf16.gmra.mrb[12].mxu1 %v5705_v5  ;;  %677 = vmatprep.mubr.bf16.mxu0 %v5716_v19  ;;  %v3795_v31 = vld [vmem:[%s5507_s28 + $0x410] sm:$0xff]  ;;  %v3846_v49 = vld [vmem:[%s5507_s28 + $0x5a8] sm:$0xff] }
  0x51   : > { %774 = vmatprep.mubr.bf16.mxu1 %v5723_v22  ;;  %4322 = vmatpush3.bf16.msra.mxu0 %v960_v23  ;;  %v3825_v23 = vld [vmem:[%s5507_s28 + $0x500] sm:$0xff]  ;;  %v3827_v33 = vld [vmem:[%s5507_s28 + $0x510] sm:$0xff]  ;;  %v1327_v52 = vpack.c.bf16 %v3796_v32, %v3795_v31 }
  0x52   : > { %4386 = vmatpush3.bf16.msra.mxu1 %v976_v24  ;;  %4323 = vmatprep.subr.bf16.mxu0 %v969_v25  ;;  %v3826_v24 = vld [vmem:[%s5507_s28 + $0x508] sm:$0xff]  ;;  %v275_v25 = vld [vmem:[%s7334_s2 + $0x70] sm:$0xff] }
  0x53   : > { %4387 = vmatprep.subr.bf16.mxu1 %v985_v29  ;;  %390 = vperm.xlu1 %5294, %v264_v55   ;;  %v3844_v29 = vld [vmem:[%s5507_s28 + $0x598] sm:$0xff]  ;;  %v1342_v30 = vpack.c.bf16 %v3826_v24, %v3825_v23  ;;  %v3799_v24 = vld [vmem:[%s5507_s28 + $0x430] sm:$0xff] }
  0x54   : > { %395 = vperm.xlu0 %5293, %v265_v59  }
  0x55   : > { %4324 = vmatpush3.bf16.msra.mxu0 %v961_v36  ;;  %v3828_v36 = vld [vmem:[%s5507_s28 + $0x518] sm:$0xff] }
  0x56   : > { %4388 = vmatpush3.bf16.msra.mxu1 %v977_v37  ;;  %4437 = vmatprep.subr.bf16.mxu0 %v1334_v38  ;;  %v3813_v37 = vld [vmem:[%s5507_s28 + $0x4a0] sm:$0xff]  ;;  %v3814_v38 = vld [vmem:[%s5507_s28 + $0x4a8] sm:$0xff]  ;;  %v1343_v55 = vpack.c.bf16 %v3828_v36, %v3827_v33 }
  0x57   : > { %678 = vmatmul.mubr.bf16.gmra.mrb[16].mxu0 %v5740_v40  ;;  %4501 = vmatprep.subr.bf16.mxu1 %v1350_v41  ;;  %v1351_v41 = vpack.c.bf16 %v3844_v29, %v3843_v28  ;;  %v1336_v59 = vpack.c.bf16 %v3814_v38, %v3813_v37  ;;  %v3818_v28 = vld [vmem:[%s5507_s28 + $0x4c8] sm:$0xff]  ;;  %v3849_v29 = vld [vmem:[%s5507_s28 + $0x5c0] sm:$0xff] }
  0x58   : > { %775 = vmatmul.mubr.bf16.gmra.mrb[16].mxu1 %v5745_v43  ;;  %685 = vmatprep.mubr.bf16.mxu0 %v5750_v44  ;;  %v3802_v36 = vld [vmem:[%s5507_s28 + $0x448] sm:$0xff]  ;;  %v3833_v37 = vld [vmem:[%s5507_s28 + $0x540] sm:$0xff] }
  0x59   : > { %782 = vmatprep.mubr.bf16.mxu1 %v5755_v45  ;;  %400 = vperm.xlu1 %5294, %v266_v60   ;;  %v3797_v60 = vld [vmem:[%s5507_s28 + $0x420] sm:$0xff] }
  0x5a   : > { %405 = vperm.xlu0 %5293, %v267_v61   ;;  %v3798_v61 = vld [vmem:[%s5507_s28 + $0x428] sm:$0xff] }
  0x5b   : > { %v1328_v20 = vpack.c.bf16 %v3798_v61, %v3797_v60 }
  0x5d   : > { %410 = vperm.xlu1 %5294, %v268_v63   ;;  %v1352_v63 = vpack.c.bf16 %v3846_v49, %v3845_v48  ;;  %v3819_v48 = vld [vmem:[%s5507_s28 + $0x4d0] sm:$0xff]  ;;  %v3820_v49 = vld [vmem:[%s5507_s28 + $0x4d8] sm:$0xff] }
  0x5e   : > { %415 = vperm.xlu0 %5293, %v269_v8   ;;  %v3829_v8 = vld [vmem:[%s5507_s28 + $0x520] sm:$0xff]  ;;  %v1339_v61 = vpack.c.bf16 %v3820_v49, %v3819_v48  ;;  %v3840_v49 = vld [vmem:[%s5507_s28 + $0x578] sm:$0xff] }
  0x5f   : > { %686 = vmatmul.mubr.bf16.gmra.mrb[20].mxu0 %v5773_v54 }
  0x60   : > { %783 = vmatmul.mubr.bf16.gmra.mrb[20].mxu1 %v5781_v56  ;;  %693 = vmatprep.mubr.bf16.mxu0 %v5786_v57 }
  0x61   : > { %790 = vmatprep.mubr.bf16.mxu1 %v5791_v58  ;;  %420 = vperm.xlu1 %5294, %v270_v11   ;;  %v3830_v11 = vld [vmem:[%s5507_s28 + $0x528] sm:$0xff] }
  0x62   : > { %425 = vperm.xlu0 %5293, %v271_v12   ;;  %v3815_v12 = vld [vmem:[%s5507_s28 + $0x4b0] sm:$0xff]  ;;  %v1344_v21 = vpack.c.bf16 %v3830_v11, %v3829_v8  ;;  %v3804_v8 = vld [vmem:[%s5507_s28 + $0x458] sm:$0xff] }
  0x63   : > { %v3835_v11 = vld [vmem:[%s5507_s28 + $0x550] sm:$0xff] }
  0x65   : > { %430 = vperm.xlu1 %5294, %v272_v14   ;;  %v3816_v14 = vld [vmem:[%s5507_s28 + $0x4b8] sm:$0xff] }
  0x66   : > { %435 = vperm.xlu0 %5293, %v273_v17   ;;  %v3847_v17 = vld [vmem:[%s5507_s28 + $0x5b0] sm:$0xff]  ;;  %v1337_v23 = vpack.c.bf16 %v3816_v14, %v3815_v12  ;;  %v3836_v14 = vld [vmem:[%s5507_s28 + $0x558] sm:$0xff] }
  0x67   : > { %694 = vmatmul.mubr.bf16.gmra.mrb[24].mxu0 %v5809_v62 }
  0x68   : > { %791 = vmatmul.mubr.bf16.gmra.mrb[24].mxu1 %v5817_v2  ;;  %701 = vmatprep.mubr.bf16.mxu0 %v5822_v4 }
  0x69   : > { %798 = vmatprep.mubr.bf16.mxu1 %v5827_v7  ;;  %440 = vperm.xlu1 %5294, %v274_v18   ;;  %v3848_v18 = vld [vmem:[%s5507_s28 + $0x5b8] sm:$0xff] }
  0x6a   : > { %445 = vperm.xlu0 %5293, %v275_v25   ;;  %v3800_v25 = vld [vmem:[%s5507_s28 + $0x438] sm:$0xff] }
  0x6b   : > { %v1329_v31 = vpack.c.bf16 %v3800_v25, %v3799_v24  ;;  %v1347_v24 = vpack.c.bf16 %v3836_v14, %v3835_v11  ;;  %v5974_v14 = vld [vmem:[%s7333_s1 + $0xc] ss:$16 sps:$4 sm:$0xff]  }
  0x6f   : > { %702 = vmatmul.mubr.bf16.gmra.mrb[28].mxu0 %v5845_v13 }
  0x70   : > { %799 = vmatmul.mubr.bf16.gmra.mrb[28].mxu1 %v5853_v16  ;;  %1018 = vmatprep.mubr.bf16.mxu0 %v5495_v0  ;;  %v3812_v0 = vld [vmem:[%s5507_s28 + $0x498] sm:$0xff] }
  0x71   : > { %1115 = vmatprep.mubr.bf16.mxu1 %v5500_v1  ;;  %v276_v1 = vld [vmem:[%s7334_s2 + $0x78] sm:$0xff]  ;;  %v1335_v35 = vpack.c.bf16 %v3812_v0, %v3811_v26  ;;  %v3831_v26 = vld [vmem:[%s5507_s28 + $0x530] sm:$0xff]  ;;  %v1353_v0 = vpack.c.bf16 %v3848_v18, %v3847_v17  ;;  %v3821_v17 = vld [vmem:[%s5507_s28 + $0x4e0] sm:$0xff] }
  0x72   : > { %450 = vperm.xlu1 %5294, %v276_v1   ;;  %v3832_v1 = vld [vmem:[%s5507_s28 + $0x538] sm:$0xff]  ;;  %v3822_v18 = vld [vmem:[%s5507_s28 + $0x4e8] sm:$0xff] }
  0x73   : > { %v1345_v32 = vpack.c.bf16 %v3832_v1, %v3831_v26  ;;  %v1340_v25 = vpack.c.bf16 %v3822_v18, %v3821_v17  ;;  %v3805_v26 = vld [vmem:[%s5507_s28 + $0x460] sm:$0xff]  ;;  %v3858_v18 = vld [vmem:[%s5507_s28 + $0x608] sm:$0xff] }
  0x74   : > { %v3837_v1 = vld [vmem:[%s5507_s28 + $0x560] sm:$0xff] }
  0x75   : > { %v3857_v17 = vld [vmem:[%s5507_s28 + $0x600] sm:$0xff] }
  0x77   : > { %1019 = vmatmul.mubr.bf16.vlgmr.msra.gmra.mrb[32].mxu0 %v5581_v42 }
  0x78   : > { %1116 = vmatmul.mubr.bf16.vlgmr.msra.gmra.mrb[32].mxu1 %v5589_v47  ;;  %4438 = vmatpush3.bf16.msra.mxu0 %v1326_v27  ;;  %v3817_v27 = vld [vmem:[%s5507_s28 + $0x4c0] sm:$0xff] }
  0x79   : > { %4502 = vmatpush3.bf16.msra.mxu1 %v1342_v30  ;;  %1026 = vmatprep.mubr.bf16.mxu0 %v5595_v50  ;;  %v3850_v30 = vld [vmem:[%s5507_s28 + $0x5c8] sm:$0xff]  ;;  %v1338_v33 = vpack.c.bf16 %v3818_v28, %v3817_v27 }
  0x7a   : > { %1123 = vmatprep.mubr.bf16.mxu1 %v5601_v53  ;;  %4439 = vmatprep.subr.bf16.mxu0 %v1335_v35  ;;  %v3801_v35 = vld [vmem:[%s5507_s28 + $0x440] sm:$0xff]  ;;  %v1354_v38 = vpack.c.bf16 %v3850_v30, %v3849_v29  ;;  %v3838_v28 = vld [vmem:[%s5507_s28 + $0x568] sm:$0xff]  ;;  %v3823_v29 = vld [vmem:[%s5507_s28 + $0x4f0] sm:$0xff] }
  0x7b   : > { %4503 = vmatprep.subr.bf16.mxu1 %v1351_v41  ;;  %v3834_v41 = vld [vmem:[%s5507_s28 + $0x548] sm:$0xff]  ;;  %v3824_v30 = vld [vmem:[%s5507_s28 + $0x4f8] sm:$0xff] }
  0x7c   : > { %4440 = vmatpush3.bf16.msra.mxu0 %v1327_v52  ;;  %v3851_v52 = vld [vmem:[%s5507_s28 + $0x5d0] sm:$0xff]  ;;  %v1346_v60 = vpack.c.bf16 %v3834_v41, %v3833_v37 }
  0x7d   : > { %4504 = vmatpush3.bf16.msra.mxu1 %v1343_v55  ;;  %4441 = vmatprep.subr.bf16.mxu0 %v1336_v59  ;;  %v3852_v55 = vld [vmem:[%s5507_s28 + $0x5d8] sm:$0xff]  ;;  %v1330_v59 = vpack.c.bf16 %v3802_v36, %v3801_v35  ;;  %v1348_v35 = vpack.c.bf16 %v3838_v28, %v3837_v1  ;;  %v1341_v36 = vpack.c.bf16 %v3824_v30, %v3823_v29  ;;  %v3807_v37 = vld [vmem:[%s5507_s28 + $0x470] sm:$0xff] }
  0x7e   : > { %4505 = vmatprep.subr.bf16.mxu1 %v1352_v63  ;;  %v3803_v63 = vld [vmem:[%s5507_s28 + $0x450] sm:$0xff]  ;;  %v1355_v12 = vpack.c.bf16 %v3852_v55, %v3851_v52  ;;  %v3873_v52 = vld [vmem:[%s5507_s28 + $0x680] sm:$0xff]  ;;  %v3874_v55 = vld [vmem:[%s5507_s28 + $0x688] sm:$0xff] }
  0x7f   : > { %1027 = vmatmul.mubr.bf16.gmra.mrb[36].mxu0 %v5619_v6  ;;  %v3839_v41 = vld [vmem:[%s5507_s28 + $0x570] sm:$0xff]  ;;  %v3860_v28 = vld [vmem:[%s5507_s28 + $0x618] sm:$0xff] }
  0x80   : > { %1124 = vmatmul.mubr.bf16.gmra.mrb[36].mxu1 %v5625_v9  ;;  %1034 = vmatprep.mubr.bf16.mxu0 %v5630_v10  ;;  %v3891_v29 = vld [vmem:[%s5507_s28 + $0x710] sm:$0xff] }
  0x81   : > { %1131 = vmatprep.mubr.bf16.mxu1 %v5638_v15  ;;  %4442 = vmatpush3.bf16.msra.mxu0 %v1328_v20  ;;  %v3853_v20 = vld [vmem:[%s5507_s28 + $0x5e0] sm:$0xff] }
  0x82   : > { %4506 = vmatpush3.bf16.msra.mxu1 %v1344_v21  ;;  %4443 = vmatprep.subr.bf16.mxu0 %v1337_v23  ;;  %v3854_v21 = vld [vmem:[%s5507_s28 + $0x5e8] sm:$0xff]  ;;  %v1331_v23 = vpack.c.bf16 %v3804_v8, %v3803_v63  ;;  %v1349_v63 = vpack.c.bf16 %v3840_v49, %v3839_v41  ;;  %v1706_v8 = vpack.c.bf16 %v3874_v55, %v3873_v52  ;;  %v3893_v55 = vld [vmem:[%s5507_s28 + $0x720] sm:$0xff] }
  0x83   : > { %4507 = vmatprep.subr.bf16.mxu1 %v1353_v0  ;;  %v3806_v0 = vld [vmem:[%s5507_s28 + $0x468] sm:$0xff]  ;;  %v1356_v27 = vpack.c.bf16 %v3854_v21, %v3853_v20  ;;  %v3889_v20 = vld [vmem:[%s5507_s28 + $0x700] sm:$0xff] }
  0x84   : > { %v3890_v21 = vld [vmem:[%s5507_s28 + $0x708] sm:$0xff] }
  0x85   : > { %4444 = vmatpush3.bf16.msra.mxu0 %v1329_v31  ;;  %v3855_v31 = vld [vmem:[%s5507_s28 + $0x5f0] sm:$0xff]  ;;  %v1714_v1 = vpack.c.bf16 %v3890_v21, %v3889_v20  ;;  %v3862_v49 = vld [vmem:[%s5507_s28 + $0x628] sm:$0xff]  ;;  %v3896_v21 = vld [vmem:[%s5507_s28 + $0x738] sm:$0xff] }
  0x86   : > { %4508 = vmatpush3.bf16.msra.mxu1 %v1345_v32  ;;  %4445 = vmatprep.subr.bf16.mxu0 %v1338_v33  ;;  %v3856_v32 = vld [vmem:[%s5507_s28 + $0x5f8] sm:$0xff]  ;;  %v1332_v33 = vpack.c.bf16 %v3806_v0, %v3805_v26  ;;  %v3907_v26 = vld [vmem:[%s5507_s28 + $0x790] sm:$0xff] }
  0x87   : > { %1035 = vmatmul.mubr.bf16.gmra.mrb[40].mxu0 %v5661_v34  ;;  %4509 = vmatprep.subr.bf16.mxu1 %v1354_v38  ;;  %v3808_v38 = vld [vmem:[%s5507_s28 + $0x478] sm:$0xff]  ;;  %v1357_v48 = vpack.c.bf16 %v3856_v32, %v3855_v31  ;;  %v3877_v32 = vld [vmem:[%s5507_s28 + $0x6a0] sm:$0xff] }
  0x88   : > { %1132 = vmatmul.mubr.bf16.gmra.mrb[40].mxu1 %v5669_v39  ;;  %1042 = vmatprep.mubr.bf16.mxu0 %v5676_v46  ;;  %v3908_v0 = vld [vmem:[%s5507_s28 + $0x798] sm:$0xff] }
  0x89   : > { %1139 = vmatprep.mubr.bf16.mxu1 %v5683_v51  ;;  %4446 = vmatpush3.bf16.msra.mxu0 %v1330_v59  ;;  %v3905_v59 = vld [vmem:[%s5507_s28 + $0x780] sm:$0xff]  ;;  %v3892_v31 = vld [vmem:[%s5507_s28 + $0x718] sm:$0xff] }
  0x8a   : > { %4510 = vmatpush3.bf16.msra.mxu1 %v1346_v60  ;;  %4447 = vmatprep.subr.bf16.mxu0 %v1339_v61  ;;  %v3906_v60 = vld [vmem:[%s5507_s28 + $0x788] sm:$0xff]  ;;  %v1333_v61 = vpack.c.bf16 %v3808_v38, %v3807_v37  ;;  %v1715_v41 = vpack.c.bf16 %v3892_v31, %v3891_v29  ;;  %v3884_v31 = vld [vmem:[%s5507_s28 + $0x6d8] sm:$0xff] }
  0x8b   : > { %4511 = vmatprep.subr.bf16.mxu1 %v1355_v12  ;;  %v1722_v11 = vpack.c.bf16 %v3906_v60, %v3905_v59  ;;  %v5968_v12 = vld [vmem:[%s7333_s1 + $0x4] ss:$16 sps:$4 sm:$0xff]   ;;  %v3910_v37 = vld [vmem:[%s5507_s28 + $0x7a8] sm:$0xff]  ;;  %v3880_v60 = vld [vmem:[%s5507_s28 + $0x6b8] sm:$0xff] }
  0x8c   : > { %v3879_v59 = vld [vmem:[%s5507_s28 + $0x6b0] sm:$0xff]  ;;  %v3898_v29 = vld [vmem:[%s5507_s28 + $0x748] sm:$0xff] }
  0x8d   : > { %4448 = vmatpush3.bf16.msra.mxu0 %v1331_v23  ;;  %v3875_v23 = vld [vmem:[%s5507_s28 + $0x690] sm:$0xff] }
  0x8e   : > { %4512 = vmatpush3.bf16.msra.mxu1 %v1347_v24  ;;  %4449 = vmatprep.subr.bf16.mxu0 %v1340_v25  ;;  %v3876_v24 = vld [vmem:[%s5507_s28 + $0x698] sm:$0xff]  ;;  %v1698_v25 = vpack.c.bf16 %v3858_v18, %v3857_v17  ;;  %v3895_v18 = vld [vmem:[%s5507_s28 + $0x730] sm:$0xff] }
  0x8f   : > { %1043 = vmatmul.mubr.bf16.gmra.mrb[44].mxu0 %v5700_v3  ;;  %4513 = vmatprep.subr.bf16.mxu1 %v1356_v27  ;;  %v3859_v27 = vld [vmem:[%s5507_s28 + $0x610] sm:$0xff]  ;;  %v1707_v30 = vpack.c.bf16 %v3876_v24, %v3875_v23  ;;  %v3864_v17 = vld [vmem:[%s5507_s28 + $0x638] sm:$0xff]  ;;  %v3881_v23 = vld [vmem:[%s5507_s28 + $0x6c0] sm:$0xff] }
  0x90   : > { %1140 = vmatmul.mubr.bf16.gmra.mrb[44].mxu1 %v5705_v5  ;;  %1050 = vmatprep.mubr.bf16.mxu0 %v5716_v19  ;;  %v1699_v38 = vpack.c.bf16 %v3860_v28, %v3859_v27  ;;  %v3882_v24 = vld [vmem:[%s5507_s28 + $0x6c8] sm:$0xff]  ;;  %v3865_v27 = vld [vmem:[%s5507_s28 + $0x640] sm:$0xff] }
  0x91   : > { %1147 = vmatprep.mubr.bf16.mxu1 %v5723_v22  ;;  %4450 = vmatpush3.bf16.msra.mxu0 %v1332_v33  ;;  %v3878_v33 = vld [vmem:[%s5507_s28 + $0x6a8] sm:$0xff]  ;;  %v3897_v28 = vld [vmem:[%s5507_s28 + $0x740] sm:$0xff] }
  0x92   : > { %4514 = vmatpush3.bf16.msra.mxu1 %v1348_v35  ;;  %4451 = vmatprep.subr.bf16.mxu0 %v1341_v36  ;;  %v1723_v35 = vpack.c.bf16 %v3908_v0, %v3907_v26  ;;  %v3909_v36 = vld [vmem:[%s5507_s28 + $0x7a0] sm:$0xff]  ;;  %v3914_v26 = vld [vmem:[%s5507_s28 + $0x7c8] sm:$0xff]  ;;  %v1717_v0 = vpack.c.bf16 %v3896_v21, %v3895_v18  ;;  %v3871_v21 = vld [vmem:[%s5507_s28 + $0x670] sm:$0xff] }
  0x93   : > { %4515 = vmatprep.subr.bf16.mxu1 %v1357_v48  ;;  %v1708_v48 = vpack.c.bf16 %v3878_v33, %v3877_v32  ;;  %v1724_v52 = vpack.c.bf16 %v3910_v37, %v3909_v36  ;;  %v3916_v32 = vld [vmem:[%s5507_s28 + $0x7d8] sm:$0xff]  ;;  %v3867_v37 = vld [vmem:[%s5507_s28 + $0x650] sm:$0xff] }
  0x95   : > { %4452 = vmatpush3.bf16.msra.mxu0 %v1333_v61  ;;  %v3912_v61 = vld [vmem:[%s5507_s28 + $0x7b8] sm:$0xff] }
  0x96   : > { %4516 = vmatpush3.bf16.msra.mxu1 %v1349_v63  ;;  %4565 = vmatprep.subr.bf16.mxu0 %v1706_v8  ;;  %v1709_v8 = vpack.c.bf16 %v3880_v60, %v3879_v59 }
  0x97   : > { %1051 = vmatmul.mubr.bf16.gmra.mrb[48].mxu0 %v5740_v40  ;;  %4629 = vmatprep.subr.bf16.mxu1 %v1722_v11  ;;  %v3863_v11 = vld [vmem:[%s5507_s28 + $0x630] sm:$0xff] }
  0x98   : > { %1148 = vmatmul.mubr.bf16.gmra.mrb[48].mxu1 %v5745_v43  ;;  %1058 = vmatprep.mubr.bf16.mxu0 %v5750_v44 }
  0x99   : > { %1155 = vmatprep.mubr.bf16.mxu1 %v5755_v45 }
  0x9f   : > { %1059 = vmatmul.mubr.bf16.gmra.mrb[52].mxu0 %v5773_v54 }
  0xa0   : > { %1156 = vmatmul.mubr.bf16.gmra.mrb[52].mxu1 %v5781_v56  ;;  %1066 = vmatprep.mubr.bf16.mxu0 %v5786_v57 }
  0xa1   : > { %1163 = vmatprep.mubr.bf16.mxu1 %v5791_v58 }
  0xa7   : > { %1067 = vmatmul.mubr.bf16.gmra.mrb[56].mxu0 %v5809_v62 }
  0xa8   : > { %1164 = vmatmul.mubr.bf16.gmra.mrb[56].mxu1 %v5817_v2  ;;  %1074 = vmatprep.mubr.bf16.mxu0 %v5822_v4 }
  0xa9   : > { %1171 = vmatprep.mubr.bf16.mxu1 %v5827_v7 }
  0xaf   : > { %1075 = vmatmul.mubr.bf16.gmra.mrb[60].mxu0 %v5845_v13 }
  0xb0   : > { %1172 = vmatmul.mubr.bf16.gmra.mrb[60].mxu1 %v5853_v16  ;;  %1390 = vmatprep.mubr.bf16.mxu0 %v5968_v12 }
  0xb1   : > { %1487 = vmatprep.mubr.bf16.mxu1 %v5974_v14 }
  0xb7   : > { %1391 = vmatmul.mubr.bf16.vlgmr.msra.gmra.mrb[64].mxu0 %v5581_v42  ;;  %v3861_v42 = vld [vmem:[%s5507_s28 + $0x620] sm:$0xff] }
  0xb8   : > { %1488 = vmatmul.mubr.bf16.vlgmr.msra.gmra.mrb[64].mxu1 %v5589_v47  ;;  %4566 = vmatpush3.bf16.msra.mxu0 %v1698_v25  ;;  %v3894_v47 = vld [vmem:[%s5507_s28 + $0x728] sm:$0xff]  ;;  %v3913_v25 = vld [vmem:[%s5507_s28 + $0x7c0] sm:$0xff] }
  0xb9   : > { %4630 = vmatpush3.bf16.msra.mxu1 %v1714_v1  ;;  %1398 = vmatprep.mubr.bf16.mxu0 %v5595_v50  ;;  %v3911_v50 = vld [vmem:[%s5507_s28 + $0x7b0] sm:$0xff]  ;;  %v1716_v63 = vpack.c.bf16 %v3894_v47, %v3893_v55  ;;  %v1710_v1 = vpack.c.bf16 %v3882_v24, %v3881_v23  ;;  %v3917_v55 = vld [vmem:[%s5507_s28 + $0x7e0] sm:$0xff]  ;;  %v3918_v47 = vld [vmem:[%s5507_s28 + $0x7e8] sm:$0xff] }
  0xba   : > { %1495 = vmatprep.mubr.bf16.mxu1 %v5601_v53  ;;  %4567 = vmatprep.subr.bf16.mxu0 %v1707_v30  ;;  %v1700_v53 = vpack.c.bf16 %v3862_v49, %v3861_v42  ;;  %v1725_v20 = vpack.c.bf16 %v3912_v61, %v3911_v50  ;;  %v3883_v30 = vld [vmem:[%s5507_s28 + $0x6d0] sm:$0xff]  ;;  %v3900_v42 = vld [vmem:[%s5507_s28 + $0x758] sm:$0xff]  ;;  %v3885_v49 = vld [vmem:[%s5507_s28 + $0x6e0] sm:$0xff] }
  0xbb   : > { %4631 = vmatprep.subr.bf16.mxu1 %v1723_v35  ;;  %v1718_v35 = vpack.c.bf16 %v3898_v29, %v3897_v28  ;;  %v1711_v36 = vpack.c.bf16 %v3884_v31, %v3883_v30  ;;  %v3869_v50 = vld [vmem:[%s5507_s28 + $0x660] sm:$0xff]  ;;  %v3872_v23 = vld [vmem:[%s5507_s28 + $0x678] sm:$0xff]  ;;  %v3903_v24 = vld [vmem:[%s5507_s28 + $0x770] sm:$0xff] }
  0xbc   : > { %4568 = vmatpush3.bf16.msra.mxu0 %v1699_v38  ;;  %v3868_v38 = vld [vmem:[%s5507_s28 + $0x658] sm:$0xff]  ;;  %v3901_v61 = vld [vmem:[%s5507_s28 + $0x760] sm:$0xff] }
  0xbd   : > { %4632 = vmatpush3.bf16.msra.mxu1 %v1715_v41  ;;  %4569 = vmatprep.subr.bf16.mxu0 %v1708_v48  ;;  %v3899_v41 = vld [vmem:[%s5507_s28 + $0x750] sm:$0xff]  ;;  %v3973_v31 = vld [vmem:[%s5507_s28 + $0x9a0] sm:$0xff] }
  0xbe   : > { %4633 = vmatprep.subr.bf16.mxu1 %v1724_v52  ;;  %v3886_v52 = vld [vmem:[%s5507_s28 + $0x6e8] sm:$0xff]  ;;  %v1719_v59 = vpack.c.bf16 %v3900_v42, %v3899_v41  ;;  %v6090_v29 = vld [vmem:[%s7333_s1] ss:$16 sps:$4 sm:$0xff]  }
  0xbf   : > { %1399 = vmatmul.mubr.bf16.gmra.mrb[68].mxu0 %v5619_v6  ;;  %v1701_v6 = vpack.c.bf16 %v3864_v17, %v3863_v11  ;;  %v1712_v60 = vpack.c.bf16 %v3886_v52, %v3885_v49  ;;  %v3920_v11 = vld [vmem:[%s5507_s28 + $0x7f8] sm:$0xff]  ;;  %v3925_v41 = vld [vmem:[%s5507_s28 + $0x820] sm:$0xff]  ;;  %v3958_v52 = vld [vmem:[%s5507_s28 + $0x928] sm:$0xff] }
  0xc0   : > { %1496 = vmatmul.mubr.bf16.gmra.mrb[68].mxu1 %v5625_v9  ;;  %1406 = vmatprep.mubr.bf16.mxu0 %v5630_v10  ;;  %v3866_v9 = vld [vmem:[%s5507_s28 + $0x648] sm:$0xff]  ;;  %v1726_v10 = vpack.c.bf16 %v3914_v26, %v3913_v25  ;;  %v3904_v26 = vld [vmem:[%s5507_s28 + $0x778] sm:$0xff]  ;;  %v3957_v49 = vld [vmem:[%s5507_s28 + $0x920] sm:$0xff] }
  0xc1   : > { %1503 = vmatprep.mubr.bf16.mxu1 %v5638_v15  ;;  %4570 = vmatpush3.bf16.msra.mxu0 %v1700_v53  ;;  %v3915_v15 = vld [vmem:[%s5507_s28 + $0x7d0] sm:$0xff]  ;;  %v1702_v33 = vpack.c.bf16 %v3866_v9, %v3865_v27  ;;  %v3902_v53 = vld [vmem:[%s5507_s28 + $0x768] sm:$0xff]  ;;  %v1705_v9 = vpack.c.bf16 %v3872_v23, %v3871_v21  ;;  %v1721_v28 = vpack.c.bf16 %v3904_v26, %v3903_v24  ;;  %v3977_v21 = vld [vmem:[%s5507_s28 + $0x9c0] sm:$0xff] }
  0xc2   : > { %4634 = vmatpush3.bf16.msra.mxu1 %v1716_v63  ;;  %4571 = vmatprep.subr.bf16.mxu0 %v1709_v8  ;;  %v1727_v48 = vpack.c.bf16 %v3916_v32, %v3915_v15  ;;  %v3887_v63 = vld [vmem:[%s5507_s28 + $0x6f0] sm:$0xff]  ;;  %v3888_v8 = vld [vmem:[%s5507_s28 + $0x6f8] sm:$0xff]  ;;  %v1720_v18 = vpack.c.bf16 %v3902_v53, %v3901_v61  ;;  %v3970_v27 = vld [vmem:[%s5507_s28 + $0x988] sm:$0xff] }
  0xc3   : > { %4635 = vmatprep.subr.bf16.mxu1 %v1725_v20  ;;  %v1713_v20 = vpack.c.bf16 %v3888_v8, %v3887_v63  ;;  %v3974_v15 = vld [vmem:[%s5507_s28 + $0x9a8] sm:$0xff]  ;;  %v3927_v61 = vld [vmem:[%s5507_s28 + $0x830] sm:$0xff] }
  0xc4   : > { %v6098_v32 = vld [vmem:[%s7333_s1 + $0x8] ss:$16 sps:$4 sm:$0xff]   ;;  %v2096_v42 = vpack.c.bf16 %v3974_v15, %v3973_v31  ;;  %v3959_v53 = vld [vmem:[%s5507_s28 + $0x930] sm:$0xff]  ;;  %v6150_v24 = vld [vmem:[%s7333_s1 + $0x4c] ss:$16 sps:$4 sm:$0xff]  }
  0xc5   : > { %4572 = vmatpush3.bf16.msra.mxu0 %v1701_v6  ;;  %v3937_v6 = vld [vmem:[%s5507_s28 + $0x880] sm:$0xff]  ;;  %v3978_v23 = vld [vmem:[%s5507_s28 + $0x9c8] sm:$0xff] }
  0xc6   : > { %4636 = vmatpush3.bf16.msra.mxu1 %v1717_v0  ;;  %4573 = vmatprep.subr.bf16.mxu0 %v1710_v1  ;;  %v3938_v0 = vld [vmem:[%s5507_s28 + $0x888] sm:$0xff]  ;;  %v3969_v1 = vld [vmem:[%s5507_s28 + $0x980] sm:$0xff] }
  0xc7   : > { %1407 = vmatmul.mubr.bf16.gmra.mrb[72].mxu0 %v5661_v34  ;;  %4637 = vmatprep.subr.bf16.mxu1 %v1726_v10  ;;  %v1703_v34 = vpack.c.bf16 %v3868_v38, %v3867_v37  ;;  %v2078_v10 = vpack.c.bf16 %v3938_v0, %v3937_v6  ;;  %v6110_v38 = vld [vmem:[%s7333_s1 + $0x2c] ss:$16 sps:$4 sm:$0xff]   ;;  %v6127_v63 = vld [vmem:[%s7333_s1 + $0x20] ss:$16 sps:$4 sm:$0xff]  }
  0xc8   : > { %1504 = vmatmul.mubr.bf16.gmra.mrb[72].mxu1 %v5669_v39  ;;  %1414 = vmatprep.mubr.bf16.mxu0 %v5676_v46  ;;  %v3870_v39 = vld [vmem:[%s5507_s28 + $0x668] sm:$0xff]  ;;  %v1728_v46 = vpack.c.bf16 %v3918_v47, %v3917_v55  ;;  %v3943_v55 = vld [vmem:[%s5507_s28 + $0x8b0] sm:$0xff]  ;;  %v3944_v47 = vld [vmem:[%s5507_s28 + $0x8b8] sm:$0xff] }
  0xc9   : > { %1511 = vmatprep.mubr.bf16.mxu1 %v5683_v51  ;;  %4574 = vmatpush3.bf16.msra.mxu0 %v1702_v33  ;;  %v3919_v51 = vld [vmem:[%s5507_s28 + $0x7f0] sm:$0xff]  ;;  %v1704_v17 = vpack.c.bf16 %v3870_v39, %v3869_v50  ;;  %v2088_v50 = vpack.c.bf16 %v3958_v52, %v3957_v49  ;;  %v2081_v39 = vpack.c.bf16 %v3944_v47, %v3943_v55  ;;  %v3929_v0 = vld [vmem:[%s5507_s28 + $0x840] sm:$0xff]  ;;  %v6192_v31 = vld [vmem:[%s7333_s1 + $0x6c] ss:$16 sps:$4 sm:$0xff]  }
  0xca   : > { %4638 = vmatpush3.bf16.msra.mxu1 %v1718_v35  ;;  %4575 = vmatprep.subr.bf16.mxu0 %v1711_v36  ;;  %v1729_v25 = vpack.c.bf16 %v3920_v11, %v3919_v51  ;;  %v6104_v35 = vld [vmem:[%s7333_s1 + $0x24] ss:$16 sps:$4 sm:$0xff]   ;;  %v3960_v51 = vld [vmem:[%s5507_s28 + $0x938] sm:$0xff]  ;;  %v6195_v15 = vpop.permute.xlu1 %385  ;;  %v3934_v49 = vld [vmem:[%s5507_s28 + $0x868] sm:$0xff] }
  0xcb   : > { %4639 = vmatprep.subr.bf16.mxu1 %v1727_v48  ;;  %v3926_v48 = vld [vmem:[%s5507_s28 + $0x828] sm:$0xff]  ;;  %v3945_v11 = vld [vmem:[%s5507_s28 + $0x8c0] sm:$0xff]  ;;  %v2089_v26 = vpack.c.bf16 %v3960_v51, %v3959_v53  ;;  %v3983_v53 = vld [vmem:[%s5507_s28 + $0x9f0] sm:$0xff] }
  0xcc   : > { %v3965_v52 = vld [vmem:[%s5507_s28 + $0x960] sm:$0xff]  ;;  %v3966_v55 = vld [vmem:[%s5507_s28 + $0x968] sm:$0xff] }
  0xcd   : > { %4576 = vmatpush3.bf16.msra.mxu0 %v1703_v34  ;;  %v3975_v34 = vld [vmem:[%s5507_s28 + $0x9b0] sm:$0xff] }
  0xce   : > { %4640 = vmatpush3.bf16.msra.mxu1 %v1719_v59  ;;  %4577 = vmatprep.subr.bf16.mxu0 %v1712_v60  ;;  %v3976_v59 = vld [vmem:[%s5507_s28 + $0x9b8] sm:$0xff]  ;;  %v2072_v60 = vpack.c.bf16 %v3926_v48, %v3925_v41 }
  0xcf   : > { %1415 = vmatmul.mubr.bf16.gmra.mrb[76].mxu0 %v5700_v3  ;;  %4641 = vmatprep.subr.bf16.mxu1 %v1728_v46  ;;  %v2094_v3 = vpack.c.bf16 %v3970_v27, %v3969_v1  ;;  %v3928_v46 = vld [vmem:[%s5507_s28 + $0x838] sm:$0xff]  ;;  %v2097_v8 = vpack.c.bf16 %v3976_v59, %v3975_v34  ;;  %v3930_v1 = vld [vmem:[%s5507_s28 + $0x848] sm:$0xff]  ;;  %v3961_v27 = vld [vmem:[%s5507_s28 + $0x940] sm:$0xff] }
  0xd0   : > { %1512 = vmatmul.mubr.bf16.gmra.mrb[76].mxu1 %v5705_v5  ;;  %1422 = vmatprep.mubr.bf16.mxu0 %v5716_v19  ;;  %v3921_v5 = vld [vmem:[%s5507_s28 + $0x800] sm:$0xff]  ;;  %v3922_v19 = vld [vmem:[%s5507_s28 + $0x808] sm:$0xff] }
  0xd1   : > { %1519 = vmatprep.mubr.bf16.mxu1 %v5723_v22  ;;  %4578 = vmatpush3.bf16.msra.mxu0 %v1704_v17  ;;  %v3953_v22 = vld [vmem:[%s5507_s28 + $0x900] sm:$0xff]  ;;  %v3946_v17 = vld [vmem:[%s5507_s28 + $0x8c8] sm:$0xff] }
  0xd2   : > { %4642 = vmatpush3.bf16.msra.mxu1 %v1720_v18  ;;  %4579 = vmatprep.subr.bf16.mxu0 %v1713_v20  ;;  %v6136_v18 = vld [vmem:[%s7333_s1 + $0x28] ss:$16 sps:$4 sm:$0xff]   ;;  %v6142_v20 = vld [vmem:[%s7333_s1 + $0x44] ss:$16 sps:$4 sm:$0xff]   ;;  %v2082_v6 = vpack.c.bf16 %v3946_v17, %v3945_v11 }
  0xd3   : > { %4643 = vmatprep.subr.bf16.mxu1 %v1729_v25  ;;  %v2073_v25 = vpack.c.bf16 %v3928_v46, %v3927_v61 }
  0xd5   : > { %4580 = vmatpush3.bf16.msra.mxu0 %v1705_v9  ;;  %v2098_v9 = vpack.c.bf16 %v3978_v23, %v3977_v21  ;;  %v2092_v23 = vpack.c.bf16 %v3966_v55, %v3965_v52 }
  0xd6   : > { %4644 = vmatpush3.bf16.msra.mxu1 %v1721_v28  ;;  %4693 = vmatprep.subr.bf16.mxu0 %v2078_v10  ;;  %v3962_v28 = vld [vmem:[%s5507_s28 + $0x948] sm:$0xff]  ;;  %v3947_v10 = vld [vmem:[%s5507_s28 + $0x8d0] sm:$0xff] }
  0xd7   : > { %1423 = vmatmul.mubr.bf16.gmra.mrb[80].mxu0 %v5740_v40  ;;  %4757 = vmatprep.subr.bf16.mxu1 %v2094_v3  ;;  %v3954_v40 = vld [vmem:[%s5507_s28 + $0x908] sm:$0xff]  ;;  %v3948_v3 = vld [vmem:[%s5507_s28 + $0x8d8] sm:$0xff] }
  0xd8   : > { %1520 = vmatmul.mubr.bf16.gmra.mrb[80].mxu1 %v5745_v43  ;;  %1430 = vmatprep.mubr.bf16.mxu0 %v5750_v44  ;;  %v3939_v43 = vld [vmem:[%s5507_s28 + $0x890] sm:$0xff]  ;;  %v3940_v44 = vld [vmem:[%s5507_s28 + $0x898] sm:$0xff] }
  0xd9   : > { %1527 = vmatprep.mubr.bf16.mxu1 %v5755_v45  ;;  %v2070_v45 = vpack.c.bf16 %v3922_v19, %v3921_v5  ;;  %v6159_v5 = vpop.permute.xlu0 %375  ;;  %v3979_v19 = vld [vmem:[%s5507_s28 + $0x9d0] sm:$0xff] }
  0xdd   : > { %v6198_v41 = vpop.permute.xlu0 %380 }
  0xdf   : > { %1431 = vmatmul.mubr.bf16.gmra.mrb[84].mxu0 %v5773_v54  ;;  %v3971_v54 = vld [vmem:[%s5507_s28 + $0x990] sm:$0xff] }
  0xe0   : > { %1528 = vmatmul.mubr.bf16.gmra.mrb[84].mxu1 %v5781_v56  ;;  %1438 = vmatprep.mubr.bf16.mxu0 %v5786_v57  ;;  %v3972_v56 = vld [vmem:[%s5507_s28 + $0x998] sm:$0xff]  ;;  %v2086_v57 = vpack.c.bf16 %v3954_v40, %v3953_v22  ;;  %v2074_v40 = vpack.c.bf16 %v3930_v1, %v3929_v0  ;;  %v3935_v1 = vld [vmem:[%s5507_s28 + $0x870] sm:$0xff] }
  0xe1   : > { %1535 = vmatprep.mubr.bf16.mxu1 %v5791_v58  ;;  %v3923_v58 = vld [vmem:[%s5507_s28 + $0x810] sm:$0xff]  ;;  %v2095_v30 = vpack.c.bf16 %v3972_v56, %v3971_v54  ;;  %v3980_v22 = vld [vmem:[%s5507_s28 + $0x9d8] sm:$0xff] }
  0xe2   : > { %v3932_v54 = vld [vmem:[%s5507_s28 + $0x858] sm:$0xff]  ;;  %v3963_v56 = vld [vmem:[%s5507_s28 + $0x950] sm:$0xff] }
  0xe7   : > { %1439 = vmatmul.mubr.bf16.gmra.mrb[88].mxu0 %v5809_v62  ;;  %v3924_v62 = vld [vmem:[%s5507_s28 + $0x818] sm:$0xff] }
  0xe8   : > { %1536 = vmatmul.mubr.bf16.gmra.mrb[88].mxu1 %v5817_v2  ;;  %1446 = vmatprep.mubr.bf16.mxu0 %v5822_v4  ;;  %v3955_v2 = vld [vmem:[%s5507_s28 + $0x910] sm:$0xff]  ;;  %v2079_v4 = vpack.c.bf16 %v3940_v44, %v3939_v43  ;;  %v2071_v33 = vpack.c.bf16 %v3924_v62, %v3923_v58  ;;  %v2090_v43 = vpack.c.bf16 %v3962_v28, %v3961_v27  ;;  %v3964_v62 = vld [vmem:[%s5507_s28 + $0x958] sm:$0xff] }
  0xe9   : > { %1543 = vmatprep.mubr.bf16.mxu1 %v5827_v7  ;;  %v3956_v7 = vld [vmem:[%s5507_s28 + $0x918] sm:$0xff]  ;;  %v2083_v44 = vpack.c.bf16 %v3948_v3, %v3947_v10  ;;  %v2099_v58 = vpack.c.bf16 %v3980_v22, %v3979_v19  ;;  %v2091_v48 = vpack.c.bf16 %v3964_v62, %v3963_v56  ;;  %v6214_v10 = vld [vmem:[%s7333_s1 + $0x60] ss:$16 sps:$4 sm:$0xff]  }
  0xea   : > { %v2087_v36 = vpack.c.bf16 %v3956_v7, %v3955_v2  ;;  %v3949_v2 = vld [vmem:[%s5507_s28 + $0x8e0] sm:$0xff]  ;;  %v6178_v7 = vld [vmem:[%s7333_s1 + $0x48] ss:$16 sps:$4 sm:$0xff]   ;;  %v6238_v62 = vld [vmem:[%s7333_s1 + $0x8c] ss:$16 sps:$4 sm:$0xff]  }
  0xeb   : > { %v3936_v27 = vld [vmem:[%s5507_s28 + $0x878] sm:$0xff]  ;;  %v4001_v22 = vld [vmem:[%s5507_s28 + $0xa80] sm:$0xff] }
  0xec   : > { %v3968_v19 = vld [vmem:[%s5507_s28 + $0x978] sm:$0xff]  ;;  %v4033_v56 = vld [vmem:[%s5507_s28 + $0xb80] sm:$0xff] }
  0xef   : > { %1447 = vmatmul.mubr.bf16.gmra.mrb[92].mxu0 %v5845_v13  ;;  %v3941_v13 = vld [vmem:[%s5507_s28 + $0x8a0] sm:$0xff] }
  0xf0   : > { %1544 = vmatmul.mubr.bf16.gmra.mrb[92].mxu1 %v5853_v16  ;;  %1762 = vmatprep.mubr.bf16.mxu0 %v5968_v12  ;;  %v3942_v16 = vld [vmem:[%s5507_s28 + $0x8a8] sm:$0xff] }
  0xf1   : > { %1859 = vmatprep.mubr.bf16.mxu1 %v5974_v14  ;;  %v2080_v37 = vpack.c.bf16 %v3942_v16, %v3941_v13  ;;  %v6184_v13 = vld [vmem:[%s7333_s1 + $0x64] ss:$16 sps:$4 sm:$0xff]  }
  0xf2   : > { %v3981_v16 = vld [vmem:[%s5507_s28 + $0x9e0] sm:$0xff] }
  0xf7   : > { %1763 = vmatmul.mubr.bf16.vlgmr.msra.gmra.mrb[96].mxu0 %v6090_v29 }
  0xf8   : > { %1860 = vmatmul.mubr.bf16.vlgmr.msra.gmra.mrb[96].mxu1 %v6098_v32  ;;  %4694 = vmatpush3.bf16.msra.mxu0 %v2070_v45  ;;  %v3931_v45 = vld [vmem:[%s5507_s28 + $0x850] sm:$0xff] }
  0xf9   : > { %4758 = vmatpush3.bf16.msra.mxu1 %v2086_v57  ;;  %1770 = vmatprep.mubr.bf16.mxu0 %v6104_v35  ;;  %v6169_v57 = vld [vmem:[%s7333_s1 + $0x40] ss:$16 sps:$4 sm:$0xff]  }
  0xfa   : > { %1867 = vmatprep.mubr.bf16.mxu1 %v6110_v38  ;;  %4695 = vmatprep.subr.bf16.mxu0 %v2079_v4  ;;  %v3950_v4 = vld [vmem:[%s5507_s28 + $0x8e8] sm:$0xff] }
  0xfb   : > { %4759 = vmatprep.subr.bf16.mxu1 %v2095_v30  ;;  %v3982_v30 = vld [vmem:[%s5507_s28 + $0x9e8] sm:$0xff] }
  0xfc   : > { %4696 = vmatpush3.bf16.msra.mxu0 %v2071_v33  ;;  %v2075_v33 = vpack.c.bf16 %v3932_v54, %v3931_v45  ;;  %v2100_v59 = vpack.c.bf16 %v3982_v30, %v3981_v16  ;;  %v6229_v45 = vld [vmem:[%s7333_s1 + $0x84] ss:$16 sps:$4 sm:$0xff]   ;;  %v6241_v30 = vpop.permute.xlu1 %390 }
  0xfd   : > { %4760 = vmatpush3.bf16.msra.mxu1 %v2087_v36  ;;  %4697 = vmatprep.subr.bf16.mxu0 %v2080_v37  ;;  %v3933_v36 = vld [vmem:[%s5507_s28 + $0x860] sm:$0xff] }
  0xfe   : > { %4761 = vmatprep.subr.bf16.mxu1 %v2096_v42  ;;  %v2084_v42 = vpack.c.bf16 %v3950_v4, %v3949_v2  ;;  %v2076_v21 = vpack.c.bf16 %v3934_v49, %v3933_v36  ;;  %v2077_v2 = vpack.c.bf16 %v3936_v27, %v3935_v1 }
  0xff   : > { %1771 = vmatmul.mubr.bf16.gmra.mrb[100].mxu0 %v6127_v63 }
 0x100   : > { %1868 = vmatmul.mubr.bf16.gmra.mrb[100].mxu1 %v6136_v18  ;;  %1778 = vmatprep.mubr.bf16.mxu0 %v6142_v20  ;;  %v6273_v27 = vpop.permute.xlu1 %400 }
 0x101   : > { %1875 = vmatprep.mubr.bf16.mxu1 %v6150_v24  ;;  %4698 = vmatpush3.bf16.msra.mxu0 %v2072_v60  ;;  %v3951_v60 = vld [vmem:[%s5507_s28 + $0x8f0] sm:$0xff] }
 0x102   : > { %4762 = vmatpush3.bf16.msra.mxu1 %v2088_v50  ;;  %4699 = vmatprep.subr.bf16.mxu0 %v2081_v39  ;;  %v3952_v50 = vld [vmem:[%s5507_s28 + $0x8f8] sm:$0xff] }
 0x103   : > { %4763 = vmatprep.subr.bf16.mxu1 %v2097_v8  ;;  %v3984_v8 = vld [vmem:[%s5507_s28 + $0x9f8] sm:$0xff]  ;;  %v2085_v0 = vpack.c.bf16 %v3952_v50, %v3951_v60 }
 0x104   : > { %v2101_v3 = vpack.c.bf16 %v3984_v8, %v3983_v53 }
 0x105   : > { %4700 = vmatpush3.bf16.msra.mxu0 %v2073_v25 }
 0x106   : > { %4764 = vmatpush3.bf16.msra.mxu1 %v2089_v26  ;;  %4701 = vmatprep.subr.bf16.mxu0 %v2082_v6 }
 0x107   : > { %1779 = vmatmul.mubr.bf16.gmra.mrb[104].mxu0 %v6169_v57  ;;  %4765 = vmatprep.subr.bf16.mxu1 %v2098_v9  ;;  %v3967_v9 = vld [vmem:[%s5507_s28 + $0x970] sm:$0xff] }
 0x108   : > { %1876 = vmatmul.mubr.bf16.gmra.mrb[104].mxu1 %v6178_v7  ;;  %1786 = vmatprep.mubr.bf16.mxu0 %v6184_v13  ;;  %v2093_v36 = vpack.c.bf16 %v3968_v19, %v3967_v9 }
 0x109   : > { %1883 = vmatprep.mubr.bf16.mxu1 %v6192_v31  ;;  %4702 = vmatpush3.bf16.msra.mxu0 %v2074_v40  ;;  %v4002_v40 = vld [vmem:[%s5507_s28 + $0xa88] sm:$0xff] }
 0x10a   : > { %v4197_v37 = vpop.f32.mrb[0].mxu0  ;;  %4766 = vmatpush3.bf16.msra.mxu1 %v2090_v43  ;;  %4703 = vmatprep.subr.bf16.mxu0 %v2083_v44  ;;  %v6223_v44 = vld [vmem:[%s7333_s1 + $0x68] ss:$16 sps:$4 sm:$0xff]  }
 0x10b   : > { %v4261_v47 = vpop.f32.mrb[0].mxu1  ;;  %v4198_v34 = vpop.f32.mrb[1].mxu0  ;;  %4767 = vmatprep.subr.bf16.mxu1 %v2099_v58  ;;  %v4034_v58 = vld [vmem:[%s5507_s28 + $0xb88] sm:$0xff] }
 0x10c   : > { %v4199_v39 = vadd.f32 %v4198_v34, %v4197_v37  ;;  %v4262_v61 = vpop.f32.mrb[1].mxu1  ;;  %v4200_v46 = vpop.f32.mrb[2].mxu0  ;;  %v2450_v37 = vpack.c.bf16 %v4002_v40, %v4001_v22  ;;  %v2466_v49 = vpack.c.bf16 %v4034_v58, %v4033_v56 }
 0x10d   : > { %v4263_v51 = vadd.f32 %v4262_v61, %v4261_v47  ;;  %v4264_v11 = vpop.f32.mrb[2].mxu1  ;;  %v4201_v17 = vpop.f32.mrb[3].mxu0  ;;  %4704 = vmatpush3.bf16.msra.mxu0 %v2075_v33 }
 0x10e   : > { %v648_v25 = vadd.f32 %v4199_v39, %v6159_v5  ;;  %v4202_v26 = vadd.f32 %v4201_v17, %v4200_v46  ;;  %v4265_v6 = vpop.f32.mrb[3].mxu1  ;;  %4768 = vmatpush3.bf16.msra.mxu1 %v2091_v48  ;;  %4705 = vmatprep.subr.bf16.mxu0 %v2084_v42  ;;  %v6254_v17 = vld [vmem:[%s7333_s1 + $0x88] ss:$16 sps:$4 sm:$0xff]  }
 0x10f   : > { %v4266_v28 = vadd.f32 %v4265_v6, %v4264_v11  ;;  %1787 = vmatmul.mubr.bf16.gmra.mrb[108].mxu0 %v6214_v10  ;;  %4769 = vmatprep.subr.bf16.mxu1 %v2100_v59  ;;  %v6270_v6 = vld [vmem:[%s7333_s1 + $0xac] ss:$16 sps:$4 sm:$0xff]  }
 0x110   : > { %v745_v43 = vadd.f32 %v4263_v51, %v648_v25  ;;  %1884 = vmatmul.mubr.bf16.gmra.mrb[108].mxu1 %v6223_v44  ;;  %1794 = vmatprep.mubr.bf16.mxu0 %v6229_v45  ;;  %v651_v54 = vadd.f32 %v4202_v26, %v6198_v41  ;;  %v6248_v51 = vld [vmem:[%s7333_s1 + $0x80] ss:$16 sps:$4 sm:$0xff]   ;;  %v6265_v26 = vpop.permute.xlu0 %395 }
 0x111   : > { %1891 = vmatprep.mubr.bf16.mxu1 %v6238_v62  ;;  %4706 = vmatpush3.bf16.msra.mxu0 %v2076_v21 }
 0x112   : > { %v4203_v4 = vpop.f32.mrb[4].mxu0  ;;  %v807_v16 = vmax.f32 %v745_v43, 0.0  ;;  %v748_v33 = vadd.f32 %v4266_v28, %v651_v54  ;;  %4770 = vmatpush3.bf16.msra.mxu1 %v2092_v23  ;;  %4707 = vmatprep.subr.bf16.mxu0 %v2085_v0  ;;  %v6261_v23 = vld [vmem:[%s7333_s1 + $0xa4] ss:$16 sps:$4 sm:$0xff]  }
 0x113   : > { %v4267_v48 = vpop.f32.mrb[4].mxu1  ;;  %v4204_v42 = vpop.f32.mrb[5].mxu0  ;;  %4771 = vmatprep.subr.bf16.mxu1 %v2101_v3 }
 0x114   : > { %v4205_v52 = vadd.f32 %v4204_v42, %v4203_v4  ;;  %v4268_v55 = vpop.f32.mrb[5].mxu1  ;;  %v4206_v47 = vpop.f32.mrb[6].mxu0  ;;  %v824_v34 = vsel %vm823_vm0, %v807_v16, 0.0  ;;  %v808_v59 = vmax.f32 %v748_v33, 0.0 }
 0x115   : > { %v4269_v60 = vadd.f32 %v4268_v55, %v4267_v48  ;;  %v4270_v50 = vpop.f32.mrb[6].mxu1  ;;  %v4207_v39 = vpop.f32.mrb[7].mxu0  ;;  %825 = vadd.xlane.f32.xlu0 %v824_v34  ;;  %4708 = vmatpush3.bf16.msra.mxu0 %v2077_v2  ;;  %v6286_v48 = vld [vmem:[%s7333_s1 + $0xa8] ss:$16 sps:$4 sm:$0xff]   ;;  %v6302_v34 = vld [vmem:[%s7333_s1 + $0xcc] ss:$16 sps:$4 sm:$0xff]  }
 0x116   : > { %v656_v61 = vadd.f32 %v4205_v52, %v6195_v15  ;;  %v4208_v46 = vadd.f32 %v4207_v39, %v4206_v47  ;;  %v4271_v53 = vpop.f32.mrb[7].mxu1  ;;  %4772 = vmatpush3.bf16.msra.mxu1 %v2093_v36  ;;  %4821 = vmatprep.subr.bf16.mxu0 %v2450_v37  ;;  %v827_v21 = vsel %vm823_vm0, %v808_v59, 0.0  ;;  %v6280_v37 = vld [vmem:[%s7333_s1 + $0xa0] ss:$16 sps:$4 sm:$0xff]   ;;  %v6293_v52 = vld [vmem:[%s7333_s1 + $0xc4] ss:$16 sps:$4 sm:$0xff]   ;;  %v6297_v47 = vpop.permute.xlu0 %405 }
 0x117   : > { %v4272_v8 = vadd.f32 %v4271_v53, %v4270_v50  ;;  %1795 = vmatmul.mubr.bf16.gmra.mrb[112].mxu0 %v6248_v51  ;;  %4885 = vmatprep.subr.bf16.mxu1 %v2466_v49  ;;  %7359 = vst [vmem:[#allocation3_spill] sm:$0xff] %v6297_v47  ;;  %v6305_v50 = vpop.permute.xlu1 %410 }
 0x118   : > { %v753_v11 = vadd.f32 %v4269_v60, %v656_v61  ;;  %1892 = vmatmul.mubr.bf16.gmra.mrb[112].mxu1 %v6254_v17  ;;  %1802 = vmatprep.mubr.bf16.mxu0 %v6261_v23  ;;  %v659_v25 = vadd.f32 %v4208_v46, %v6241_v30  ;;  %7360 = vst [vmem:[#allocation4_spill] sm:$0xff] %v6305_v50 }
 0x119   : > { %828 = vadd.xlane.f32.xlu0 %v827_v21  ;;  %1899 = vmatprep.mubr.bf16.mxu1 %v6270_v6 }
 0x11a   : > { %v4209_v0 = vpop.f32.mrb[8].mxu0  ;;  %v809_v1 = vmax.f32 %v753_v11, 0.0  ;;  %v756_v9 = vadd.f32 %v4272_v8, %v659_v25 }
 0x11b   : > { %v4273_v28 = vpop.f32.mrb[8].mxu1  ;;  %v4210_v3 = vpop.f32.mrb[9].mxu0 }
 0x11c   : > { %v4211_v19 = vadd.f32 %v4210_v3, %v4209_v0  ;;  %v4274_v22 = vpop.f32.mrb[9].mxu1  ;;  %v4212_v40 = vpop.f32.mrb[10].mxu0  ;;  %v830_v43 = vsel %vm823_vm0, %v809_v1, 0.0  ;;  %v810_v54 = vmax.f32 %v756_v9, 0.0 }
 0x11d   : > { %v4275_v56 = vadd.f32 %v4274_v22, %v4273_v28  ;;  %v4276_v58 = vpop.f32.mrb[10].mxu1  ;;  %v4213_v2 = vpop.f32.mrb[11].mxu0  ;;  %831 = vadd.xlane.f32.xlu1 %v830_v43  ;;  %v6318_v43 = vld [vmem:[%s7333_s1 + $0xc8] ss:$16 sps:$4 sm:$0xff]  }
 0x11e   : > { %v4214_v4 = vadd.f32 %v4213_v2, %v4212_v40  ;;  %v4277_v16 = vpop.f32.mrb[11].mxu1  ;;  %v664_v33 = vadd.f32 %v4211_v19, %v6265_v26  ;;  %v833_v42 = vsel %vm823_vm0, %v810_v54, 0.0  ;;  %v6312_v40 = vld [vmem:[%s7333_s1 + $0xc0] ss:$16 sps:$4 sm:$0xff]   ;;  %7361 = vst [vmem:[#allocation5_spill] sm:$0xff] %v6318_v43 }
 0x11f   : > { %v4278_v36 = vadd.f32 %v4277_v16, %v4276_v58  ;;  %1803 = vmatmul.mubr.bf16.gmra.mrb[116].mxu0 %v6280_v37  ;;  %v6325_v58 = vld [vmem:[%s7333_s1 + $0xe4] ss:$16 sps:$4 sm:$0xff]   ;;  %v6334_v16 = vld [vmem:[%s7333_s1 + $0xec] ss:$16 sps:$4 sm:$0xff]  }
 0x120   : > { %1900 = vmatmul.mubr.bf16.gmra.mrb[116].mxu1 %v6286_v48  ;;  %v761_v49 = vadd.f32 %v4275_v56, %v664_v33  ;;  %1810 = vmatprep.mubr.bf16.mxu0 %v6293_v52  ;;  %v667_v55 = vadd.f32 %v4214_v4, %v6273_v27  ;;  %7362 = vst [vmem:[#allocation6_spill] sm:$0xff] %v6325_v58  ;;  %v6329_v4 = vpop.permute.xlu0 %415  ;;  %7364 = vst [vmem:[#allocation8_spill] sm:$0xff] %v6334_v16 }
 0x121   : > { %834 = vadd.xlane.f32.xlu1 %v833_v42  ;;  %1907 = vmatprep.mubr.bf16.mxu1 %v6302_v34  ;;  %7363 = vst [vmem:[#allocation7_spill] sm:$0xff] %v6329_v4  ;;  %v6337_v42 = vpop.permute.xlu1 %420 }
 0x122   : > { %v4215_v59 = vpop.f32.mrb[12].mxu0  ;;  %v811_v60 = vmax.f32 %v761_v49, 0.0  ;;  %v764_v39 = vadd.f32 %v4278_v36, %v667_v55  ;;  %7365 = vst [vmem:[#allocation9_spill] sm:$0xff] %v6337_v42 }
 0x123   : > { %v4279_v61 = vpop.f32.mrb[12].mxu1  ;;  %v4216_v46 = vpop.f32.mrb[13].mxu0 }
 0x124   : > { %v4217_v53 = vadd.f32 %v4216_v46, %v4215_v59  ;;  %v4280_v8 = vpop.f32.mrb[13].mxu1  ;;  %v4218_v11 = vpop.f32.mrb[14].mxu0  ;;  %v836_v21 = vsel %vm823_vm0, %v811_v60, 0.0  ;;  %v812_v25 = vmax.f32 %v764_v39, 0.0 }
 0x125   : > { %v4281_v0 = vadd.f32 %v4280_v8, %v4279_v61  ;;  %v4282_v1 = vpop.f32.mrb[14].mxu1  ;;  %v4219_v9 = vpop.f32.mrb[15].mxu0  ;;  %837 = vadd.xlane.f32.xlu1 %v836_v21 }
 0x126   : > { %v4220_v28 = vadd.f32 %v4219_v9, %v4218_v11  ;;  %v4283_v3 = vpop.f32.mrb[15].mxu1  ;;  %v672_v19 = vadd.f32 %v4217_v53, %v6297_v47  ;;  %v839_v54 = vsel %vm823_vm0, %v812_v25, 0.0 }
 0x127   : > { %v4284_v22 = vadd.f32 %v4283_v3, %v4282_v1  ;;  %1811 = vmatmul.mubr.bf16.gmra.mrb[120].mxu0 %v6312_v40  ;;  %v6350_v3 = vld [vmem:[%s7333_s1 + $0xe8] ss:$16 sps:$4 sm:$0xff]  }
 0x128   : > { %1908 = vmatmul.mubr.bf16.gmra.mrb[120].mxu1 %v6318_v43  ;;  %v769_v56 = vadd.f32 %v4281_v0, %v672_v19  ;;  %1818 = vmatprep.mubr.bf16.mxu0 %v6325_v58  ;;  %v675_v2 = vadd.f32 %v4220_v28, %v6305_v50  ;;  %v6344_v28 = vld [vmem:[%s7333_s1 + $0xe0] ss:$16 sps:$4 sm:$0xff]   ;;  %7367 = vst [vmem:[#allocation11_spill] sm:$0xff] %v6350_v3  ;;  %v4038_v43 = vld [vmem:[%s5507_s28 + $0xba8] sm:$0xff] }
 0x129   : > { %840 = vadd.xlane.f32.xlu1 %v839_v54  ;;  %1915 = vmatprep.mubr.bf16.mxu1 %v6334_v16  ;;  %7366 = vst [vmem:[#allocation10_spill] sm:$0xff] %v6344_v28  ;;  %v4006_v16 = vld [vmem:[%s5507_s28 + $0xaa8] sm:$0xff]  ;;  %v4037_v58 = vld [vmem:[%s5507_s28 + $0xba0] sm:$0xff] }
 0x12a   : > { %v4221_v33 = vpop.f32.mrb[16].mxu0  ;;  %v813_v36 = vmax.f32 %v769_v56, 0.0  ;;  %v772_v49 = vadd.f32 %v4284_v22, %v675_v2  ;;  %v6356_v56 = vpop.permute.xlu0 %425  ;;  %v3985_v2 = vld [vmem:[%s5507_s28 + $0xa00] sm:$0xff] }
 0x12b   : > { %v4285_v55 = vpop.f32.mrb[16].mxu1  ;;  %v4222_v59 = vpop.f32.mrb[17].mxu0 }
 0x12c   : > { %v4223_v60 = vadd.f32 %v4222_v59, %v4221_v33  ;;  %v4286_v39 = vpop.f32.mrb[17].mxu1  ;;  %v4224_v61 = vpop.f32.mrb[18].mxu0  ;;  %v842_v46 = vsel %vm823_vm0, %v813_v36, 0.0  ;;  %v814_v53 = vmax.f32 %v772_v49, 0.0  ;;  %v3986_v33 = vld [vmem:[%s5507_s28 + $0xa08] sm:$0xff] }
 0x12d   : > { %v4287_v8 = vadd.f32 %v4286_v39, %v4285_v55  ;;  %v4288_v11 = vpop.f32.mrb[18].mxu1  ;;  %v4225_v21 = vpop.f32.mrb[19].mxu0  ;;  %843 = vadd.xlane.f32.xlu1 %v842_v46  ;;  %v4018_v39 = vld [vmem:[%s5507_s28 + $0xb08] sm:$0xff]  ;;  %v4003_v46 = vld [vmem:[%s5507_s28 + $0xa90] sm:$0xff] }
 0x12e   : > { %v4226_v25 = vadd.f32 %v4225_v21, %v4224_v61  ;;  %v4289_v0 = vpop.f32.mrb[19].mxu1  ;;  %v680_v1 = vadd.f32 %v4223_v60, %v6329_v4  ;;  %v845_v19 = vsel %vm823_vm0, %v814_v53, 0.0  ;;  %v6361_v55 = vpop.permute.xlu1 %430  ;;  %v4017_v60 = vld [vmem:[%s5507_s28 + $0xb00] sm:$0xff]  ;;  %v4004_v53 = vld [vmem:[%s5507_s28 + $0xa98] sm:$0xff]  ;;  %v4019_v4 = vld [vmem:[%s5507_s28 + $0xb10] sm:$0xff] }
 0x12f   : > { %v4290_v9 = vadd.f32 %v4289_v0, %v4288_v11  ;;  %1819 = vmatmul.mubr.bf16.gmra.mrb[124].mxu0 %v6344_v28 }
 0x130   : > { %1916 = vmatmul.mubr.bf16.gmra.mrb[124].mxu1 %v6350_v3  ;;  %v777_v22 = vadd.f32 %v4287_v8, %v680_v1  ;;  %2134 = vmatprep.mubr.bf16.mxu0 %v5968_v12  ;;  %v683_v54 = vadd.f32 %v4226_v25, %v6337_v42  ;;  %v2442_v25 = vpack.c.bf16 %v3986_v33, %v3985_v2  ;;  %v4035_v1 = vld [vmem:[%s5507_s28 + $0xb90] sm:$0xff]  ;;  %v4020_v2 = vld [vmem:[%s5507_s28 + $0xb18] sm:$0xff]  ;;  %v4005_v33 = vld [vmem:[%s5507_s28 + $0xaa0] sm:$0xff] }
 0x131   : > { %846 = vadd.xlane.f32.xlu1 %v845_v19  ;;  %2231 = vmatprep.mubr.bf16.mxu1 %v5974_v14  ;;  %v2458_v3 = vpack.c.bf16 %v4018_v39, %v4017_v60 }
 0x132   : > { %v4227_v36 = vpop.f32.mrb[20].mxu0  ;;  %v815_v49 = vmax.f32 %v777_v22, 0.0  ;;  %v780_v59 = vadd.f32 %v4290_v9, %v683_v54  ;;  %v4036_v9 = vld [vmem:[%s5507_s28 + $0xb98] sm:$0xff] }
 0x133   : > { %v4291_v12 = vpop.f32.mrb[20].mxu1  ;;  %v4228_v61 = vpop.f32.mrb[21].mxu0 }
 0x134   : > { %v4229_v8 = vadd.f32 %v4228_v61, %v4227_v36  ;;  %v4292_v11 = vpop.f32.mrb[21].mxu1  ;;  %v4230_v14 = vpop.f32.mrb[22].mxu0  ;;  %v848_v21 = vsel %vm823_vm0, %v815_v49, 0.0  ;;  %v816_v0 = vmax.f32 %v780_v59, 0.0  ;;  %v3987_v36 = vld [vmem:[%s5507_s28 + $0xa10] sm:$0xff]  ;;  %v3988_v61 = vld [vmem:[%s5507_s28 + $0xa18] sm:$0xff] }
 0x135   : > { %v4293_v19 = vadd.f32 %v4292_v11, %v4291_v12  ;;  %v4294_v22 = vpop.f32.mrb[22].mxu1  ;;  %v4231_v54 = vpop.f32.mrb[23].mxu0  ;;  %849 = vadd.xlane.f32.xlu1 %v848_v21  ;;  %v2451_v12 = vpack.c.bf16 %v4004_v53, %v4003_v46  ;;  %v2467_v11 = vpack.c.bf16 %v4036_v9, %v4035_v1  ;;  %v4021_v1 = vld [vmem:[%s5507_s28 + $0xb20] sm:$0xff] }
 0x136   : > { %v4232_v42 = vadd.f32 %v4231_v54, %v4230_v14  ;;  %v4295_v28 = vpop.f32.mrb[23].mxu1  ;;  %v688_v49 = vadd.f32 %v4229_v8, %v6356_v56  ;;  %v851_v60 = vsel %vm823_vm0, %v816_v0, 0.0  ;;  %v2443_v8 = vpack.c.bf16 %v3988_v61, %v3987_v36  ;;  %v3989_v0 = vld [vmem:[%s5507_s28 + $0xa20] sm:$0xff]  ;;  %v4008_v54 = vld [vmem:[%s5507_s28 + $0xab8] sm:$0xff] }
 0x137   : > { %v4296_v59 = vadd.f32 %v4295_v28, %v4294_v22  ;;  %2135 = vmatmul.mubr.bf16.vlgmr.msra.gmra.mrb[128].mxu0 %v6090_v29  ;;  %v6383_v29 = vpop.permute.xlu0 %435  ;;  %v2459_v28 = vpack.c.bf16 %v4020_v2, %v4019_v4  ;;  %v4007_v22 = vld [vmem:[%s5507_s28 + $0xab0] sm:$0xff]  ;;  %v4040_v2 = vld [vmem:[%s5507_s28 + $0xbb8] sm:$0xff] }
 0x138   : > { %2232 = vmatmul.mubr.bf16.vlgmr.msra.gmra.mrb[128].mxu1 %v6098_v32  ;;  %4822 = vmatpush3.bf16.msra.mxu0 %v2442_v25  ;;  %v785_v39 = vadd.f32 %v4293_v19, %v688_v49  ;;  %v691_v14 = vadd.f32 %v4232_v42, %v6361_v55  ;;  %v6387_v32 = vpop.permute.xlu1 %440  ;;  %v2452_v25 = vpack.c.bf16 %v4006_v16, %v4005_v33  ;;  %v3990_v42 = vld [vmem:[%s5507_s28 + $0xa28] sm:$0xff]  ;;  %v4039_v49 = vld [vmem:[%s5507_s28 + $0xbb0] sm:$0xff] }
 0x139   : > { %852 = vadd.xlane.f32.xlu1 %v851_v60  ;;  %4886 = vmatpush3.bf16.msra.mxu1 %v2458_v3  ;;  %v2468_v3 = vpack.c.bf16 %v4038_v43, %v4037_v58  ;;  %v4022_v19 = vld [vmem:[%s5507_s28 + $0xb28] sm:$0xff] }
 0x13a   : > { %v4233_v46 = vpop.f32.mrb[24].mxu0  ;;  %v817_v53 = vmax.f32 %v785_v39, 0.0  ;;  %2142 = vmatprep.mubr.bf16.mxu0 %v6104_v35  ;;  %2239 = vmatprep.mubr.bf16.mxu1 %v6110_v38  ;;  %v788_v21 = vadd.f32 %v4296_v59, %v691_v14  ;;  %v2444_v59 = vpack.c.bf16 %v3990_v42, %v3989_v0  ;;  %v2460_v39 = vpack.c.bf16 %v4022_v19, %v4021_v1  ;;  %v4009_v42 = vld [vmem:[%s5507_s28 + $0xac0] sm:$0xff] }
 0x13b   : > { %v4297_v4 = vpop.f32.mrb[24].mxu1  ;;  %v4234_v9 = vpop.f32.mrb[25].mxu0  ;;  %4823 = vmatprep.subr.bf16.mxu0 %v2451_v12  ;;  %4887 = vmatprep.subr.bf16.mxu1 %v2467_v11 }
 0x13c   : > { %v4235_v35 = vadd.f32 %v4234_v9, %v4233_v46  ;;  %v4298_v36 = vpop.f32.mrb[25].mxu1  ;;  %v4236_v38 = vpop.f32.mrb[26].mxu0  ;;  %v854_v61 = vsel %vm823_vm0, %v817_v53, 0.0  ;;  %4824 = vmatpush3.bf16.msra.mxu0 %v2443_v8  ;;  %v818_v16 = vmax.f32 %v788_v21, 0.0  ;;  %v3991_v8 = vld [vmem:[%s5507_s28 + $0xa30] sm:$0xff]  ;;  %v2453_v46 = vpack.c.bf16 %v4008_v54, %v4007_v22  ;;  %v3992_v53 = vld [vmem:[%s5507_s28 + $0xa38] sm:$0xff] }
 0x13d   : > { %v4299_v43 = vadd.f32 %v4298_v36, %v4297_v4  ;;  %v4300_v58 = vpop.f32.mrb[26].mxu1  ;;  %v4237_v33 = vpop.f32.mrb[27].mxu0  ;;  %855 = vadd.xlane.f32.xlu1 %v854_v61  ;;  %4888 = vmatpush3.bf16.msra.mxu1 %v2459_v28  ;;  %v2469_v21 = vpack.c.bf16 %v4040_v2, %v4039_v49  ;;  %v4023_v4 = vld [vmem:[%s5507_s28 + $0xb30] sm:$0xff]  ;;  %v4024_v9 = vld [vmem:[%s5507_s28 + $0xb38] sm:$0xff]  ;;  %v2445_v22 = vpack.c.bf16 %v3992_v53, %v3991_v8  ;;  %v3994_v36 = vld [vmem:[%s5507_s28 + $0xa48] sm:$0xff] }
 0x13e   : > { %v4238_v12 = vadd.f32 %v4237_v33, %v4236_v38  ;;  %v4301_v11 = vpop.f32.mrb[27].mxu1  ;;  %v696_v60 = vadd.f32 %v4235_v35, %v6383_v29  ;;  %4825 = vmatprep.subr.bf16.mxu0 %v2452_v25  ;;  %4889 = vmatprep.subr.bf16.mxu1 %v2468_v3  ;;  %v857_v28 = vsel %vm823_vm0, %v818_v16, 0.0  ;;  %v4010_v3 = vld [vmem:[%s5507_s28 + $0xac8] sm:$0xff]  ;;  %v6413_v19 = vpop.permute.xlu1 %450  ;;  %v2461_v54 = vpack.c.bf16 %v4024_v9, %v4023_v4  ;;  %v3993_v35 = vld [vmem:[%s5507_s28 + $0xa40] sm:$0xff]  ;;  %v4044_v4 = vld [vmem:[%s5507_s28 + $0xbd8] sm:$0xff] }
 0x13f   : > { %v4302_v14 = vadd.f32 %v4301_v11, %v4300_v58  ;;  %2143 = vmatmul.mubr.bf16.gmra.mrb[132].mxu0 %v6127_v63  ;;  %v6410_v63 = vpop.permute.xlu0 %445  ;;  %v4041_v38 = vld [vmem:[%s5507_s28 + $0xbc0] sm:$0xff]  ;;  %v4042_v49 = vld [vmem:[%s5507_s28 + $0xbc8] sm:$0xff] }
 0x140   : > { %2240 = vmatmul.mubr.bf16.gmra.mrb[132].mxu1 %v6136_v18  ;;  %v793_v0 = vadd.f32 %v4299_v43, %v696_v60  ;;  %2150 = vmatprep.mubr.bf16.mxu0 %v6142_v20  ;;  %v699_v25 = vadd.f32 %v4238_v12, %v6387_v32  ;;  %v4025_v2 = vld [vmem:[%s5507_s28 + $0xb40] sm:$0xff]  ;;  %v4026_v43 = vld [vmem:[%s5507_s28 + $0xb48] sm:$0xff]  ;;  %v4011_v60 = vld [vmem:[%s5507_s28 + $0xad0] sm:$0xff] }
 0x141   : > { %858 = vadd.xlane.f32.xlu1 %v857_v28  ;;  %2247 = vmatprep.mubr.bf16.mxu1 %v6150_v24  ;;  %v2454_v24 = vpack.c.bf16 %v4010_v3, %v4009_v42  ;;  %v2462_v3 = vpack.c.bf16 %v4026_v43, %v4025_v2  ;;  %v3997_v2 = vld [vmem:[%s5507_s28 + $0xa60] sm:$0xff]  ;;  %v3998_v43 = vld [vmem:[%s5507_s28 + $0xa68] sm:$0xff] }
 0x142   : > { %v4239_v1 = vpop.f32.mrb[28].mxu0  ;;  %v819_v18 = vmax.f32 %v793_v0, 0.0  ;;  %4826 = vmatpush3.bf16.msra.mxu0 %v2444_v59  ;;  %v796_v20 = vadd.f32 %v4302_v14, %v699_v25  ;;  %4890 = vmatpush3.bf16.msra.mxu1 %v2460_v39  ;;  %v4012_v39 = vld [vmem:[%s5507_s28 + $0xad8] sm:$0xff]  ;;  %v2470_v25 = vpack.c.bf16 %v4042_v49, %v4041_v38 }
 0x143   : > { %v4303_v61 = vpop.f32.mrb[28].mxu1  ;;  %v4240_v16 = vpop.f32.mrb[29].mxu0  ;;  %4827 = vmatprep.subr.bf16.mxu0 %v2453_v46  ;;  %4891 = vmatprep.subr.bf16.mxu1 %v2469_v21  ;;  %v2446_v46 = vpack.c.bf16 %v3994_v36, %v3993_v35  ;;  %v4043_v21 = vld [vmem:[%s5507_s28 + $0xbd0] sm:$0xff]  ;;  %v4028_v38 = vld [vmem:[%s5507_s28 + $0xb58] sm:$0xff] }
 0x144   : > { %v4241_v58 = vadd.f32 %v4240_v16, %v4239_v1  ;;  %v4304_v33 = vpop.f32.mrb[29].mxu1  ;;  %v4242_v59 = vpop.f32.mrb[30].mxu0  ;;  %v860_v12 = vsel %vm823_vm0, %v819_v18, 0.0  ;;  %v820_v11 = vmax.f32 %v796_v20, 0.0  ;;  %v2455_v1 = vpack.c.bf16 %v4012_v39, %v4011_v60  ;;  %v3995_v18 = vld [vmem:[%s5507_s28 + $0xa50] sm:$0xff]  ;;  %v3996_v20 = vld [vmem:[%s5507_s28 + $0xa58] sm:$0xff] }
 0x145   : > { %v4305_v8 = vadd.f32 %v4304_v33, %v4303_v61  ;;  %v4306_v14 = vpop.f32.mrb[30].mxu1  ;;  %v4243_v53 = vpop.f32.mrb[31].mxu0  ;;  %861 = vadd.xlane.f32.xlu1 %v860_v12  ;;  %v4013_v61 = vld [vmem:[%s5507_s28 + $0xae0] sm:$0xff]  ;;  %v4014_v16 = vld [vmem:[%s5507_s28 + $0xae8] sm:$0xff] }
 0x146   : > { %v4244_v9 = vadd.f32 %v4243_v53, %v4242_v59  ;;  %v4307_v28 = vpop.f32.mrb[31].mxu1  ;;  %v704_v0 = vadd.f32 %v4241_v58, %v6410_v63  ;;  %4828 = vmatpush3.bf16.msra.mxu0 %v2445_v22  ;;  %4892 = vmatpush3.bf16.msra.mxu1 %v2461_v54  ;;  %v863_v35 = vsel %vm823_vm0, %v820_v11, 0.0  ;;  %v4027_v54 = vld [vmem:[%s5507_s28 + $0xb50] sm:$0xff]  ;;  %v4045_v58 = vld [vmem:[%s5507_s28 + $0xbe0] sm:$0xff]  ;;  %v4046_v12 = vld [vmem:[%s5507_s28 + $0xbe8] sm:$0xff] }
 0x147   : > { %v4308_v42 = vadd.f32 %v4307_v28, %v4306_v14  ;;  %2151 = vmatmul.mubr.bf16.gmra.mrb[136].mxu0 %v6169_v57  ;;  %4829 = vmatprep.subr.bf16.mxu0 %v2454_v24  ;;  %v2471_v57 = vpack.c.bf16 %v4044_v4, %v4043_v21  ;;  %v4029_v11 = vld [vmem:[%s5507_s28 + $0xb60] sm:$0xff]  ;;  %v4030_v60 = vld [vmem:[%s5507_s28 + $0xb68] sm:$0xff]  ;;  %v4015_v21 = vld [vmem:[%s5507_s28 + $0xaf0] sm:$0xff] }
 0x148   : > { %2248 = vmatmul.mubr.bf16.gmra.mrb[136].mxu1 %v6178_v7  ;;  %v801_v36 = vadd.f32 %v4305_v8, %v704_v0  ;;  %2158 = vmatprep.mubr.bf16.mxu0 %v6184_v13  ;;  %v707_v22 = vadd.f32 %v4244_v9, %v6413_v19  ;;  %v2447_v13 = vpack.c.bf16 %v3996_v20, %v3995_v18  ;;  %v4016_v4 = vld [vmem:[%s5507_s28 + $0xaf8] sm:$0xff] }
 0x149   : > { %864 = vadd.xlane.f32.xlu1 %v863_v35  ;;  %2255 = vmatprep.mubr.bf16.mxu1 %v6192_v31  ;;  %v2463_v31 = vpack.c.bf16 %v4028_v38, %v4027_v54  ;;  %v2448_v35 = vpack.c.bf16 %v3998_v43, %v3997_v2  ;;  %v2457_v54 = vpack.c.bf16 %v4016_v4, %v4015_v21  ;;  %v3999_v43 = vld [vmem:[%s5507_s28 + $0xa70] sm:$0xff] }
 0x14a   : > { %v4325_v7 = vpop.f32.mrb[32].mxu0  ;;  %v821_v24 = vmax.f32 %v801_v36, 0.0  ;;  %v804_v49 = vadd.f32 %v4308_v42, %v707_v22  ;;  %4830 = vmatpush3.bf16.msra.mxu0 %v2446_v46  ;;  %4893 = vmatprep.subr.bf16.mxu1 %v2470_v25  ;;  %v2456_v25 = vpack.c.bf16 %v4014_v16, %v4013_v61  ;;  %v4047_v42 = vld [vmem:[%s5507_s28 + $0xbf0] sm:$0xff]  ;;  %v2472_v36 = vpack.c.bf16 %v4046_v12, %v4045_v58 }
 0x14b   : > { %v4389_v33 = vpop.f32.mrb[32].mxu1  ;;  %v4326_v59 = vpop.f32.mrb[33].mxu0  ;;  %4894 = vmatpush3.bf16.msra.mxu1 %v2462_v3  ;;  %4831 = vmatprep.subr.bf16.mxu0 %v2455_v1  ;;  %v4048_v3 = vld [vmem:[%s5507_s28 + $0xbf8] sm:$0xff] }
 0x14c   : > { %v4327_v39 = vadd.f32 %v4326_v59, %v4325_v7  ;;  %v4390_v8 = vpop.f32.mrb[33].mxu1  ;;  %v4328_v14 = vpop.f32.mrb[34].mxu0  ;;  %v866_v53 = vsel %vm823_vm0, %v821_v24, 0.0  ;;  %v822_v46 = vmax.f32 %v804_v49, 0.0  ;;  %4895 = vmatprep.subr.bf16.mxu1 %v2471_v57  ;;  %v2464_v57 = vpack.c.bf16 %v4030_v60, %v4029_v11  ;;  %v4031_v24 = vld [vmem:[%s5507_s28 + $0xb70] sm:$0xff]  ;;  %v4032_v49 = vld [vmem:[%s5507_s28 + $0xb78] sm:$0xff] }
 0x14d   : > { %v4391_v9 = vadd.f32 %v4390_v8, %v4389_v33  ;;  %v4392_v28 = vpop.f32.mrb[34].mxu1  ;;  %v4329_v0 = vpop.f32.mrb[35].mxu0  ;;  %867 = vadd.xlane.f32.xlu1 %v866_v53  ;;  %v2473_v7 = vpack.c.bf16 %v4048_v3, %v4047_v42  ;;  %v2465_v33 = vpack.c.bf16 %v4032_v49, %v4031_v24  ;;  %v4097_v59 = vld [vmem:[%s5507_s28 + $0xd80] sm:$0xff] }
 0x14e   : > { %v1021_v1 = vadd.f32 %v4327_v39, %v6159_v5  ;;  %v4330_v18 = vadd.f32 %v4329_v0, %v4328_v14  ;;  %v4393_v20 = vpop.f32.mrb[35].mxu1  ;;  %4832 = vmatpush3.bf16.msra.mxu0 %v2447_v13  ;;  %v869_v16 = vsel %vm823_vm0, %v822_v46, 0.0  ;;  %v4065_v8 = vld [vmem:[%s5507_s28 + $0xc80] sm:$0xff]  ;;  %v4066_v14 = vld [vmem:[%s5507_s28 + $0xc88] sm:$0xff] }
 0x14f   : > { %v4394_v22 = vadd.f32 %v4393_v20, %v4392_v28  ;;  %2159 = vmatmul.mubr.bf16.gmra.mrb[140].mxu0 %v6214_v10  ;;  %4896 = vmatpush3.bf16.msra.mxu1 %v2463_v31  ;;  %v4098_v31 = vld [vmem:[%s5507_s28 + $0xd88] sm:$0xff]  ;;  %v2822_v3 = vpack.c.bf16 %v4066_v14, %v4065_v8 }
 0x150   : > { %v1118_v38 = vadd.f32 %v4391_v9, %v1021_v1  ;;  %v1024_v61 = vadd.f32 %v4330_v18, %v6198_v41  ;;  %2256 = vmatmul.mubr.bf16.gmra.mrb[140].mxu1 %v6223_v44  ;;  %2166 = vmatprep.mubr.bf16.mxu0 %v6229_v45  ;;  %v4000_v45 = vld [vmem:[%s5507_s28 + $0xa78] sm:$0xff] }
 0x151   : > { %870 = vadd.xlane.f32.xlu1 %v869_v16  ;;  %2263 = vmatprep.mubr.bf16.mxu1 %v6238_v62  ;;  %v2449_v0 = vpack.c.bf16 %v4000_v45, %v3999_v43 }
 0x152   : > { %v1121_v10 = vadd.f32 %v4394_v22, %v1024_v61  ;;  %v4331_v13 = vpop.f32.mrb[36].mxu0  ;;  %v1180_v2 = vmax.f32 %v1118_v38, 0.0  ;;  %4833 = vmatprep.subr.bf16.mxu0 %v2456_v25  ;;  %4897 = vmatprep.subr.bf16.mxu1 %v2472_v36  ;;  %v2838_v25 = vpack.c.bf16 %v4098_v31, %v4097_v59 }
 0x153   : > { %v4395_v44 = vpop.f32.mrb[36].mxu1  ;;  %v4332_v58 = vpop.f32.mrb[37].mxu0  ;;  %4834 = vmatpush3.bf16.msra.mxu0 %v2448_v35  ;;  %4898 = vmatpush3.bf16.msra.mxu1 %v2464_v57 }
 0x154   : > { %v4333_v12 = vadd.f32 %v4332_v58, %v4331_v13  ;;  %v4396_v11 = vpop.f32.mrb[37].mxu1  ;;  %v4334_v60 = vpop.f32.mrb[38].mxu0  ;;  %v1196_v62 = vsel %vm823_vm0, %v1180_v2, 0.0  ;;  %v1181_v39 = vmax.f32 %v1121_v10, 0.0  ;;  %4835 = vmatprep.subr.bf16.mxu0 %v2457_v54  ;;  %4899 = vmatprep.subr.bf16.mxu1 %v2473_v7 }
 0x155   : > { %v4397_v53 = vadd.f32 %v4396_v11, %v4395_v44  ;;  %v4398_v46 = vpop.f32.mrb[38].mxu1  ;;  %v4335_v21 = vpop.f32.mrb[39].mxu0  ;;  %1197 = vadd.xlane.f32.xlu1 %v1196_v62 }
 0x156   : > { %v1029_v4 = vadd.f32 %v4333_v12, %v6195_v15  ;;  %v4336_v9 = vadd.f32 %v4335_v21, %v4334_v60  ;;  %v4399_v28 = vpop.f32.mrb[39].mxu1  ;;  %v1199_v20 = vsel %vm823_vm0, %v1181_v39, 0.0 }
 0x157   : > { %v4400_v42 = vadd.f32 %v4399_v28, %v4398_v46  ;;  %2167 = vmatmul.mubr.bf16.gmra.mrb[144].mxu0 %v6248_v51  ;;  %4900 = vmatpush3.bf16.msra.mxu1 %v2465_v33  ;;  %v7369_v28 = vld [vmem:[#allocation6_spill] sm:$0xff] }
 0x158   : > { %v1126_v1 = vadd.f32 %v4397_v53, %v1029_v4  ;;  %v1032_v18 = vadd.f32 %v4336_v9, %v6241_v30  ;;  %2264 = vmatmul.mubr.bf16.gmra.mrb[144].mxu1 %v6254_v17  ;;  %2174 = vmatprep.mubr.bf16.mxu0 %v6261_v23  ;;  %v7368_v4 = vld [vmem:[#allocation5_spill] sm:$0xff] }
 0x159   : > { %1200 = vadd.xlane.f32.xlu1 %v1199_v20  ;;  %2271 = vmatprep.mubr.bf16.mxu1 %v6270_v6 }
 0x15a   : > { %v1129_v35 = vadd.f32 %v4400_v42, %v1032_v18  ;;  %v4337_v36 = vpop.f32.mrb[40].mxu0  ;;  %v1182_v22 = vmax.f32 %v1126_v1, 0.0  ;;  %4836 = vmatpush3.bf16.msra.mxu0 %v2449_v0  ;;  %5013 = vmatprep.subr.bf16.mxu1 %v2838_v25  ;;  %v7370_v0 = vld [vmem:[#allocation8_spill] sm:$0xff] }
 0x15b   : > { %v4401_v51 = vpop.f32.mrb[40].mxu1  ;;  %v4338_v57 = vpop.f32.mrb[41].mxu0  ;;  %4949 = vmatprep.subr.bf16.mxu0 %v2822_v3 }
 0x15c   : > { %v4339_v54 = vadd.f32 %v4338_v57, %v4337_v36  ;;  %v4402_v38 = vpop.f32.mrb[41].mxu1  ;;  %v4340_v61 = vpop.f32.mrb[42].mxu0  ;;  %v1202_v17 = vsel %vm823_vm0, %v1182_v22, 0.0  ;;  %v1183_v16 = vmax.f32 %v1129_v35, 0.0 }
 0x15d   : > { %v4403_v7 = vadd.f32 %v4402_v38, %v4401_v51  ;;  %v4404_v24 = vpop.f32.mrb[42].mxu1  ;;  %v4341_v23 = vpop.f32.mrb[43].mxu0  ;;  %1203 = vadd.xlane.f32.xlu0 %v1202_v17  ;;  %v7371_v38 = vld [vmem:[#allocation7_spill] sm:$0xff] }
 0x15e   : > { %v1037_v6 = vadd.f32 %v4339_v54, %v6265_v26  ;;  %v4342_v49 = vadd.f32 %v4341_v23, %v4340_v61  ;;  %v4405_v10 = vpop.f32.mrb[43].mxu1  ;;  %v1205_v13 = vsel %vm823_vm0, %v1183_v16, 0.0 }
 0x15f   : > { %v4406_v2 = vadd.f32 %v4405_v10, %v4404_v24  ;;  %2175 = vmatmul.mubr.bf16.gmra.mrb[148].mxu0 %v6280_v37  ;;  %1206 = vadd.xlane.f32.xlu1 %v1205_v13  ;;  %v7372_v24 = vld [vmem:[#allocation10_spill] sm:$0xff]  ;;  %v7374_v10 = vld [vmem:[#allocation11_spill] sm:$0xff] }
 0x160   : > { %v1134_v43 = vadd.f32 %v4403_v7, %v1037_v6  ;;  %v1040_v44 = vadd.f32 %v4342_v49, %v6273_v27  ;;  %2272 = vmatmul.mubr.bf16.gmra.mrb[148].mxu1 %v6286_v48  ;;  %2182 = vmatprep.mubr.bf16.mxu0 %v6293_v52  ;;  %v7373_v6 = vld [vmem:[#allocation9_spill] sm:$0xff] }
 0x161   : > { %2279 = vmatprep.mubr.bf16.mxu1 %v6302_v34 }
 0x162   : > { %v1137_v58 = vadd.f32 %v4406_v2, %v1040_v44  ;;  %v4343_v45 = vpop.f32.mrb[44].mxu0  ;;  %v1184_v33 = vmax.f32 %v1134_v43, 0.0  ;;  %v6498_v2 = vld [vmem:[%s7333_s1 + $0x4] ss:$16 sps:$4 sm:$0xff]   ;;  %v6504_v43 = vld [vmem:[%s7333_s1 + $0xc] ss:$16 sps:$4 sm:$0xff]  }
 0x163   : > { %v4407_v59 = vpop.f32.mrb[44].mxu1  ;;  %v4344_v31 = vpop.f32.mrb[45].mxu0  ;;  %v4049_v44 = vld [vmem:[%s5507_s28 + $0xc00] sm:$0xff] }
 0x164   : > { %v4345_v12 = vadd.f32 %v4344_v31, %v4343_v45  ;;  %v4408_v11 = vpop.f32.mrb[45].mxu1  ;;  %v4346_v60 = vpop.f32.mrb[46].mxu0  ;;  %v1208_v37 = vsel %vm823_vm0, %v1184_v33, 0.0  ;;  %v1185_v62 = vmax.f32 %v1137_v58, 0.0  ;;  %v4050_v58 = vld [vmem:[%s5507_s28 + $0xc08] sm:$0xff]  ;;  %v4081_v31 = vld [vmem:[%s5507_s28 + $0xd00] sm:$0xff] }
 0x165   : > { %v4409_v39 = vadd.f32 %v4408_v11, %v4407_v59  ;;  %v4410_v8 = vpop.f32.mrb[46].mxu1  ;;  %v4347_v14 = vpop.f32.mrb[47].mxu0  ;;  %1209 = vadd.xlane.f32.xlu1 %v1208_v37  ;;  %v4067_v37 = vld [vmem:[%s5507_s28 + $0xc90] sm:$0xff] }
 0x166   : > { %v1045_v48 = vadd.f32 %v4345_v12, %v6297_v47  ;;  %v4348_v52 = vadd.f32 %v4347_v14, %v4346_v60  ;;  %v4411_v53 = vpop.f32.mrb[47].mxu1  ;;  %v1211_v9 = vsel %vm823_vm0, %v1185_v62, 0.0  ;;  %v4082_v12 = vld [vmem:[%s5507_s28 + $0xd08] sm:$0xff]  ;;  %v4068_v62 = vld [vmem:[%s5507_s28 + $0xc98] sm:$0xff] }
 0x167   : > { %v4412_v34 = vadd.f32 %v4411_v53, %v4410_v8  ;;  %2183 = vmatmul.mubr.bf16.gmra.mrb[152].mxu0 %v6312_v40 }
 0x168   : > { %v1142_v46 = vadd.f32 %v4409_v39, %v1045_v48  ;;  %v1048_v21 = vadd.f32 %v4348_v52, %v6305_v50  ;;  %2280 = vmatmul.mubr.bf16.gmra.mrb[152].mxu1 %v7368_v4  ;;  %2190 = vmatprep.mubr.bf16.mxu0 %v7369_v28  ;;  %v2814_v52 = vpack.c.bf16 %v4050_v58, %v4049_v44  ;;  %v6542_v58 = vld [vmem:[%s7333_s1 + $0x24] ss:$16 sps:$4 sm:$0xff]  }
 0x169   : > { %1212 = vadd.xlane.f32.xlu1 %v1211_v9  ;;  %2287 = vmatprep.mubr.bf16.mxu1 %v7370_v0  ;;  %v2830_v28 = vpack.c.bf16 %v4082_v12, %v4081_v31  ;;  %v4051_v0 = vld [vmem:[%s5507_s28 + $0xc10] sm:$0xff]  ;;  %v4054_v31 = vld [vmem:[%s5507_s28 + $0xc28] sm:$0xff] }
 0x16a   : > { %v1145_v25 = vadd.f32 %v4412_v34, %v1048_v21  ;;  %v4349_v42 = vpop.f32.mrb[48].mxu0  ;;  %v1186_v3 = vmax.f32 %v1142_v46, 0.0  ;;  %v4099_v34 = vld [vmem:[%s5507_s28 + $0xd90] sm:$0xff]  ;;  %v4100_v46 = vld [vmem:[%s5507_s28 + $0xd98] sm:$0xff] }
 0x16b   : > { %v4413_v1 = vpop.f32.mrb[48].mxu1  ;;  %v4350_v18 = vpop.f32.mrb[49].mxu0 }
 0x16c   : > { %v4351_v20 = vadd.f32 %v4350_v18, %v4349_v42  ;;  %v4414_v35 = vpop.f32.mrb[49].mxu1  ;;  %v4352_v40 = vpop.f32.mrb[50].mxu0  ;;  %v1214_v36 = vsel %vm823_vm0, %v1186_v3, 0.0  ;;  %v1187_v22 = vmax.f32 %v1145_v25, 0.0  ;;  %v4052_v25 = vld [vmem:[%s5507_s28 + $0xc18] sm:$0xff]  ;;  %v4083_v18 = vld [vmem:[%s5507_s28 + $0xd10] sm:$0xff] }
 0x16d   : > { %v4415_v51 = vadd.f32 %v4414_v35, %v4413_v1  ;;  %v4416_v57 = vpop.f32.mrb[50].mxu1  ;;  %v4353_v54 = vpop.f32.mrb[51].mxu0  ;;  %1215 = vadd.xlane.f32.xlu1 %v1214_v36  ;;  %v4069_v35 = vld [vmem:[%s5507_s28 + $0xca0] sm:$0xff] }
 0x16e   : > { %v1053_v61 = vadd.f32 %v4351_v20, %v7371_v38  ;;  %v4354_v17 = vadd.f32 %v4353_v54, %v4352_v40  ;;  %v4417_v16 = vpop.f32.mrb[51].mxu1  ;;  %v1217_v13 = vsel %vm823_vm0, %v1187_v22, 0.0  ;;  %v4084_v20 = vld [vmem:[%s5507_s28 + $0xd18] sm:$0xff]  ;;  %v6525_v36 = vld [vmem:[%s7333_s1] ss:$16 sps:$4 sm:$0xff]   ;;  %v2823_v22 = vpack.c.bf16 %v4068_v62, %v4067_v37  ;;  %v4086_v62 = vld [vmem:[%s5507_s28 + $0xd28] sm:$0xff] }
 0x16f   : > { %v4418_v7 = vadd.f32 %v4417_v16, %v4416_v57  ;;  %2191 = vmatmul.mubr.bf16.gmra.mrb[156].mxu0 %v7372_v24  ;;  %v4070_v57 = vld [vmem:[%s5507_s28 + $0xca8] sm:$0xff]  ;;  %v4101_v54 = vld [vmem:[%s5507_s28 + $0xda0] sm:$0xff] }
 0x170   : > { %v1150_v23 = vadd.f32 %v4415_v51, %v1053_v61  ;;  %v1056_v49 = vadd.f32 %v4354_v17, %v7373_v6  ;;  %2288 = vmatmul.mubr.bf16.gmra.mrb[156].mxu1 %v7374_v10  ;;  %2506 = vmatprep.mubr.bf16.mxu0 %v6498_v2  ;;  %v2839_v51 = vpack.c.bf16 %v4100_v46, %v4099_v34  ;;  %v4102_v61 = vld [vmem:[%s5507_s28 + $0xda8] sm:$0xff]  ;;  %v4103_v46 = vld [vmem:[%s5507_s28 + $0xdb0] sm:$0xff] }
 0x171   : > { %1218 = vadd.xlane.f32.xlu1 %v1217_v13  ;;  %2603 = vmatprep.mubr.bf16.mxu1 %v6504_v43  ;;  %v2840_v12 = vpack.c.bf16 %v4102_v61, %v4101_v54  ;;  %v4088_v54 = vld [vmem:[%s5507_s28 + $0xd38] sm:$0xff] }
 0x172   : > { %v1153_v45 = vadd.f32 %v4418_v7, %v1056_v49  ;;  %v4355_v33 = vpop.f32.mrb[52].mxu0  ;;  %v1188_v59 = vmax.f32 %v1150_v23, 0.0  ;;  %v6535_v7 = vld [vmem:[%s7333_s1 + $0x8] ss:$16 sps:$4 sm:$0xff]   ;;  %v2815_v23 = vpack.c.bf16 %v4052_v25, %v4051_v0  ;;  %v2831_v49 = vpack.c.bf16 %v4084_v20, %v4083_v18  ;;  %v4055_v18 = vld [vmem:[%s5507_s28 + $0xc30] sm:$0xff] }
 0x173   : > { %v4419_v11 = vpop.f32.mrb[52].mxu1  ;;  %v4356_v60 = vpop.f32.mrb[53].mxu0 }
 0x174   : > { %v4357_v39 = vadd.f32 %v4356_v60, %v4355_v33  ;;  %v4420_v8 = vpop.f32.mrb[53].mxu1  ;;  %v4358_v14 = vpop.f32.mrb[54].mxu0  ;;  %v1220_v48 = vsel %vm823_vm0, %v1188_v59, 0.0  ;;  %v1189_v53 = vmax.f32 %v1153_v45, 0.0  ;;  %v6548_v45 = vld [vmem:[%s7333_s1 + $0x2c] ss:$16 sps:$4 sm:$0xff]   ;;  %v2824_v33 = vpack.c.bf16 %v4070_v57, %v4069_v35 }
 0x175   : > { %v4421_v21 = vadd.f32 %v4420_v8, %v4419_v11  ;;  %v4422_v4 = vpop.f32.mrb[54].mxu1  ;;  %v4359_v9 = vpop.f32.mrb[55].mxu0  ;;  %1221 = vadd.xlane.f32.xlu1 %v1220_v48  ;;  %v4053_v59 = vld [vmem:[%s5507_s28 + $0xc20] sm:$0xff]  ;;  %v4072_v8 = vld [vmem:[%s5507_s28 + $0xcb8] sm:$0xff]  ;;  %v4087_v57 = vld [vmem:[%s5507_s28 + $0xd30] sm:$0xff] }
 0x176   : > { %v1061_v42 = vadd.f32 %v4357_v39, %v6356_v56  ;;  %v4360_v3 = vadd.f32 %v4359_v9, %v4358_v14  ;;  %v4423_v1 = vpop.f32.mrb[55].mxu1  ;;  %v1223_v24 = vsel %vm823_vm0, %v1189_v53, 0.0  ;;  %v4085_v11 = vld [vmem:[%s5507_s28 + $0xd20] sm:$0xff]  ;;  %v4071_v39 = vld [vmem:[%s5507_s28 + $0xcb0] sm:$0xff]  ;;  %v2816_v0 = vpack.c.bf16 %v4054_v31, %v4053_v59 }
 0x177   : > { %v4424_v40 = vadd.f32 %v4423_v1, %v4422_v4  ;;  %2507 = vmatmul.mubr.bf16.vlgmr.msra.gmra.mrb[160].mxu0 %v6525_v36  ;;  %v2832_v1 = vpack.c.bf16 %v4086_v62, %v4085_v11  ;;  %v6565_v35 = vld [vmem:[%s7333_s1 + $0x20] ss:$16 sps:$4 sm:$0xff]  }
 0x178   : > { %v1158_v17 = vadd.f32 %v4421_v21, %v1061_v42  ;;  %v1064_v16 = vadd.f32 %v4360_v3, %v6361_v55  ;;  %2604 = vmatmul.mubr.bf16.vlgmr.msra.gmra.mrb[160].mxu1 %v6535_v7  ;;  %4950 = vmatpush3.bf16.msra.mxu0 %v2814_v52  ;;  %v4104_v21 = vld [vmem:[%s5507_s28 + $0xdb8] sm:$0xff]  ;;  %v4057_v11 = vld [vmem:[%s5507_s28 + $0xc40] sm:$0xff] }
 0x179   : > { %1224 = vadd.xlane.f32.xlu1 %v1223_v24  ;;  %5014 = vmatpush3.bf16.msra.mxu1 %v2830_v28 }
 0x17a   : > { %v1161_v10 = vadd.f32 %v4424_v40, %v1064_v16  ;;  %v4361_v13 = vpop.f32.mrb[56].mxu0  ;;  %v1190_v44 = vmax.f32 %v1158_v17, 0.0  ;;  %2514 = vmatprep.mubr.bf16.mxu0 %v6542_v58  ;;  %2611 = vmatprep.mubr.bf16.mxu1 %v6548_v45  ;;  %v2825_v40 = vpack.c.bf16 %v4072_v8, %v4071_v39  ;;  %v6575_v16 = vld [vmem:[%s7333_s1 + $0x28] ss:$16 sps:$4 sm:$0xff]  }
 0x17b   : > { %v4425_v60 = vpop.f32.mrb[56].mxu1  ;;  %v4362_v37 = vpop.f32.mrb[57].mxu0  ;;  %4951 = vmatprep.subr.bf16.mxu0 %v2823_v22  ;;  %5015 = vmatprep.subr.bf16.mxu1 %v2839_v51  ;;  %v4056_v22 = vld [vmem:[%s5507_s28 + $0xc38] sm:$0xff]  ;;  %v2841_v51 = vpack.c.bf16 %v4104_v21, %v4103_v46 }
 0x17c   : > { %v4363_v14 = vadd.f32 %v4362_v37, %v4361_v13  ;;  %v4426_v48 = vpop.f32.mrb[57].mxu1  ;;  %v4364_v52 = vpop.f32.mrb[58].mxu0  ;;  %v1226_v53 = vsel %vm823_vm0, %v1190_v44, 0.0  ;;  %4952 = vmatpush3.bf16.msra.mxu0 %v2815_v23  ;;  %v1191_v34 = vmax.f32 %v1161_v10, 0.0  ;;  %v6582_v23 = vld [vmem:[%s7333_s1 + $0x44] ss:$16 sps:$4 sm:$0xff]   ;;  %v2817_v31 = vpack.c.bf16 %v4056_v22, %v4055_v18 }
 0x17d   : > { %v4427_v4 = vadd.f32 %v4426_v48, %v4425_v60  ;;  %v4428_v9 = vpop.f32.mrb[58].mxu1  ;;  %v4365_v28 = vpop.f32.mrb[59].mxu0  ;;  %1227 = vadd.xlane.f32.xlu1 %v1226_v53  ;;  %5016 = vmatpush3.bf16.msra.mxu1 %v2831_v49  ;;  %v4073_v49 = vld [vmem:[%s5507_s28 + $0xcc0] sm:$0xff]  ;;  %v4074_v10 = vld [vmem:[%s5507_s28 + $0xcc8] sm:$0xff]  ;;  %v4108_v18 = vld [vmem:[%s5507_s28 + $0xdd8] sm:$0xff] }
 0x17e   : > { %v1069_v25 = vadd.f32 %v4363_v14, %v6383_v29  ;;  %v4366_v42 = vadd.f32 %v4365_v28, %v4364_v52  ;;  %v4429_v3 = vpop.f32.mrb[59].mxu1  ;;  %4953 = vmatprep.subr.bf16.mxu0 %v2824_v33  ;;  %5017 = vmatprep.subr.bf16.mxu1 %v2840_v12  ;;  %v1229_v24 = vsel %vm823_vm0, %v1191_v34, 0.0  ;;  %v6590_v13 = vld [vmem:[%s7333_s1 + $0x4c] ss:$16 sps:$4 sm:$0xff]   ;;  %v2833_v12 = vpack.c.bf16 %v4088_v54, %v4087_v57  ;;  %v4105_v37 = vld [vmem:[%s5507_s28 + $0xdc0] sm:$0xff] }
 0x17f   : > { %v4430_v20 = vadd.f32 %v4429_v3, %v4428_v9  ;;  %2515 = vmatmul.mubr.bf16.gmra.mrb[164].mxu0 %v6565_v35  ;;  %v4058_v60 = vld [vmem:[%s5507_s28 + $0xc48] sm:$0xff]  ;;  %v2826_v8 = vpack.c.bf16 %v4074_v10, %v4073_v49  ;;  %v4089_v48 = vld [vmem:[%s5507_s28 + $0xd40] sm:$0xff]  ;;  %v4075_v9 = vld [vmem:[%s5507_s28 + $0xcd0] sm:$0xff] }
 0x180   : > { %v1166_v61 = vadd.f32 %v4427_v4, %v1069_v25  ;;  %v1072_v17 = vadd.f32 %v4366_v42, %v6387_v32  ;;  %2612 = vmatmul.mubr.bf16.gmra.mrb[164].mxu1 %v6575_v16  ;;  %2522 = vmatprep.mubr.bf16.mxu0 %v6582_v23  ;;  %v4106_v14 = vld [vmem:[%s5507_s28 + $0xdc8] sm:$0xff]  ;;  %v4076_v28 = vld [vmem:[%s5507_s28 + $0xcd8] sm:$0xff]  ;;  %v2818_v3 = vpack.c.bf16 %v4058_v60, %v4057_v11  ;;  %v6608_v54 = vld [vmem:[%s7333_s1 + $0x40] ss:$16 sps:$4 sm:$0xff]  }
 0x181   : > { %1230 = vadd.xlane.f32.xlu1 %v1229_v24  ;;  %2619 = vmatprep.mubr.bf16.mxu1 %v6590_v13  ;;  %v4090_v52 = vld [vmem:[%s5507_s28 + $0xd48] sm:$0xff]  ;;  %v4059_v24 = vld [vmem:[%s5507_s28 + $0xc50] sm:$0xff]  ;;  %v4060_v49 = vld [vmem:[%s5507_s28 + $0xc58] sm:$0xff] }
 0x182   : > { %v1169_v44 = vadd.f32 %v4430_v20, %v1072_v17  ;;  %v4367_v33 = vpop.f32.mrb[60].mxu0  ;;  %v1192_v59 = vmax.f32 %v1166_v61, 0.0  ;;  %4954 = vmatpush3.bf16.msra.mxu0 %v2816_v0  ;;  %5018 = vmatpush3.bf16.msra.mxu1 %v2832_v1  ;;  %v4107_v1 = vld [vmem:[%s5507_s28 + $0xdd0] sm:$0xff]  ;;  %v2834_v61 = vpack.c.bf16 %v4090_v52, %v4089_v48  ;;  %v2827_v17 = vpack.c.bf16 %v4076_v28, %v4075_v9  ;;  %v4092_v60 = vld [vmem:[%s5507_s28 + $0xd58] sm:$0xff]  ;;  %v4110_v28 = vld [vmem:[%s5507_s28 + $0xde8] sm:$0xff] }
 0x183   : > { %v4431_v62 = vpop.f32.mrb[60].mxu1  ;;  %v4368_v39 = vpop.f32.mrb[61].mxu0  ;;  %4955 = vmatprep.subr.bf16.mxu0 %v2825_v40  ;;  %5019 = vmatprep.subr.bf16.mxu1 %v2841_v51  ;;  %v2842_v51 = vpack.c.bf16 %v4106_v14, %v4105_v37  ;;  %v4091_v11 = vld [vmem:[%s5507_s28 + $0xd50] sm:$0xff]  ;;  %v6632_v37 = vld [vmem:[%s7333_s1 + $0x6c] ss:$16 sps:$4 sm:$0xff]   ;;  %v2819_v52 = vpack.c.bf16 %v4060_v49, %v4059_v24 }
 0x184   : > { %v4369_v53 = vadd.f32 %v4368_v39, %v4367_v33  ;;  %v4432_v34 = vpop.f32.mrb[61].mxu1  ;;  %v4370_v46 = vpop.f32.mrb[62].mxu0  ;;  %v1232_v21 = vsel %vm823_vm0, %v1192_v59, 0.0  ;;  %v1193_v4 = vmax.f32 %v1169_v44, 0.0  ;;  %v6617_v33 = vld [vmem:[%s7333_s1 + $0x48] ss:$16 sps:$4 sm:$0xff]   ;;  %v2835_v9 = vpack.c.bf16 %v4092_v60, %v4091_v11 }
 0x185   : > { %v4433_v0 = vadd.f32 %v4432_v34, %v4431_v62  ;;  %v4434_v25 = vpop.f32.mrb[62].mxu1  ;;  %v4371_v42 = vpop.f32.mrb[63].mxu0  ;;  %1233 = vadd.xlane.f32.xlu1 %v1232_v21  ;;  %v4077_v62 = vld [vmem:[%s5507_s28 + $0xce0] sm:$0xff]  ;;  %v4078_v39 = vld [vmem:[%s5507_s28 + $0xce8] sm:$0xff]  ;;  %v4112_v49 = vld [vmem:[%s5507_s28 + $0xdf8] sm:$0xff] }
 0x186   : > { %v1077_v20 = vadd.f32 %v4369_v53, %v6410_v63  ;;  %v4372_v40 = vadd.f32 %v4371_v42, %v4370_v46  ;;  %v4435_v22 = vpop.f32.mrb[63].mxu1  ;;  %4956 = vmatpush3.bf16.msra.mxu0 %v2817_v31  ;;  %5020 = vmatpush3.bf16.msra.mxu1 %v2833_v12  ;;  %v1235_v59 = vsel %vm823_vm0, %v1193_v4, 0.0  ;;  %v6624_v31 = vld [vmem:[%s7333_s1 + $0x64] ss:$16 sps:$4 sm:$0xff]   ;;  %v2843_v12 = vpack.c.bf16 %v4108_v18, %v4107_v1  ;;  %v4062_v34 = vld [vmem:[%s5507_s28 + $0xc68] sm:$0xff] }
 0x187   : > { %v4436_v57 = vadd.f32 %v4435_v22, %v4434_v25  ;;  %2523 = vmatmul.mubr.bf16.gmra.mrb[168].mxu0 %v6608_v54  ;;  %4957 = vmatprep.subr.bf16.mxu0 %v2826_v8  ;;  %v4061_v53 = vld [vmem:[%s5507_s28 + $0xc60] sm:$0xff]  ;;  %v4094_v25 = vld [vmem:[%s5507_s28 + $0xd68] sm:$0xff]  ;;  %v4080_v22 = vld [vmem:[%s5507_s28 + $0xcf8] sm:$0xff] }
 0x188   : > { %v1174_v10 = vadd.f32 %v4433_v0, %v1077_v20  ;;  %v1080_v44 = vadd.f32 %v4372_v40, %v6413_v19  ;;  %2620 = vmatmul.mubr.bf16.gmra.mrb[168].mxu1 %v6617_v33  ;;  %2530 = vmatprep.mubr.bf16.mxu0 %v6624_v31  ;;  %v4109_v46 = vld [vmem:[%s5507_s28 + $0xde0] sm:$0xff]  ;;  %v4079_v40 = vld [vmem:[%s5507_s28 + $0xcf0] sm:$0xff]  ;;  %v2820_v11 = vpack.c.bf16 %v4062_v34, %v4061_v53 }
 0x189   : > { %1236 = vadd.xlane.f32.xlu1 %v1235_v59  ;;  %2627 = vmatprep.mubr.bf16.mxu1 %v6632_v37  ;;  %v4093_v0 = vld [vmem:[%s5507_s28 + $0xd60] sm:$0xff]  ;;  %v2844_v60 = vpack.c.bf16 %v4110_v28, %v4109_v46 }
 0x18a   : > { %v1177_v8 = vadd.f32 %v4436_v57, %v1080_v44  ;;  %v4453_v14 = vpop.f32.mrb[64].mxu0  ;;  %v1194_v48 = vmax.f32 %v1174_v10, 0.0  ;;  %4958 = vmatpush3.bf16.msra.mxu0 %v2818_v3  ;;  %5021 = vmatprep.subr.bf16.mxu1 %v2842_v51  ;;  %v6666_v34 = vld [vmem:[%s7333_s1 + $0x84] ss:$16 sps:$4 sm:$0xff]  }
 0x18b   : > { %v4517_v21 = vpop.f32.mrb[64].mxu1  ;;  %v4454_v4 = vpop.f32.mrb[65].mxu0  ;;  %5022 = vmatpush3.bf16.msra.mxu1 %v2834_v61  ;;  %4959 = vmatprep.subr.bf16.mxu0 %v2827_v17  ;;  %v2828_v61 = vpack.c.bf16 %v4078_v39, %v4077_v62  ;;  %v4111_v17 = vld [vmem:[%s5507_s28 + $0xdf0] sm:$0xff]  ;;  %v2836_v62 = vpack.c.bf16 %v4094_v25, %v4093_v0  ;;  %v2829_v39 = vpack.c.bf16 %v4080_v22, %v4079_v40  ;;  %v4161_v40 = vld [vmem:[%s5507_s28 + $0xf80] sm:$0xff]  ;;  %v4162_v22 = vld [vmem:[%s5507_s28 + $0xf88] sm:$0xff] }
 0x18c   : > { %v4455_v42 = vadd.f32 %v4454_v4, %v4453_v14  ;;  %v4518_v1 = vpop.f32.mrb[65].mxu1  ;;  %v4456_v3 = vpop.f32.mrb[66].mxu0  ;;  %v1238_v18 = vsel %vm823_vm0, %v1194_v48, 0.0  ;;  %v1195_v20 = vmax.f32 %v1177_v8, 0.0  ;;  %5023 = vmatprep.subr.bf16.mxu1 %v2843_v12  ;;  %v6652_v12 = vld [vmem:[%s7333_s1 + $0x60] ss:$16 sps:$4 sm:$0xff]   ;;  %v2845_v46 = vpack.c.bf16 %v4112_v49, %v4111_v17 }
 0x18d   : > { %v4519_v51 = vadd.f32 %v4518_v1, %v4517_v21  ;;  %v4520_v57 = vpop.f32.mrb[66].mxu1  ;;  %v4457_v24 = vpop.f32.mrb[67].mxu0  ;;  %1239 = vadd.xlane.f32.xlu1 %v1238_v18  ;;  %v4095_v21 = vld [vmem:[%s5507_s28 + $0xd70] sm:$0xff]  ;;  %v4096_v4 = vld [vmem:[%s5507_s28 + $0xd78] sm:$0xff] }
 0x18e   : > { %v1393_v10 = vadd.f32 %v4455_v42, %v6159_v5  ;;  %v4458_v44 = vadd.f32 %v4457_v24, %v4456_v3  ;;  %v4521_v59 = vpop.f32.mrb[67].mxu1  ;;  %4960 = vmatpush3.bf16.msra.mxu0 %v2819_v52  ;;  %v6659_v52 = vld [vmem:[%s7333_s1 + $0x68] ss:$16 sps:$4 sm:$0xff]   ;;  %v1241_v53 = vsel %vm823_vm0, %v1195_v20, 0.0  ;;  %v4063_v42 = vld [vmem:[%s5507_s28 + $0xc70] sm:$0xff]  ;;  %v2837_v20 = vpack.c.bf16 %v4096_v4, %v4095_v21 }
 0x18f   : > { %v4522_v8 = vadd.f32 %v4521_v59, %v4520_v57  ;;  %2531 = vmatmul.mubr.bf16.gmra.mrb[172].mxu0 %v6652_v12  ;;  %5024 = vmatpush3.bf16.msra.mxu1 %v2835_v9  ;;  %v6674_v9 = vld [vmem:[%s7333_s1 + $0x8c] ss:$16 sps:$4 sm:$0xff]   ;;  %v6688_v21 = vld [vmem:[%s7333_s1 + $0x80] ss:$16 sps:$4 sm:$0xff]  }
 0x190   : > { %v1490_v14 = vadd.f32 %v4519_v51, %v1393_v10  ;;  %v1396_v48 = vadd.f32 %v4458_v44, %v6198_v41  ;;  %2628 = vmatmul.mubr.bf16.gmra.mrb[172].mxu1 %v6659_v52  ;;  %2538 = vmatprep.mubr.bf16.mxu0 %v6666_v34  ;;  %v4064_v18 = vld [vmem:[%s5507_s28 + $0xc78] sm:$0xff]  ;;  %v4130_v10 = vld [vmem:[%s5507_s28 + $0xe88] sm:$0xff] }
 0x191   : > { %1242 = vadd.xlane.f32.xlu1 %v1241_v53  ;;  %2635 = vmatprep.mubr.bf16.mxu1 %v6674_v9 }
 0x192   : > { %v1493_v28 = vadd.f32 %v4522_v8, %v1396_v48  ;;  %v4459_v0 = vpop.f32.mrb[68].mxu0  ;;  %v1552_v25 = vmax.f32 %v1490_v14, 0.0  ;;  %4961 = vmatprep.subr.bf16.mxu0 %v2828_v61  ;;  %5025 = vmatprep.subr.bf16.mxu1 %v2844_v60  ;;  %v4129_v61 = vld [vmem:[%s5507_s28 + $0xe80] sm:$0xff]  ;;  %v2821_v14 = vpack.c.bf16 %v4064_v18, %v4063_v42  ;;  %v3210_v48 = vpack.c.bf16 %v4162_v22, %v4161_v40  ;;  %v6708_v42 = vld [vmem:[%s7333_s1 + $0xac] ss:$16 sps:$4 sm:$0xff]  }
 0x193   : > { %v4523_v1 = vpop.f32.mrb[68].mxu1  ;;  %v4460_v3 = vpop.f32.mrb[69].mxu0  ;;  %4962 = vmatpush3.bf16.msra.mxu0 %v2820_v11  ;;  %5026 = vmatpush3.bf16.msra.mxu1 %v2836_v62 }
 0x194   : > { %v4461_v51 = vadd.f32 %v4460_v3, %v4459_v0  ;;  %v4524_v57 = vpop.f32.mrb[69].mxu1  ;;  %v4462_v24 = vpop.f32.mrb[70].mxu0  ;;  %v1568_v17 = vsel %vm823_vm0, %v1552_v25, 0.0  ;;  %v1553_v49 = vmax.f32 %v1493_v28, 0.0  ;;  %4963 = vmatprep.subr.bf16.mxu0 %v2829_v39  ;;  %5027 = vmatprep.subr.bf16.mxu1 %v2845_v46  ;;  %v3194_v39 = vpack.c.bf16 %v4130_v10, %v4129_v61  ;;  %v6695_v28 = vld [vmem:[%s7333_s1 + $0x88] ss:$16 sps:$4 sm:$0xff]  }
 0x195   : > { %v4525_v44 = vadd.f32 %v4524_v57, %v4523_v1  ;;  %v4526_v59 = vpop.f32.mrb[70].mxu1  ;;  %v4463_v60 = vpop.f32.mrb[71].mxu0  ;;  %1569 = vadd.xlane.f32.xlu0 %v1568_v17  ;;  %v6702_v25 = vld [vmem:[%s7333_s1 + $0xa4] ss:$16 sps:$4 sm:$0xff]  }
 0x196   : > { %v1401_v11 = vadd.f32 %v4461_v51, %v6195_v15  ;;  %v4464_v8 = vadd.f32 %v4463_v60, %v4462_v24  ;;  %v4527_v62 = vpop.f32.mrb[71].mxu1  ;;  %v1571_v0 = vsel %vm823_vm0, %v1553_v49, 0.0 }
 0x197   : > { %v4528_v53 = vadd.f32 %v4527_v62, %v4526_v59  ;;  %2539 = vmatmul.mubr.bf16.gmra.mrb[176].mxu0 %v6688_v21  ;;  %5028 = vmatpush3.bf16.msra.mxu1 %v2837_v20 }
 0x198   : > { %v1498_v46 = vadd.f32 %v4525_v44, %v1401_v11  ;;  %v1404_v4 = vadd.f32 %v4464_v8, %v6241_v30  ;;  %2636 = vmatmul.mubr.bf16.gmra.mrb[176].mxu1 %v6695_v28  ;;  %2546 = vmatprep.mubr.bf16.mxu0 %v6702_v25  ;;  %v6716_v8 = vld [vmem:[%s7333_s1 + $0xa0] ss:$16 sps:$4 sm:$0xff]  }
 0x199   : > { %1572 = vadd.xlane.f32.xlu0 %v1571_v0  ;;  %2643 = vmatprep.mubr.bf16.mxu1 %v6708_v42 }
 0x19a   : > { %v1501_v1 = vadd.f32 %v4528_v53, %v1404_v4  ;;  %v4465_v3 = vpop.f32.mrb[72].mxu0  ;;  %v1554_v18 = vmax.f32 %v1498_v46, 0.0  ;;  %4964 = vmatpush3.bf16.msra.mxu0 %v2821_v14  ;;  %5141 = vmatprep.subr.bf16.mxu1 %v3210_v48  ;;  %v6723_v48 = vld [vmem:[%s7333_s1 + $0xa8] ss:$16 sps:$4 sm:$0xff]   ;;  %v6736_v46 = vld [vmem:[%s7333_s1 + $0xcc] ss:$16 sps:$4 sm:$0xff]  }
 0x19b   : > { %v4529_v20 = vpop.f32.mrb[72].mxu1  ;;  %v4466_v40 = vpop.f32.mrb[73].mxu0  ;;  %5077 = vmatprep.subr.bf16.mxu0 %v3194_v39  ;;  %v6730_v39 = vld [vmem:[%s7333_s1 + $0xc4] ss:$16 sps:$4 sm:$0xff]  }
 0x19c   : > { %v4467_v22 = vadd.f32 %v4466_v40, %v4465_v3  ;;  %v4530_v51 = vpop.f32.mrb[73].mxu1  ;;  %v4468_v57 = vpop.f32.mrb[74].mxu0  ;;  %v1574_v24 = vsel %vm823_vm0, %v1554_v18, 0.0  ;;  %v1555_v17 = vmax.f32 %v1501_v1, 0.0 }
 0x19d   : > { %v4531_v49 = vadd.f32 %v4530_v51, %v4529_v20  ;;  %v4532_v61 = vpop.f32.mrb[74].mxu1  ;;  %v4469_v10 = vpop.f32.mrb[75].mxu0  ;;  %1575 = vadd.xlane.f32.xlu0 %v1574_v24 }
 0x19e   : > { %v1409_v44 = vadd.f32 %v4467_v22, %v6265_v26  ;;  %v4470_v59 = vadd.f32 %v4469_v10, %v4468_v57  ;;  %v4533_v60 = vpop.f32.mrb[75].mxu1  ;;  %v1577_v53 = vsel %vm823_vm0, %v1555_v17, 0.0 }
 0x19f   : > { %v4534_v11 = vadd.f32 %v4533_v60, %v4532_v61  ;;  %2547 = vmatmul.mubr.bf16.gmra.mrb[180].mxu0 %v6716_v8 }
 0x1a0   : > { %v1506_v62 = vadd.f32 %v4531_v49, %v1409_v44  ;;  %v1412_v14 = vadd.f32 %v4470_v59, %v6273_v27  ;;  %2644 = vmatmul.mubr.bf16.gmra.mrb[180].mxu1 %v6723_v48  ;;  %2554 = vmatprep.mubr.bf16.mxu0 %v6730_v39 }
 0x1a1   : > { %1578 = vadd.xlane.f32.xlu0 %v1577_v53  ;;  %2651 = vmatprep.mubr.bf16.mxu1 %v6736_v46 }
 0x1a2   : > { %v1509_v4 = vadd.f32 %v4534_v11, %v1412_v14  ;;  %v4471_v0 = vpop.f32.mrb[76].mxu0  ;;  %v826_v1 = vpop.xlane.xlu0 %825  ;;  %v1556_v3 = vmax.f32 %v1506_v62, 0.0  ;;  %v6746_v62 = vld [vmem:[%s7333_s1 + $0xc0] ss:$16 sps:$4 sm:$0xff]  }
 0x1a3   : > { %v4535_v18 = vpop.f32.mrb[76].mxu1  ;;  %873 = vst.msk [vmem:[#allocation2] sm:$0xff] %vm872_vm1, %v826_v1  ;;  %v4472_v20 = vpop.f32.mrb[77].mxu0  ;;  %7375 = vst [vmem:[#allocation5_spill] sm:$0xff] %v6746_v62  ;;  %v6760_v1 = vld [vmem:[%s7333_s1 + $0xe4] ss:$16 sps:$4 sm:$0xff]  }
 0x1a4   : > { %v4473_v40 = vadd.f32 %v4472_v20, %v4471_v0  ;;  %v4536_v22 = vpop.f32.mrb[77].mxu1  ;;  %v4474_v51 = vpop.f32.mrb[78].mxu0  ;;  %v1580_v57 = vsel %vm823_vm0, %v1556_v3, 0.0  ;;  %v1557_v24 = vmax.f32 %v1509_v4, 0.0  ;;  %v6753_v4 = vld [vmem:[%s7333_s1 + $0xc8] ss:$16 sps:$4 sm:$0xff]  }
 0x1a5   : > { %v4537_v17 = vadd.f32 %v4536_v22, %v4535_v18  ;;  %v4538_v49 = vpop.f32.mrb[78].mxu1  ;;  %v4475_v61 = vpop.f32.mrb[79].mxu0  ;;  %1581 = vadd.xlane.f32.xlu0 %v1580_v57  ;;  %7376 = vst [vmem:[#allocation6_spill] sm:$0xff] %v6753_v4  ;;  %7377 = vst [vmem:[#allocation8_spill] sm:$0xff] %v6760_v1  ;;  %v6766_v3 = vld [vmem:[%s7333_s1 + $0xec] ss:$16 sps:$4 sm:$0xff]  }
 0x1a6   : > { %v1417_v10 = vadd.f32 %v4473_v40, %v6297_v47  ;;  %v4476_v44 = vadd.f32 %v4475_v61, %v4474_v51  ;;  %v4539_v59 = vpop.f32.mrb[79].mxu1  ;;  %v829_v60 = vpop.xlane.xlu0 %828  ;;  %v1583_v0 = vsel %vm823_vm0, %v1557_v24, 0.0  ;;  %7378 = vst [vmem:[#allocation10_spill] sm:$0xff] %v6766_v3 }
 0x1a7   : > { %v4540_v11 = vadd.f32 %v4539_v59, %v4538_v49  ;;  %874 = vst.msk [vmem:[#allocation2 + $0x8] sm:$0xff] %vm872_vm1, %v829_v60  ;;  %2555 = vmatmul.mubr.bf16.gmra.mrb[184].mxu0 %v6746_v62 }
 0x1a8   : > { %v1514_v14 = vadd.f32 %v4537_v17, %v1417_v10  ;;  %v1420_v53 = vadd.f32 %v4476_v44, %v6305_v50  ;;  %2652 = vmatmul.mubr.bf16.gmra.mrb[184].mxu1 %v6753_v4  ;;  %2562 = vmatprep.mubr.bf16.mxu0 %v6760_v1  ;;  %v4115_v1 = vld [vmem:[%s5507_s28 + $0xe10] sm:$0xff]  ;;  %v4133_v50 = vld [vmem:[%s5507_s28 + $0xea0] sm:$0xff] }
 0x1a9   : > { %1584 = vadd.xlane.f32.xlu0 %v1583_v0  ;;  %2659 = vmatprep.mubr.bf16.mxu1 %v6766_v3 }
 0x1aa   : > { %v1517_v18 = vadd.f32 %v4540_v11, %v1420_v53  ;;  %v4477_v20 = vpop.f32.mrb[80].mxu0  ;;  %v832_v40 = vpop.xlane.xlu1 %831  ;;  %v1558_v22 = vmax.f32 %v1514_v14, 0.0 }
 0x1ab   : > { %v4541_v51 = vpop.f32.mrb[80].mxu1  ;;  %875 = vst.msk [vmem:[#allocation2 + $0x10] sm:$0xff] %vm872_vm1, %v832_v40  ;;  %v4478_v57 = vpop.f32.mrb[81].mxu0 }
 0x1ac   : > { %v4479_v24 = vadd.f32 %v4478_v57, %v4477_v20  ;;  %v4542_v17 = vpop.f32.mrb[81].mxu1  ;;  %v4480_v49 = vpop.f32.mrb[82].mxu0  ;;  %v1586_v61 = vsel %vm823_vm0, %v1558_v22, 0.0  ;;  %v1559_v10 = vmax.f32 %v1517_v18, 0.0  ;;  %v6776_v20 = vld [vmem:[%s7333_s1 + $0xe0] ss:$16 sps:$4 sm:$0xff]  }
 0x1ad   : > { %v4543_v44 = vadd.f32 %v4542_v17, %v4541_v51  ;;  %v4544_v59 = vpop.f32.mrb[82].mxu1  ;;  %v4481_v60 = vpop.f32.mrb[83].mxu0  ;;  %1587 = vadd.xlane.f32.xlu0 %v1586_v61  ;;  %7379 = vst [vmem:[#allocation11_spill] sm:$0xff] %v6776_v20  ;;  %v6783_v22 = vld [vmem:[%s7333_s1 + $0xe8] ss:$16 sps:$4 sm:$0xff]   ;;  %v4113_v57 = vld [vmem:[%s5507_s28 + $0xe00] sm:$0xff] }
 0x1ae   : > { %v1425_v0 = vadd.f32 %v4479_v24, %v7371_v38  ;;  %v4482_v11 = vadd.f32 %v4481_v60, %v4480_v49  ;;  %v4545_v14 = vpop.f32.mrb[83].mxu1  ;;  %v835_v53 = vpop.xlane.xlu1 %834  ;;  %7380 = vst [vmem:[#allocation12_spill] sm:$0xff] %v6783_v22  ;;  %v1589_v51 = vsel %vm823_vm0, %v1559_v10, 0.0  ;;  %v4114_v24 = vld [vmem:[%s5507_s28 + $0xe08] sm:$0xff] }
 0x1af   : > { %v4546_v3 = vadd.f32 %v4545_v14, %v4544_v59  ;;  %876 = vst.msk [vmem:[#allocation2 + $0x18] sm:$0xff] %vm872_vm1, %v835_v53  ;;  %2563 = vmatmul.mubr.bf16.gmra.mrb[188].mxu0 %v6776_v20  ;;  %v4145_v59 = vld [vmem:[%s5507_s28 + $0xf00] sm:$0xff]  ;;  %v4146_v60 = vld [vmem:[%s5507_s28 + $0xf08] sm:$0xff] }
 0x1b0   : > { %v1522_v18 = vadd.f32 %v4543_v44, %v1425_v0  ;;  %v1428_v40 = vadd.f32 %v4482_v11, %v7373_v6  ;;  %2660 = vmatmul.mubr.bf16.gmra.mrb[188].mxu1 %v6783_v22  ;;  %2878 = vmatprep.mubr.bf16.mxu0 %v6498_v2  ;;  %v4131_v11 = vld [vmem:[%s5507_s28 + $0xe90] sm:$0xff]  ;;  %v4132_v2 = vld [vmem:[%s5507_s28 + $0xe98] sm:$0xff]  ;;  %v3202_v38 = vpack.c.bf16 %v4146_v60, %v4145_v59  ;;  %v4134_v59 = vld [vmem:[%s5507_s28 + $0xea8] sm:$0xff] }
 0x1b1   : > { %1590 = vadd.xlane.f32.xlu0 %v1589_v51  ;;  %2975 = vmatprep.mubr.bf16.mxu1 %v6504_v43  ;;  %v4164_v6 = vld [vmem:[%s5507_s28 + $0xf98] sm:$0xff]  ;;  %v4165_v60 = vld [vmem:[%s5507_s28 + $0xfa0] sm:$0xff] }
 0x1b2   : > { %v1525_v17 = vadd.f32 %v4546_v3, %v1428_v40  ;;  %v4483_v49 = vpop.f32.mrb[84].mxu0  ;;  %v838_v61 = vpop.xlane.xlu1 %837  ;;  %v1560_v44 = vmax.f32 %v1522_v18, 0.0  ;;  %v3186_v40 = vpack.c.bf16 %v4114_v24, %v4113_v57  ;;  %v4163_v18 = vld [vmem:[%s5507_s28 + $0xf90] sm:$0xff] }
 0x1b3   : > { %v4547_v0 = vpop.f32.mrb[84].mxu1  ;;  %877 = vst.msk [vmem:[#allocation2 + $0x20] sm:$0xff] %vm872_vm1, %v838_v61  ;;  %v4484_v10 = vpop.f32.mrb[85].mxu0  ;;  %v4147_v24 = vld [vmem:[%s5507_s28 + $0xf10] sm:$0xff] }
 0x1b4   : > { %v4485_v14 = vadd.f32 %v4484_v10, %v4483_v49  ;;  %v4548_v43 = vpop.f32.mrb[85].mxu1  ;;  %v4486_v53 = vpop.f32.mrb[86].mxu0  ;;  %v1592_v3 = vsel %vm823_vm0, %v1560_v44, 0.0  ;;  %v1561_v51 = vmax.f32 %v1525_v17, 0.0  ;;  %v4116_v49 = vld [vmem:[%s5507_s28 + $0xe18] sm:$0xff] }
 0x1b5   : > { %v4549_v22 = vadd.f32 %v4548_v43, %v4547_v0  ;;  %v4550_v20 = vpop.f32.mrb[86].mxu1  ;;  %v4487_v61 = vpop.f32.mrb[87].mxu0  ;;  %1593 = vadd.xlane.f32.xlu0 %v1592_v3  ;;  %v4148_v17 = vld [vmem:[%s5507_s28 + $0xf18] sm:$0xff]  ;;  %v3195_v0 = vpack.c.bf16 %v4132_v2, %v4131_v11  ;;  %v3211_v43 = vpack.c.bf16 %v4164_v6, %v4163_v18  ;;  %v4166_v3 = vld [vmem:[%s5507_s28 + $0xfa8] sm:$0xff] }
 0x1b6   : > { %v1433_v10 = vadd.f32 %v4485_v14, %v6356_v56  ;;  %v4488_v44 = vadd.f32 %v4487_v61, %v4486_v53  ;;  %v4551_v4 = vpop.f32.mrb[87].mxu1  ;;  %v841_v57 = vpop.xlane.xlu1 %840  ;;  %v4117_v53 = vld [vmem:[%s5507_s28 + $0xe20] sm:$0xff]  ;;  %v3212_v18 = vpack.c.bf16 %v4166_v3, %v4165_v60  ;;  %v4135_v61 = vld [vmem:[%s5507_s28 + $0xeb0] sm:$0xff] }
 0x1b7   : > { %v4552_v62 = vadd.f32 %v4551_v4, %v4550_v20  ;;  %878 = vst.msk [vmem:[#allocation2 + $0x28] sm:$0xff] %vm872_vm1, %v841_v57  ;;  %2879 = vmatmul.mubr.bf16.vlgmr.msra.gmra.mrb[192].mxu0 %v6525_v36  ;;  %v1595_v4 = vsel %vm823_vm0, %v1561_v51, 0.0  ;;  %v3187_v20 = vpack.c.bf16 %v4116_v49, %v4115_v1  ;;  %v3203_v36 = vpack.c.bf16 %v4148_v17, %v4147_v24  ;;  %v4149_v1 = vld [vmem:[%s5507_s28 + $0xf20] sm:$0xff]  ;;  %v4150_v51 = vld [vmem:[%s5507_s28 + $0xf28] sm:$0xff]  ;;  %v4168_v57 = vld [vmem:[%s5507_s28 + $0xfb8] sm:$0xff] }
 0x1b8   : > { %v1530_v47 = vadd.f32 %v4549_v22, %v1433_v10  ;;  %v1436_v14 = vadd.f32 %v4488_v44, %v6361_v55  ;;  %2976 = vmatmul.mubr.bf16.vlgmr.msra.gmra.mrb[192].mxu1 %v6535_v7  ;;  %5078 = vmatpush3.bf16.msra.mxu0 %v3186_v40  ;;  %v3196_v7 = vpack.c.bf16 %v4134_v59, %v4133_v50  ;;  %v4118_v40 = vld [vmem:[%s5507_s28 + $0xe28] sm:$0xff]  ;;  %v4167_v44 = vld [vmem:[%s5507_s28 + $0xfb0] sm:$0xff] }
 0x1b9   : > { %1596 = vadd.xlane.f32.xlu0 %v1595_v4  ;;  %5142 = vmatpush3.bf16.msra.mxu1 %v3202_v38  ;;  %v3204_v4 = vpack.c.bf16 %v4150_v51, %v4149_v1  ;;  %v4138_v1 = vld [vmem:[%s5507_s28 + $0xec8] sm:$0xff] }
 0x1ba   : > { %v1533_v11 = vadd.f32 %v4552_v62, %v1436_v14  ;;  %v4489_v6 = vpop.f32.mrb[88].mxu0  ;;  %v844_v2 = vpop.xlane.xlu1 %843  ;;  %v1562_v22 = vmax.f32 %v1530_v47, 0.0  ;;  %2886 = vmatprep.mubr.bf16.mxu0 %v6542_v58  ;;  %2983 = vmatprep.mubr.bf16.mxu1 %v6548_v45  ;;  %v4136_v47 = vld [vmem:[%s5507_s28 + $0xeb8] sm:$0xff] }
 0x1bb   : > { %v4553_v38 = vpop.f32.mrb[88].mxu1  ;;  %879 = vst.msk [vmem:[#allocation2 + $0x30] sm:$0xff] %vm872_vm1, %v844_v2  ;;  %v4490_v62 = vpop.f32.mrb[89].mxu0  ;;  %5079 = vmatprep.subr.bf16.mxu0 %v3195_v0  ;;  %5143 = vmatprep.subr.bf16.mxu1 %v3211_v43  ;;  %v3188_v0 = vpack.c.bf16 %v4118_v40, %v4117_v53  ;;  %v3213_v2 = vpack.c.bf16 %v4168_v57, %v4167_v44  ;;  %v4152_v53 = vld [vmem:[%s5507_s28 + $0xf38] sm:$0xff]  ;;  %v4153_v44 = vld [vmem:[%s5507_s28 + $0xf40] sm:$0xff]  ;;  %v4154_v57 = vld [vmem:[%s5507_s28 + $0xf48] sm:$0xff] }
 0x1bc   : > { %v4491_v49 = vadd.f32 %v4490_v62, %v4489_v6  ;;  %v4554_v58 = vpop.f32.mrb[89].mxu1  ;;  %v4492_v10 = vpop.f32.mrb[90].mxu0  ;;  %v1598_v50 = vsel %vm823_vm0, %v1562_v22, 0.0  ;;  %5080 = vmatpush3.bf16.msra.mxu0 %v3187_v20  ;;  %v1563_v45 = vmax.f32 %v1533_v11, 0.0  ;;  %v4119_v20 = vld [vmem:[%s5507_s28 + $0xe30] sm:$0xff]  ;;  %v4120_v6 = vld [vmem:[%s5507_s28 + $0xe38] sm:$0xff] }
 0x1bd   : > { %v4555_v24 = vadd.f32 %v4554_v58, %v4553_v38  ;;  %v4556_v17 = vpop.f32.mrb[90].mxu1  ;;  %v4493_v59 = vpop.f32.mrb[91].mxu0  ;;  %1599 = vadd.xlane.f32.xlu0 %v1598_v50  ;;  %5144 = vmatpush3.bf16.msra.mxu1 %v3203_v36  ;;  %v3197_v36 = vpack.c.bf16 %v4136_v47, %v4135_v61  ;;  %v4151_v22 = vld [vmem:[%s5507_s28 + $0xf30] sm:$0xff]  ;;  %v4122_v58 = vld [vmem:[%s5507_s28 + $0xe48] sm:$0xff] }
 0x1be   : > { %v1441_v43 = vadd.f32 %v4491_v49, %v6383_v29  ;;  %v4494_v60 = vadd.f32 %v4493_v59, %v4492_v10  ;;  %v4557_v3 = vpop.f32.mrb[91].mxu1  ;;  %v847_v14 = vpop.xlane.xlu1 %846  ;;  %5081 = vmatprep.subr.bf16.mxu0 %v3196_v7  ;;  %5145 = vmatprep.subr.bf16.mxu1 %v3212_v18  ;;  %v1601_v7 = vsel %vm823_vm0, %v1563_v45, 0.0  ;;  %v4137_v18 = vld [vmem:[%s5507_s28 + $0xec0] sm:$0xff]  ;;  %v3205_v47 = vpack.c.bf16 %v4152_v53, %v4151_v22  ;;  %v4170_v45 = vld [vmem:[%s5507_s28 + $0xfc8] sm:$0xff] }
 0x1bf   : > { %v4558_v11 = vadd.f32 %v4557_v3, %v4556_v17  ;;  %880 = vst.msk [vmem:[#allocation2 + $0x38] sm:$0xff] %vm872_vm1, %v847_v14  ;;  %2887 = vmatmul.mubr.bf16.gmra.mrb[196].mxu0 %v6565_v35  ;;  %v4121_v49 = vld [vmem:[%s5507_s28 + $0xe40] sm:$0xff]  ;;  %v3198_v50 = vpack.c.bf16 %v4138_v1, %v4137_v18  ;;  %v4140_v3 = vld [vmem:[%s5507_s28 + $0xed8] sm:$0xff]  ;;  %v3206_v18 = vpack.c.bf16 %v4154_v57, %v4153_v44  ;;  %v4174_v57 = vld [vmem:[%s5507_s28 + $0xfe8] sm:$0xff] }
 0x1c0   : > { %v1538_v40 = vadd.f32 %v4555_v24, %v1441_v43  ;;  %v1444_v38 = vadd.f32 %v4494_v60, %v6387_v32  ;;  %2984 = vmatmul.mubr.bf16.gmra.mrb[196].mxu1 %v6575_v16  ;;  %2894 = vmatprep.mubr.bf16.mxu0 %v6582_v23  ;;  %v3189_v16 = vpack.c.bf16 %v4120_v6, %v4119_v20  ;;  %v4169_v23 = vld [vmem:[%s5507_s28 + $0xfc0] sm:$0xff]  ;;  %v4139_v60 = vld [vmem:[%s5507_s28 + $0xed0] sm:$0xff]  ;;  %v4172_v6 = vld [vmem:[%s5507_s28 + $0xfd8] sm:$0xff] }
 0x1c1   : > { %1602 = vadd.xlane.f32.xlu0 %v1601_v7  ;;  %2991 = vmatprep.mubr.bf16.mxu1 %v6590_v13  ;;  %v3199_v1 = vpack.c.bf16 %v4140_v3, %v4139_v60  ;;  %v4125_v60 = vld [vmem:[%s5507_s28 + $0xe60] sm:$0xff]  ;;  %v4126_v3 = vld [vmem:[%s5507_s28 + $0xe68] sm:$0xff] }
 0x1c2   : > { %v1541_v35 = vadd.f32 %v4558_v11, %v1444_v38  ;;  %v4495_v62 = vpop.f32.mrb[92].mxu0  ;;  %v850_v51 = vpop.xlane.xlu1 %849  ;;  %v1564_v61 = vmax.f32 %v1538_v40, 0.0  ;;  %5082 = vmatpush3.bf16.msra.mxu0 %v3188_v0  ;;  %5146 = vmatpush3.bf16.msra.mxu1 %v3204_v4  ;;  %v3190_v11 = vpack.c.bf16 %v4122_v58, %v4121_v49  ;;  %v3214_v38 = vpack.c.bf16 %v4170_v45, %v4169_v23  ;;  %v4142_v45 = vld [vmem:[%s5507_s28 + $0xee8] sm:$0xff] }
 0x1c3   : > { %v4559_v10 = vpop.f32.mrb[92].mxu1  ;;  %881 = vst.msk [vmem:[#allocation2 + $0x40] sm:$0xff] %vm872_vm1, %v850_v51  ;;  %v4496_v13 = vpop.f32.mrb[93].mxu0  ;;  %5083 = vmatprep.subr.bf16.mxu0 %v3197_v36  ;;  %5147 = vmatprep.subr.bf16.mxu1 %v3213_v2  ;;  %v4171_v36 = vld [vmem:[%s5507_s28 + $0xfd0] sm:$0xff] }
 0x1c4   : > { %v4497_v24 = vadd.f32 %v4496_v13, %v4495_v62  ;;  %v4560_v17 = vpop.f32.mrb[93].mxu1  ;;  %v4498_v59 = vpop.f32.mrb[94].mxu0  ;;  %v1604_v0 = vsel %vm823_vm0, %v1564_v61, 0.0  ;;  %v1565_v43 = vmax.f32 %v1541_v35, 0.0  ;;  %v4123_v35 = vld [vmem:[%s5507_s28 + $0xe50] sm:$0xff]  ;;  %v4124_v62 = vld [vmem:[%s5507_s28 + $0xe58] sm:$0xff] }
 0x1c5   : > { %v4561_v14 = vadd.f32 %v4560_v17, %v4559_v10  ;;  %v4562_v4 = vpop.f32.mrb[94].mxu1  ;;  %v4499_v20 = vpop.f32.mrb[95].mxu0  ;;  %1605 = vadd.xlane.f32.xlu0 %v1604_v0  ;;  %v3191_v13 = vpack.c.bf16 %v4124_v62, %v4123_v35  ;;  %v4158_v35 = vld [vmem:[%s5507_s28 + $0xf68] sm:$0xff] }
 0x1c6   : > { %v1449_v2 = vadd.f32 %v4497_v24, %v6410_v63  ;;  %v4500_v22 = vadd.f32 %v4499_v20, %v4498_v59  ;;  %v4563_v53 = vpop.f32.mrb[95].mxu1  ;;  %v853_v40 = vpop.xlane.xlu1 %852  ;;  %5084 = vmatpush3.bf16.msra.mxu0 %v3189_v16  ;;  %5148 = vmatpush3.bf16.msra.mxu1 %v3205_v47  ;;  %v1607_v16 = vsel %vm823_vm0, %v1565_v43, 0.0  ;;  %v3215_v47 = vpack.c.bf16 %v4172_v6, %v4171_v36  ;;  %v4143_v6 = vld [vmem:[%s5507_s28 + $0xef0] sm:$0xff] }
 0x1c7   : > { %v4564_v7 = vadd.f32 %v4563_v53, %v4562_v4  ;;  %882 = vst.msk [vmem:[#allocation2 + $0x48] sm:$0xff] %vm872_vm1, %v853_v40  ;;  %2895 = vmatmul.mubr.bf16.gmra.mrb[200].mxu0 %v6608_v54  ;;  %5085 = vmatprep.subr.bf16.mxu0 %v3198_v50  ;;  %v4155_v54 = vld [vmem:[%s5507_s28 + $0xf50] sm:$0xff]  ;;  %v4141_v50 = vld [vmem:[%s5507_s28 + $0xee0] sm:$0xff] }
 0x1c8   : > { %v1546_v51 = vadd.f32 %v4561_v14, %v1449_v2  ;;  %v1452_v61 = vadd.f32 %v4500_v22, %v6413_v19  ;;  %2992 = vmatmul.mubr.bf16.gmra.mrb[200].mxu1 %v6617_v33  ;;  %2902 = vmatprep.mubr.bf16.mxu0 %v6624_v31  ;;  %v4156_v33 = vld [vmem:[%s5507_s28 + $0xf58] sm:$0xff]  ;;  %v3200_v36 = vpack.c.bf16 %v4142_v45, %v4141_v50 }
 0x1c9   : > { %1608 = vadd.xlane.f32.xlu0 %v1607_v16  ;;  %2999 = vmatprep.mubr.bf16.mxu1 %v6632_v37  ;;  %v4173_v37 = vld [vmem:[%s5507_s28 + $0xfe0] sm:$0xff]  ;;  %v4144_v2 = vld [vmem:[%s5507_s28 + $0xef8] sm:$0xff] }
 0x1ca   : > { %v1549_v49 = vadd.f32 %v4564_v7, %v1452_v61  ;;  %v4581_v58 = vpop.f32.mrb[96].mxu0  ;;  %v856_v23 = vpop.xlane.xlu1 %855  ;;  %v1566_v10 = vmax.f32 %v1546_v51, 0.0  ;;  %5086 = vmatpush3.bf16.msra.mxu0 %v3190_v11  ;;  %5149 = vmatprep.subr.bf16.mxu1 %v3214_v38  ;;  %v3207_v11 = vpack.c.bf16 %v4156_v33, %v4155_v54  ;;  %v3192_v51 = vpack.c.bf16 %v4126_v3, %v4125_v60  ;;  %v4175_v61 = vld [vmem:[%s5507_s28 + $0xff0] sm:$0xff]  ;;  %v4176_v16 = vld [vmem:[%s5507_s28 + $0xff8] sm:$0xff] }
 0x1cb   : > { %v4645_v31 = vpop.f32.mrb[96].mxu1  ;;  %883 = vst.msk [vmem:[#allocation2 + $0x50] sm:$0xff] %vm872_vm1, %v856_v23  ;;  %v4582_v44 = vpop.f32.mrb[97].mxu0  ;;  %5150 = vmatpush3.bf16.msra.mxu1 %v3206_v18  ;;  %5087 = vmatprep.subr.bf16.mxu0 %v3199_v1  ;;  %v3216_v18 = vpack.c.bf16 %v4174_v57, %v4173_v37  ;;  %v4157_v1 = vld [vmem:[%s5507_s28 + $0xf60] sm:$0xff]  ;;  %v4127_v33 = vld [vmem:[%s5507_s28 + $0xe70] sm:$0xff]  ;;  %v4128_v50 = vld [vmem:[%s5507_s28 + $0xe78] sm:$0xff]  ;;  %v3217_v45 = vpack.c.bf16 %v4176_v16, %v4175_v61 }
 0x1cc   : > { %v4583_v24 = vadd.f32 %v4582_v44, %v4581_v58  ;;  %v4646_v17 = vpop.f32.mrb[97].mxu1  ;;  %v4584_v59 = vpop.f32.mrb[98].mxu0  ;;  %v1610_v0 = vsel %vm823_vm0, %v1566_v10, 0.0  ;;  %v1567_v43 = vmax.f32 %v1549_v49, 0.0  ;;  %5151 = vmatprep.subr.bf16.mxu1 %v3215_v47  ;;  %v3201_v49 = vpack.c.bf16 %v4144_v2, %v4143_v6 }
 0x1cd   : > { %v4647_v14 = vadd.f32 %v4646_v17, %v4645_v31  ;;  %v4648_v4 = vpop.f32.mrb[98].mxu1  ;;  %v4585_v20 = vpop.f32.mrb[99].mxu0  ;;  %1611 = vadd.xlane.f32.xlu0 %v1610_v0  ;;  %v3193_v60 = vpack.c.bf16 %v4128_v50, %v4127_v33 }
 0x1ce   : > { %v1765_v22 = vadd.f32 %v4583_v24, %v6159_v5  ;;  %v4586_v53 = vadd.f32 %v4585_v20, %v4584_v59  ;;  %v4649_v40 = vpop.f32.mrb[99].mxu1  ;;  %v859_v38 = vpop.xlane.xlu1 %858  ;;  %v1613_v7 = vsel %vm823_vm0, %v1567_v43, 0.0  ;;  %5088 = vmatpush3.bf16.msra.mxu0 %v3191_v13 }
 0x1cf   : > { %v4650_v62 = vadd.f32 %v4649_v40, %v4648_v4  ;;  %884 = vst.msk [vmem:[#allocation2 + $0x58] sm:$0xff] %vm872_vm1, %v859_v38  ;;  %2903 = vmatmul.mubr.bf16.gmra.mrb[204].mxu0 %v6652_v12  ;;  %1614 = vadd.xlane.f32.xlu1 %v1613_v7  ;;  %v3208_v12 = vpack.c.bf16 %v4158_v35, %v4157_v1 }
 0x1d0   : > { %v1862_v47 = vadd.f32 %v4647_v14, %v1765_v22  ;;  %v1768_v54 = vadd.f32 %v4586_v53, %v6198_v41  ;;  %3000 = vmatmul.mubr.bf16.gmra.mrb[204].mxu1 %v6659_v52  ;;  %2910 = vmatprep.mubr.bf16.mxu0 %v6666_v34  ;;  %v4159_v34 = vld [vmem:[%s5507_s28 + $0xf70] sm:$0xff] }
 0x1d1   : > { %3007 = vmatprep.mubr.bf16.mxu1 %v6674_v9  ;;  %5152 = vmatpush3.bf16.msra.mxu1 %v3207_v11  ;;  %v4160_v9 = vld [vmem:[%s5507_s28 + $0xf78] sm:$0xff] }
 0x1d2   : > { %v1865_v58 = vadd.f32 %v4650_v62, %v1768_v54  ;;  %v4587_v23 = vpop.f32.mrb[100].mxu0  ;;  %v862_v10 = vpop.xlane.xlu1 %861  ;;  %v1924_v13 = vmax.f32 %v1862_v47, 0.0  ;;  %5089 = vmatprep.subr.bf16.mxu0 %v3200_v36  ;;  %5153 = vmatprep.subr.bf16.mxu1 %v3216_v18  ;;  %v3209_v36 = vpack.c.bf16 %v4160_v9, %v4159_v34 }
 0x1d3   : > { %v4651_v31 = vpop.f32.mrb[100].mxu1  ;;  %885 = vst.msk [vmem:[#allocation2 + $0x60] sm:$0xff] %vm872_vm1, %v862_v10  ;;  %v4588_v52 = vpop.f32.mrb[101].mxu0  ;;  %5090 = vmatpush3.bf16.msra.mxu0 %v3192_v51 }
 0x1d4   : > { %v4589_v44 = vadd.f32 %v4588_v52, %v4587_v23  ;;  %v4652_v37 = vpop.f32.mrb[101].mxu1  ;;  %v4590_v57 = vpop.f32.mrb[102].mxu0  ;;  %v1940_v24 = vsel %vm823_vm0, %v1924_v13, 0.0  ;;  %v1925_v17 = vmax.f32 %v1865_v58, 0.0  ;;  %5091 = vmatprep.subr.bf16.mxu0 %v3201_v49 }
 0x1d5   : > { %v4653_v59 = vadd.f32 %v4652_v37, %v4651_v31  ;;  %v4654_v0 = vpop.f32.mrb[102].mxu1  ;;  %v4591_v43 = vpop.f32.mrb[103].mxu0  ;;  %1941 = vadd.xlane.f32.xlu0 %v1940_v24  ;;  %5154 = vmatpush3.bf16.msra.mxu1 %v3208_v12  ;;  %v7381_v24 = vld [vmem:[#allocation3_spill] sm:$0xff] }
 0x1d6   : > { %v1773_v3 = vadd.f32 %v4589_v44, %v6195_v15  ;;  %v4592_v14 = vadd.f32 %v4591_v43, %v4590_v57  ;;  %v4655_v4 = vpop.f32.mrb[103].mxu1  ;;  %v865_v20 = vpop.xlane.xlu1 %864  ;;  %v1943_v11 = vsel %vm823_vm0, %v1925_v17, 0.0  ;;  %5155 = vmatprep.subr.bf16.mxu1 %v3217_v45 }
 0x1d7   : > { %v4656_v6 = vadd.f32 %v4655_v4, %v4654_v0  ;;  %886 = vst.msk [vmem:[#allocation2 + $0x68] sm:$0xff] %vm872_vm1, %v865_v20  ;;  %2911 = vmatmul.mubr.bf16.gmra.mrb[208].mxu0 %v6688_v21  ;;  %1944 = vadd.xlane.f32.xlu1 %v1943_v11  ;;  %v7384_v20 = vld [vmem:[#allocation6_spill] sm:$0xff] }
 0x1d8   : > { %v1870_v2 = vadd.f32 %v4653_v59, %v1773_v3  ;;  %v1776_v22 = vadd.f32 %v4592_v14, %v6241_v30  ;;  %3008 = vmatmul.mubr.bf16.gmra.mrb[208].mxu1 %v6695_v28  ;;  %2918 = vmatprep.mubr.bf16.mxu0 %v6702_v25  ;;  %v7383_v14 = vld [vmem:[#allocation4_spill] sm:$0xff] }
 0x1d9   : > { %3015 = vmatprep.mubr.bf16.mxu1 %v6708_v42  ;;  %5092 = vmatpush3.bf16.msra.mxu0 %v3193_v60  ;;  %v7382_v60 = vld [vmem:[#allocation5_spill] sm:$0xff] }
 0x1da   : > { %v1873_v53 = vadd.f32 %v4656_v6, %v1776_v22  ;;  %v4593_v40 = vpop.f32.mrb[104].mxu0  ;;  %v868_v38 = vpop.xlane.xlu1 %867  ;;  %v1926_v7 = vmax.f32 %v1870_v2, 0.0  ;;  %5156 = vmatpush3.bf16.msra.mxu1 %v3209_v36  ;;  %v7385_v36 = vld [vmem:[#allocation8_spill] sm:$0xff]  ;;  %v7386_v6 = vld [vmem:[#allocation10_spill] sm:$0xff] }
 0x1db   : > { %v4657_v18 = vpop.f32.mrb[104].mxu1  ;;  %887 = vst.msk [vmem:[#allocation2 + $0x70] sm:$0xff] %vm872_vm1, %v868_v38  ;;  %v4594_v21 = vpop.f32.mrb[105].mxu0 }
 0x1dc   : > { %v4595_v1 = vadd.f32 %v4594_v21, %v4593_v40  ;;  %v4658_v35 = vpop.f32.mrb[105].mxu1  ;;  %v4596_v62 = vpop.f32.mrb[106].mxu0  ;;  %v1946_v51 = vsel %vm823_vm0, %v1926_v7, 0.0  ;;  %v1927_v28 = vmax.f32 %v1873_v53, 0.0 }
 0x1dd   : > { %v4659_v61 = vadd.f32 %v4658_v35, %v4657_v18  ;;  %v4660_v25 = vpop.f32.mrb[106].mxu1  ;;  %v4597_v16 = vpop.f32.mrb[107].mxu0  ;;  %1947 = vadd.xlane.f32.xlu0 %v1946_v51 }
 0x1de   : > { %v1781_v42 = vadd.f32 %v4595_v1, %v6265_v26  ;;  %v4598_v47 = vadd.f32 %v4597_v16, %v4596_v62  ;;  %v4661_v54 = vpop.f32.mrb[107].mxu1  ;;  %v871_v49 = vpop.xlane.xlu1 %870  ;;  %v1949_v10 = vsel %vm823_vm0, %v1927_v28, 0.0 }
 0x1df   : > { %v4662_v12 = vadd.f32 %v4661_v54, %v4660_v25  ;;  %888 = vst.msk [vmem:[#allocation2 + $0x78] sm:$0xff] %vm872_vm1, %v871_v49  ;;  %2919 = vmatmul.mubr.bf16.gmra.mrb[212].mxu0 %v6716_v8  ;;  %v7387_v25 = vld [vmem:[#allocation7_spill] sm:$0xff] }
 0x1e0   : > { %v1878_v58 = vadd.f32 %v4659_v61, %v1781_v42  ;;  %v1784_v23 = vadd.f32 %v4598_v47, %v6273_v27  ;;  %3016 = vmatmul.mubr.bf16.gmra.mrb[212].mxu1 %v6723_v48  ;;  %2926 = vmatprep.mubr.bf16.mxu0 %v6730_v39 }
 0x1e1   : > { %1950 = vadd.xlane.f32.xlu0 %v1949_v10  ;;  %3023 = vmatprep.mubr.bf16.mxu1 %v6736_v46 }
 0x1e2   : > { %v1881_v13 = vadd.f32 %v4662_v12, %v1784_v23  ;;  %v4599_v33 = vpop.f32.mrb[108].mxu0  ;;  %v1198_v50 = vpop.xlane.xlu1 %1197  ;;  %v1928_v45 = vmax.f32 %v1878_v58, 0.0  ;;  %v7388_v12 = vld [vmem:[#allocation11_spill] sm:$0xff]  ;;  %v7389_v23 = vld [vmem:[#allocation12_spill] sm:$0xff] }
 0x1e3   : > { %v4663_v31 = vpop.f32.mrb[108].mxu1  ;;  %1245 = vst.msk [vmem:[#allocation2] sm:$0xff] %vm1244_vm2, %v1198_v50  ;;  %v4600_v8 = vpop.f32.mrb[109].mxu0 }
 0x1e4   : > { %v4601_v52 = vadd.f32 %v4600_v8, %v4599_v33  ;;  %v4664_v34 = vpop.f32.mrb[109].mxu1  ;;  %v4602_v9 = vpop.f32.mrb[110].mxu0  ;;  %v1952_v48 = vsel %vm823_vm0, %v1928_v45, 0.0  ;;  %v1929_v44 = vmax.f32 %v1881_v13, 0.0  ;;  %v5407_v13 = vld [vmem:[%s7333_s1 + $0x4] ss:$16 sps:$4 sm:$0xff]  }
 0x1e5   : > { %v4665_v37 = vadd.f32 %v4664_v34, %v4663_v31  ;;  %v4666_v57 = vpop.f32.mrb[110].mxu1  ;;  %v4603_v39 = vpop.f32.mrb[111].mxu0  ;;  %1953 = vadd.xlane.f32.xlu0 %v1952_v48  ;;  %v7390_v33 = vld [vmem:[#allocation9_spill] sm:$0xff]  ;;  %v5408_v45 = vld [vmem:[%s7333_s1 + $0xc] ss:$16 sps:$4 sm:$0xff]  }
 0x1e6   : > { %v1789_v46 = vadd.f32 %v4601_v52, %v7381_v24  ;;  %v4604_v17 = vadd.f32 %v4603_v39, %v4602_v9  ;;  %v4667_v59 = vpop.f32.mrb[111].mxu1  ;;  %v1201_v0 = vpop.xlane.xlu1 %1200  ;;  %v1955_v11 = vsel %vm823_vm0, %v1929_v44, 0.0 }
 0x1e7   : > { %v4668_v43 = vadd.f32 %v4667_v59, %v4666_v57  ;;  %1246 = vst.msk [vmem:[#allocation2 + $0x8] sm:$0xff] %vm1244_vm2, %v1201_v0  ;;  %2927 = vmatmul.mubr.bf16.gmra.mrb[216].mxu0 %v7382_v60 }
 0x1e8   : > { %v1886_v3 = vadd.f32 %v4665_v37, %v1789_v46  ;;  %v1792_v4 = vadd.f32 %v4604_v17, %v7383_v14  ;;  %3024 = vmatmul.mubr.bf16.gmra.mrb[216].mxu1 %v7384_v20  ;;  %2934 = vmatprep.mubr.bf16.mxu0 %v7385_v36 }
 0x1e9   : > { %1956 = vadd.xlane.f32.xlu0 %v1955_v11  ;;  %3031 = vmatprep.mubr.bf16.mxu1 %v7386_v6  ;;  %v5409_v11 = vld [vmem:[%s7333_s1] ss:$16 sps:$4 sm:$0xff]  }
 0x1ea   : > { %v1889_v2 = vadd.f32 %v4668_v43, %v1792_v4  ;;  %v4605_v22 = vpop.f32.mrb[112].mxu0  ;;  %v1204_v53 = vpop.xlane.xlu0 %1203  ;;  %v1930_v40 = vmax.f32 %v1886_v3, 0.0 }
 0x1eb   : > { %v4669_v38 = vpop.f32.mrb[112].mxu1  ;;  %1247 = vst.msk [vmem:[#allocation2 + $0x10] sm:$0xff] %vm1244_vm2, %v1204_v53  ;;  %v4606_v7 = vpop.f32.mrb[113].mxu0  ;;  %v5411_v53 = vld [vmem:[%s7333_s1 + $0x24] ss:$16 sps:$4 sm:$0xff]  }
 0x1ec   : > { %v4607_v18 = vadd.f32 %v4606_v7, %v4605_v22  ;;  %v4670_v21 = vpop.f32.mrb[113].mxu1  ;;  %v4608_v1 = vpop.f32.mrb[114].mxu0  ;;  %v1958_v35 = vsel %vm823_vm0, %v1930_v40, 0.0  ;;  %v1931_v62 = vmax.f32 %v1889_v2, 0.0  ;;  %v5410_v2 = vld [vmem:[%s7333_s1 + $0x8] ss:$16 sps:$4 sm:$0xff]  }
 0x1ed   : > { %v4671_v51 = vadd.f32 %v4670_v21, %v4669_v38  ;;  %v4672_v28 = vpop.f32.mrb[114].mxu1  ;;  %v1207_v61 = vpop.xlane.xlu1 %1206  ;;  %1959 = vadd.xlane.f32.xlu0 %v1958_v35  ;;  %v5412_v40 = vld [vmem:[%s7333_s1 + $0x2c] ss:$16 sps:$4 sm:$0xff]  }
 0x1ee   : > { %v1797_v16 = vadd.f32 %v4607_v18, %v7387_v25  ;;  %1248 = vst.msk [vmem:[#allocation2 + $0x18] sm:$0xff] %vm1244_vm2, %v1207_v61  ;;  %v4609_v42 = vpop.f32.mrb[115].mxu0  ;;  %v4673_v47 = vpop.f32.mrb[115].mxu1  ;;  %v1961_v10 = vsel %vm823_vm0, %v1931_v62, 0.0 }
 0x1ef   : > { %v4610_v54 = vadd.f32 %v4609_v42, %v4608_v1  ;;  %v4674_v49 = vadd.f32 %v4673_v47, %v4672_v28  ;;  %2935 = vmatmul.mubr.bf16.gmra.mrb[220].mxu0 %v7388_v12 }
 0x1f0   : > { %v1894_v58 = vadd.f32 %v4671_v51, %v1797_v16  ;;  %3032 = vmatmul.mubr.bf16.gmra.mrb[220].mxu1 %v7389_v23  ;;  %3250 = vmatprep.mubr.bf16.mxu0 %v5407_v13  ;;  %v5413_v13 = vld [vmem:[%s7333_s1 + $0x20] ss:$16 sps:$4 sm:$0xff]  }
 0x1f1   : > { %v1800_v50 = vadd.f32 %v4610_v54, %v7390_v33  ;;  %1962 = vadd.xlane.f32.xlu0 %v1961_v10  ;;  %3347 = vmatprep.mubr.bf16.mxu1 %v5408_v45 }
 0x1f2   : > { %v4611_v31 = vpop.f32.mrb[116].mxu0  ;;  %v1210_v8 = vpop.xlane.xlu1 %1209  ;;  %v1932_v52 = vmax.f32 %v1894_v58, 0.0 }
 0x1f3   : > { %v1897_v34 = vadd.f32 %v4674_v49, %v1800_v50  ;;  %v4675_v9 = vpop.f32.mrb[116].mxu1  ;;  %1249 = vst.msk [vmem:[#allocation2 + $0x20] sm:$0xff] %vm1244_vm2, %v1210_v8  ;;  %v4612_v48 = vpop.f32.mrb[117].mxu0 }
 0x1f4   : > { %v4613_v44 = vadd.f32 %v4612_v48, %v4611_v31  ;;  %v4676_v37 = vpop.f32.mrb[117].mxu1  ;;  %v4614_v57 = vpop.f32.mrb[118].mxu0  ;;  %v1964_v39 = vsel %vm823_vm0, %v1932_v52, 0.0  ;;  %v5414_v31 = vld [vmem:[%s7333_s1 + $0x28] ss:$16 sps:$4 sm:$0xff]  }
 0x1f5   : > { %v4677_v46 = vadd.f32 %v4676_v37, %v4675_v9  ;;  %v4678_v17 = vpop.f32.mrb[118].mxu1  ;;  %v4615_v59 = vpop.f32.mrb[119].mxu0  ;;  %1965 = vadd.xlane.f32.xlu0 %v1964_v39  ;;  %v1933_v0 = vmax.f32 %v1897_v34, 0.0  ;;  %v5415_v52 = vld [vmem:[%s7333_s1 + $0x44] ss:$16 sps:$4 sm:$0xff]  }
 0x1f6   : > { %v1805_v43 = vadd.f32 %v4613_v44, %v6356_v56  ;;  %v4616_v60 = vadd.f32 %v4615_v59, %v4614_v57  ;;  %v4679_v3 = vpop.f32.mrb[119].mxu1  ;;  %v1213_v4 = vpop.xlane.xlu1 %1212  ;;  %v5416_v34 = vld [vmem:[%s7333_s1 + $0x4c] ss:$16 sps:$4 sm:$0xff]  }
 0x1f7   : > { %v4680_v20 = vadd.f32 %v4679_v3, %v4678_v17  ;;  %1250 = vst.msk [vmem:[#allocation2 + $0x28] sm:$0xff] %vm1244_vm2, %v1213_v4  ;;  %3251 = vmatmul.mubr.bf16.vlgmr.msra.gmra.mrb[224].mxu0 %v5409_v11  ;;  %v1967_v22 = vsel %vm823_vm0, %v1933_v0, 0.0 }
 0x1f8   : > { %v1902_v36 = vadd.f32 %v4677_v46, %v1805_v43  ;;  %v1808_v6 = vadd.f32 %v4616_v60, %v6361_v55  ;;  %3348 = vmatmul.mubr.bf16.vlgmr.msra.gmra.mrb[224].mxu1 %v5410_v2  ;;  %3258 = vmatprep.mubr.bf16.mxu0 %v5411_v53 }
 0x1f9   : > { %1968 = vadd.xlane.f32.xlu0 %v1967_v22  ;;  %3355 = vmatprep.mubr.bf16.mxu1 %v5412_v40  ;;  %v5417_v22 = vld [vmem:[%s7333_s1 + $0x40] ss:$16 sps:$4 sm:$0xff]  }
 0x1fa   : > { %v1905_v38 = vadd.f32 %v4680_v20, %v1808_v6  ;;  %v4617_v7 = vpop.f32.mrb[120].mxu0  ;;  %v1216_v18 = vpop.xlane.xlu1 %1215  ;;  %v1934_v21 = vmax.f32 %v1902_v36, 0.0 }
 0x1fb   : > { %v4681_v1 = vpop.f32.mrb[120].mxu1  ;;  %1251 = vst.msk [vmem:[#allocation2 + $0x30] sm:$0xff] %vm1244_vm2, %v1216_v18  ;;  %v4618_v35 = vpop.f32.mrb[121].mxu0  ;;  %v5419_v18 = vld [vmem:[%s7333_s1 + $0x64] ss:$16 sps:$4 sm:$0xff]  }
 0x1fc   : > { %v4619_v62 = vadd.f32 %v4618_v35, %v4617_v7  ;;  %v4682_v51 = vpop.f32.mrb[121].mxu1  ;;  %v4620_v28 = vpop.f32.mrb[122].mxu0  ;;  %v1970_v61 = vsel %vm823_vm0, %v1934_v21, 0.0  ;;  %v1935_v16 = vmax.f32 %v1905_v38, 0.0  ;;  %v5418_v38 = vld [vmem:[%s7333_s1 + $0x48] ss:$16 sps:$4 sm:$0xff]  }
 0x1fd   : > { %v4683_v42 = vadd.f32 %v4682_v51, %v4681_v1  ;;  %v4684_v47 = vpop.f32.mrb[122].mxu1  ;;  %v4621_v54 = vpop.f32.mrb[123].mxu0  ;;  %1971 = vadd.xlane.f32.xlu0 %v1970_v61  ;;  %v5420_v21 = vld [vmem:[%s7333_s1 + $0x6c] ss:$16 sps:$4 sm:$0xff]  }
 0x1fe   : > { %v1813_v49 = vadd.f32 %v4619_v62, %v6383_v29  ;;  %v4622_v12 = vadd.f32 %v4621_v54, %v4620_v28  ;;  %v4685_v58 = vpop.f32.mrb[123].mxu1  ;;  %v1219_v23 = vpop.xlane.xlu1 %1218  ;;  %v1973_v8 = vsel %vm823_vm0, %v1935_v16, 0.0 }
 0x1ff   : > { %v4686_v10 = vadd.f32 %v4685_v58, %v4684_v47  ;;  %1252 = vst.msk [vmem:[#allocation2 + $0x38] sm:$0xff] %vm1244_vm2, %v1219_v23  ;;  %3259 = vmatmul.mubr.bf16.gmra.mrb[228].mxu0 %v5413_v13 }
 0x200   : > { %v1910_v50 = vadd.f32 %v4683_v42, %v1813_v49  ;;  %v1816_v45 = vadd.f32 %v4622_v12, %v6387_v32  ;;  %3356 = vmatmul.mubr.bf16.gmra.mrb[228].mxu1 %v5414_v31  ;;  %3266 = vmatprep.mubr.bf16.mxu0 %v5415_v52 }
 0x201   : > { %1974 = vadd.xlane.f32.xlu0 %v1973_v8  ;;  %3363 = vmatprep.mubr.bf16.mxu1 %v5416_v34  ;;  %v5421_v8 = vld [vmem:[%s7333_s1 + $0x60] ss:$16 sps:$4 sm:$0xff]  }
 0x202   : > { %v1913_v9 = vadd.f32 %v4686_v10, %v1816_v45  ;;  %v4623_v48 = vpop.f32.mrb[124].mxu0  ;;  %v1222_v44 = vpop.xlane.xlu1 %1221  ;;  %v1936_v37 = vmax.f32 %v1910_v50, 0.0 }
 0x203   : > { %v4687_v57 = vpop.f32.mrb[124].mxu1  ;;  %1253 = vst.msk [vmem:[#allocation2 + $0x40] sm:$0xff] %vm1244_vm2, %v1222_v44  ;;  %v4624_v39 = vpop.f32.mrb[125].mxu0  ;;  %v5423_v44 = vld [vmem:[%s7333_s1 + $0x84] ss:$16 sps:$4 sm:$0xff]  }
 0x204   : > { %v4625_v46 = vadd.f32 %v4624_v39, %v4623_v48  ;;  %v4688_v17 = vpop.f32.mrb[125].mxu1  ;;  %v4626_v59 = vpop.f32.mrb[126].mxu0  ;;  %v1976_v0 = vsel %vm823_vm0, %v1936_v37, 0.0  ;;  %v1937_v43 = vmax.f32 %v1913_v9, 0.0  ;;  %v5422_v9 = vld [vmem:[%s7333_s1 + $0x68] ss:$16 sps:$4 sm:$0xff]  }
 0x205   : > { %v4689_v60 = vadd.f32 %v4688_v17, %v4687_v57  ;;  %v4690_v3 = vpop.f32.mrb[126].mxu1  ;;  %v4627_v4 = vpop.f32.mrb[127].mxu0  ;;  %1977 = vadd.xlane.f32.xlu0 %v1976_v0  ;;  %v5424_v37 = vld [vmem:[%s7333_s1 + $0x8c] ss:$16 sps:$4 sm:$0xff]  }
 0x206   : > { %v1821_v20 = vadd.f32 %v4625_v46, %v6410_v63  ;;  %v4628_v11 = vadd.f32 %v4627_v4, %v4626_v59  ;;  %v4691_v36 = vpop.f32.mrb[127].mxu1  ;;  %v1225_v6 = vpop.xlane.xlu1 %1224  ;;  %v1979_v7 = vsel %vm823_vm0, %v1937_v43, 0.0 }
 0x207   : > { %v4692_v2 = vadd.f32 %v4691_v36, %v4690_v3  ;;  %1254 = vst.msk [vmem:[#allocation2 + $0x48] sm:$0xff] %vm1244_vm2, %v1225_v6  ;;  %3267 = vmatmul.mubr.bf16.gmra.mrb[232].mxu0 %v5417_v22 }
 0x208   : > { %v1918_v53 = vadd.f32 %v4689_v60, %v1821_v20  ;;  %v1824_v40 = vadd.f32 %v4628_v11, %v6413_v19  ;;  %3364 = vmatmul.mubr.bf16.gmra.mrb[232].mxu1 %v5418_v38  ;;  %3274 = vmatprep.mubr.bf16.mxu0 %v5419_v18 }
 0x209   : > { %1980 = vadd.xlane.f32.xlu0 %v1979_v7  ;;  %3371 = vmatprep.mubr.bf16.mxu1 %v5420_v21  ;;  %v5425_v7 = vld [vmem:[%s7333_s1 + $0x80] ss:$16 sps:$4 sm:$0xff]  }
 0x20a   : > { %v1921_v1 = vadd.f32 %v4692_v2, %v1824_v40  ;;  %v4709_v35 = vpop.f32.mrb[128].mxu0  ;;  %v1228_v62 = vpop.xlane.xlu1 %1227  ;;  %v1938_v51 = vmax.f32 %v1918_v53, 0.0 }
 0x20b   : > { %v4773_v28 = vpop.f32.mrb[128].mxu1  ;;  %1255 = vst.msk [vmem:[#allocation2 + $0x50] sm:$0xff] %vm1244_vm2, %v1228_v62  ;;  %v4710_v61 = vpop.f32.mrb[129].mxu0  ;;  %v5427_v62 = vld [vmem:[%s7333_s1 + $0xa4] ss:$16 sps:$4 sm:$0xff]  }
 0x20c   : > { %v4711_v16 = vadd.f32 %v4710_v61, %v4709_v35  ;;  %v4774_v42 = vpop.f32.mrb[129].mxu1  ;;  %v4712_v47 = vpop.f32.mrb[130].mxu0  ;;  %v1982_v54 = vsel %vm823_vm0, %v1938_v51, 0.0  ;;  %v1939_v49 = vmax.f32 %v1921_v1, 0.0  ;;  %v5426_v1 = vld [vmem:[%s7333_s1 + $0x88] ss:$16 sps:$4 sm:$0xff]  }
 0x20d   : > { %v4775_v12 = vadd.f32 %v4774_v42, %v4773_v28  ;;  %v4776_v58 = vpop.f32.mrb[130].mxu1  ;;  %v4713_v23 = vpop.f32.mrb[131].mxu0  ;;  %1983 = vadd.xlane.f32.xlu0 %v1982_v54  ;;  %v5428_v51 = vld [vmem:[%s7333_s1 + $0xac] ss:$16 sps:$4 sm:$0xff]  }
 0x20e   : > { %v2137_v10 = vadd.f32 %v4711_v16, %v6159_v5  ;;  %v4714_v13 = vadd.f32 %v4713_v23, %v4712_v47  ;;  %v4777_v50 = vpop.f32.mrb[131].mxu1  ;;  %v1231_v45 = vpop.xlane.xlu1 %1230  ;;  %v1985_v48 = vsel %vm823_vm0, %v1939_v49, 0.0 }
 0x20f   : > { %v4778_v31 = vadd.f32 %v4777_v50, %v4776_v58  ;;  %1256 = vst.msk [vmem:[#allocation2 + $0x58] sm:$0xff] %vm1244_vm2, %v1231_v45  ;;  %3275 = vmatmul.mubr.bf16.gmra.mrb[236].mxu0 %v5421_v8 }
 0x210   : > { %v2234_v52 = vadd.f32 %v4775_v12, %v2137_v10  ;;  %v2140_v34 = vadd.f32 %v4714_v13, %v6198_v41  ;;  %3372 = vmatmul.mubr.bf16.gmra.mrb[236].mxu1 %v5422_v9  ;;  %3282 = vmatprep.mubr.bf16.mxu0 %v5423_v44 }
 0x211   : > { %1986 = vadd.xlane.f32.xlu0 %v1985_v48  ;;  %3379 = vmatprep.mubr.bf16.mxu1 %v5424_v37  ;;  %v5429_v48 = vld [vmem:[%s7333_s1 + $0xa0] ss:$16 sps:$4 sm:$0xff]  }
 0x212   : > { %v2237_v57 = vadd.f32 %v4778_v31, %v2140_v34  ;;  %v4715_v39 = vpop.f32.mrb[132].mxu0  ;;  %v1234_v46 = vpop.xlane.xlu1 %1233  ;;  %v2296_v17 = vmax.f32 %v2234_v52, 0.0 }
 0x213   : > { %v4779_v59 = vpop.f32.mrb[132].mxu1  ;;  %1257 = vst.msk [vmem:[#allocation2 + $0x60] sm:$0xff] %vm1244_vm2, %v1234_v46  ;;  %v4716_v0 = vpop.f32.mrb[133].mxu0  ;;  %v5431_v46 = vld [vmem:[%s7333_s1 + $0xc4] ss:$16 sps:$4 sm:$0xff]  }
 0x214   : > { %v4717_v43 = vadd.f32 %v4716_v0, %v4715_v39  ;;  %v4780_v60 = vpop.f32.mrb[133].mxu1  ;;  %v4718_v3 = vpop.f32.mrb[134].mxu0  ;;  %v2312_v4 = vsel %vm823_vm0, %v2296_v17, 0.0  ;;  %v2297_v20 = vmax.f32 %v2237_v57, 0.0  ;;  %v5430_v57 = vld [vmem:[%s7333_s1 + $0xa8] ss:$16 sps:$4 sm:$0xff]  }
 0x215   : > { %v4781_v11 = vadd.f32 %v4780_v60, %v4779_v59  ;;  %v4782_v36 = vpop.f32.mrb[134].mxu1  ;;  %v4719_v6 = vpop.f32.mrb[135].mxu0  ;;  %2313 = vadd.xlane.f32.xlu1 %v2312_v4  ;;  %v5432_v17 = vld [vmem:[%s7333_s1 + $0xcc] ss:$16 sps:$4 sm:$0xff]  }
 0x216   : > { %v2145_v2 = vadd.f32 %v4717_v43, %v6195_v15  ;;  %v4720_v22 = vadd.f32 %v4719_v6, %v4718_v3  ;;  %v4783_v53 = vpop.f32.mrb[135].mxu1  ;;  %v1237_v40 = vpop.xlane.xlu1 %1236  ;;  %v2315_v35 = vsel %vm823_vm0, %v2297_v20, 0.0 }
 0x217   : > { %v4784_v38 = vadd.f32 %v4783_v53, %v4782_v36  ;;  %1258 = vst.msk [vmem:[#allocation2 + $0x68] sm:$0xff] %vm1244_vm2, %v1237_v40  ;;  %3283 = vmatmul.mubr.bf16.gmra.mrb[240].mxu0 %v5425_v7 }
 0x218   : > { %v2242_v18 = vadd.f32 %v4781_v11, %v2145_v2  ;;  %v2148_v21 = vadd.f32 %v4720_v22, %v6241_v30  ;;  %3380 = vmatmul.mubr.bf16.gmra.mrb[240].mxu1 %v5426_v1  ;;  %3290 = vmatprep.mubr.bf16.mxu0 %v5427_v62 }
 0x219   : > { %2316 = vadd.xlane.f32.xlu1 %v2315_v35  ;;  %3387 = vmatprep.mubr.bf16.mxu1 %v5428_v51  ;;  %v5433_v35 = vld [vmem:[%s7333_s1 + $0xc0] ss:$16 sps:$4 sm:$0xff]  }
 0x21a   : > { %v2245_v28 = vadd.f32 %v4784_v38, %v2148_v21  ;;  %v4721_v61 = vpop.f32.mrb[136].mxu0  ;;  %v1240_v16 = vpop.xlane.xlu1 %1239  ;;  %v2298_v42 = vmax.f32 %v2242_v18, 0.0 }
 0x21b   : > { %v4785_v47 = vpop.f32.mrb[136].mxu1  ;;  %1259 = vst.msk [vmem:[#allocation2 + $0x70] sm:$0xff] %vm1244_vm2, %v1240_v16  ;;  %v4722_v54 = vpop.f32.mrb[137].mxu0  ;;  %v5435_v16 = vld [vmem:[%s7333_s1 + $0xe4] ss:$16 sps:$4 sm:$0xff]  }
 0x21c   : > { %v4723_v49 = vadd.f32 %v4722_v54, %v4721_v61  ;;  %v4786_v12 = vpop.f32.mrb[137].mxu1  ;;  %v4724_v58 = vpop.f32.mrb[138].mxu0  ;;  %v2318_v23 = vsel %vm823_vm0, %v2298_v42, 0.0  ;;  %v2299_v10 = vmax.f32 %v2245_v28, 0.0  ;;  %v5434_v28 = vld [vmem:[%s7333_s1 + $0xc8] ss:$16 sps:$4 sm:$0xff]  }
 0x21d   : > { %v4787_v13 = vadd.f32 %v4786_v12, %v4785_v47  ;;  %v4788_v50 = vpop.f32.mrb[138].mxu1  ;;  %v4725_v45 = vpop.f32.mrb[139].mxu0  ;;  %2319 = vadd.xlane.f32.xlu1 %v2318_v23  ;;  %v5436_v42 = vld [vmem:[%s7333_s1 + $0xec] ss:$16 sps:$4 sm:$0xff]  }
 0x21e   : > { %v2153_v31 = vadd.f32 %v4723_v49, %v6265_v26  ;;  %v4726_v8 = vadd.f32 %v4725_v45, %v4724_v58  ;;  %v4789_v52 = vpop.f32.mrb[139].mxu1  ;;  %v1243_v34 = vpop.xlane.xlu1 %1242  ;;  %v2321_v39 = vsel %vm823_vm0, %v2299_v10, 0.0 }
 0x21f   : > { %v4790_v9 = vadd.f32 %v4789_v52, %v4788_v50  ;;  %1260 = vst.msk [vmem:[#allocation2 + $0x78] sm:$0xff] %vm1244_vm2, %v1243_v34  ;;  %3291 = vmatmul.mubr.bf16.gmra.mrb[244].mxu0 %v5429_v48 }
 0x220   : > { %v2250_v44 = vadd.f32 %v4787_v13, %v2153_v31  ;;  %v2156_v37 = vadd.f32 %v4726_v8, %v6273_v27  ;;  %3388 = vmatmul.mubr.bf16.gmra.mrb[244].mxu1 %v5430_v57  ;;  %3298 = vmatprep.mubr.bf16.mxu0 %v5431_v46 }
 0x221   : > { %2322 = vadd.xlane.f32.xlu1 %v2321_v39  ;;  %3395 = vmatprep.mubr.bf16.mxu1 %v5432_v17  ;;  %v5437_v39 = vld [vmem:[%s7333_s1 + $0xe0] ss:$16 sps:$4 sm:$0xff]  }
 0x222   : > { %v2253_v59 = vadd.f32 %v4790_v9, %v2156_v37  ;;  %v4727_v0 = vpop.f32.mrb[140].mxu0  ;;  %v1570_v43 = vpop.xlane.xlu0 %1569  ;;  %v2300_v60 = vmax.f32 %v2250_v44, 0.0 }
 0x223   : > { %v4791_v3 = vpop.f32.mrb[140].mxu1  ;;  %1617 = vst.msk [vmem:[#allocation2] sm:$0xff] %vm1616_vm3, %v1570_v43  ;;  %v4728_v4 = vpop.f32.mrb[141].mxu0 }
 0x224   : > { %v4729_v20 = vadd.f32 %v4728_v4, %v4727_v0  ;;  %v4792_v11 = vpop.f32.mrb[141].mxu1  ;;  %v4730_v36 = vpop.f32.mrb[142].mxu0  ;;  %v2324_v6 = vsel %vm823_vm0, %v2300_v60, 0.0  ;;  %v2301_v2 = vmax.f32 %v2253_v59, 0.0  ;;  %v5438_v59 = vld [vmem:[%s7333_s1 + $0xe8] ss:$16 sps:$4 sm:$0xff]  }
 0x225   : > { %v4793_v22 = vadd.f32 %v4792_v11, %v4791_v3  ;;  %v4794_v53 = vpop.f32.mrb[142].mxu1  ;;  %v4731_v40 = vpop.f32.mrb[143].mxu0  ;;  %2325 = vadd.xlane.f32.xlu1 %v2324_v6 }
 0x226   : > { %v2161_v38 = vadd.f32 %v4729_v20, %v7381_v24  ;;  %v4732_v7 = vadd.f32 %v4731_v40, %v4730_v36  ;;  %v4795_v18 = vpop.f32.mrb[143].mxu1  ;;  %v1573_v21 = vpop.xlane.xlu0 %1572  ;;  %v2327_v61 = vsel %vm823_vm0, %v2301_v2, 0.0 }
 0x227   : > { %v4796_v1 = vadd.f32 %v4795_v18, %v4794_v53  ;;  %1618 = vst.msk [vmem:[#allocation2 + $0x8] sm:$0xff] %vm1616_vm3, %v1573_v21  ;;  %3299 = vmatmul.mubr.bf16.gmra.mrb[248].mxu0 %v5433_v35 }
 0x228   : > { %v2258_v62 = vadd.f32 %v4793_v22, %v2161_v38  ;;  %v2164_v51 = vadd.f32 %v4732_v7, %v7383_v14  ;;  %3396 = vmatmul.mubr.bf16.gmra.mrb[248].mxu1 %v5434_v28  ;;  %3306 = vmatprep.mubr.bf16.mxu0 %v5435_v16 }
 0x229   : > { %2328 = vadd.xlane.f32.xlu1 %v2327_v61  ;;  %3403 = vmatprep.mubr.bf16.mxu1 %v5436_v42 }
 0x22a   : > { %v2261_v47 = vadd.f32 %v4796_v1, %v2164_v51  ;;  %v4733_v54 = vpop.f32.mrb[144].mxu0  ;;  %v1576_v49 = vpop.xlane.xlu0 %1575  ;;  %v2302_v12 = vmax.f32 %v2258_v62, 0.0 }
 0x22b   : > { %v4797_v58 = vpop.f32.mrb[144].mxu1  ;;  %1619 = vst.msk [vmem:[#allocation2 + $0x10] sm:$0xff] %vm1616_vm3, %v1576_v49  ;;  %v4734_v23 = vpop.f32.mrb[145].mxu0 }
 0x22c   : > { %v4735_v10 = vadd.f32 %v4734_v23, %v4733_v54  ;;  %v4798_v13 = vpop.f32.mrb[145].mxu1  ;;  %v4736_v50 = vpop.f32.mrb[146].mxu0  ;;  %v2330_v45 = vsel %vm823_vm0, %v2302_v12, 0.0  ;;  %v2303_v31 = vmax.f32 %v2261_v47, 0.0 }
 0x22d   : > { %v4799_v8 = vadd.f32 %v4798_v13, %v4797_v58  ;;  %v4800_v52 = vpop.f32.mrb[146].mxu1  ;;  %v4737_v34 = vpop.f32.mrb[147].mxu0  ;;  %2331 = vadd.xlane.f32.xlu1 %v2330_v45 }
 0x22e   : > { %v2169_v9 = vadd.f32 %v4735_v10, %v7387_v25  ;;  %v4738_v48 = vadd.f32 %v4737_v34, %v4736_v50  ;;  %v4801_v44 = vpop.f32.mrb[147].mxu1  ;;  %v1579_v37 = vpop.xlane.xlu0 %1578  ;;  %v2333_v0 = vsel %vm823_vm0, %v2303_v31, 0.0 }
 0x22f   : > { %v4802_v57 = vadd.f32 %v4801_v44, %v4800_v52  ;;  %1620 = vst.msk [vmem:[#allocation2 + $0x18] sm:$0xff] %vm1616_vm3, %v1579_v37  ;;  %3307 = vmatmul.mubr.bf16.gmra.mrb[252].mxu0 %v5437_v39 }
 0x230   : > { %v2266_v46 = vadd.f32 %v4799_v8, %v2169_v9  ;;  %v2172_v17 = vadd.f32 %v4738_v48, %v7390_v33  ;;  %3404 = vmatmul.mubr.bf16.gmra.mrb[252].mxu1 %v5438_v59 }
 0x231   : > { %2334 = vadd.xlane.f32.xlu1 %v2333_v0 }
 0x232   : > { %v2269_v43 = vadd.f32 %v4802_v57, %v2172_v17  ;;  %v4739_v60 = vpop.f32.mrb[148].mxu0  ;;  %v1582_v3 = vpop.xlane.xlu0 %1581  ;;  %v2304_v4 = vmax.f32 %v2266_v46, 0.0 }
 0x233   : > { %v4803_v20 = vpop.f32.mrb[148].mxu1  ;;  %1621 = vst.msk [vmem:[#allocation2 + $0x20] sm:$0xff] %vm1616_vm3, %v1582_v3  ;;  %v4740_v11 = vpop.f32.mrb[149].mxu0 }
 0x234   : > { %v4741_v36 = vadd.f32 %v4740_v11, %v4739_v60  ;;  %v4804_v6 = vpop.f32.mrb[149].mxu1  ;;  %v4742_v2 = vpop.f32.mrb[150].mxu0  ;;  %v2336_v22 = vsel %vm823_vm0, %v2304_v4, 0.0  ;;  %v2305_v53 = vmax.f32 %v2269_v43, 0.0 }
 0x235   : > { %v4805_v40 = vadd.f32 %v4804_v6, %v4803_v20  ;;  %v4806_v38 = vpop.f32.mrb[150].mxu1  ;;  %v4743_v7 = vpop.f32.mrb[151].mxu0  ;;  %2337 = vadd.xlane.f32.xlu1 %v2336_v22 }
 0x236   : > { %v2177_v18 = vadd.f32 %v4741_v36, %v6356_v56  ;;  %v4744_v21 = vadd.f32 %v4743_v7, %v4742_v2  ;;  %v4807_v1 = vpop.f32.mrb[151].mxu1  ;;  %v1585_v35 = vpop.xlane.xlu0 %1584  ;;  %v2339_v61 = vsel %vm823_vm0, %v2305_v53, 0.0 }
 0x237   : > { %v4808_v62 = vadd.f32 %v4807_v1, %v4806_v38  ;;  %1622 = vst.msk [vmem:[#allocation2 + $0x28] sm:$0xff] %vm1616_vm3, %v1585_v35 }
 0x238   : > { %v2274_v51 = vadd.f32 %v4805_v40, %v2177_v18  ;;  %v2180_v28 = vadd.f32 %v4744_v21, %v6361_v55 }
 0x239   : > { %2340 = vadd.xlane.f32.xlu1 %v2339_v61 }
 0x23a   : > { %v2306_v16 = vmax.f32 %v2274_v51, 0.0  ;;  %v2277_v42 = vadd.f32 %v4808_v62, %v2180_v28  ;;  %v4745_v47 = vpop.f32.mrb[152].mxu0  ;;  %v1588_v54 = vpop.xlane.xlu0 %1587 }
 0x23b   : > { %v4809_v49 = vpop.f32.mrb[152].mxu1  ;;  %1623 = vst.msk [vmem:[#allocation2 + $0x30] sm:$0xff] %vm1616_vm3, %v1588_v54  ;;  %v4746_v12 = vpop.f32.mrb[153].mxu0 }
 0x23c   : > { %v2307_v58 = vmax.f32 %v2277_v42, 0.0  ;;  %v4747_v23 = vadd.f32 %v4746_v12, %v4745_v47  ;;  %v4810_v10 = vpop.f32.mrb[153].mxu1  ;;  %v4748_v13 = vpop.f32.mrb[154].mxu0  ;;  %v2342_v50 = vsel %vm823_vm0, %v2306_v16, 0.0 }
 0x23d   : > { %v4811_v45 = vadd.f32 %v4810_v10, %v4809_v49  ;;  %v4812_v31 = vpop.f32.mrb[154].mxu1  ;;  %v4749_v8 = vpop.f32.mrb[155].mxu0  ;;  %2343 = vadd.xlane.f32.xlu1 %v2342_v50 }
 0x23e   : > { %v2185_v52 = vadd.f32 %v4747_v23, %v6383_v29  ;;  %v4750_v34 = vadd.f32 %v4749_v8, %v4748_v13  ;;  %v4813_v9 = vpop.f32.mrb[155].mxu1  ;;  %v1591_v48 = vpop.xlane.xlu0 %1590  ;;  %v2345_v39 = vsel %vm823_vm0, %v2307_v58, 0.0 }
 0x23f   : > { %v4814_v44 = vadd.f32 %v4813_v9, %v4812_v31  ;;  %1624 = vst.msk [vmem:[#allocation2 + $0x38] sm:$0xff] %vm1616_vm3, %v1591_v48 }
 0x240   : > { %v2282_v37 = vadd.f32 %v4811_v45, %v2185_v52  ;;  %v2188_v57 = vadd.f32 %v4750_v34, %v6387_v32 }
 0x241   : > { %2346 = vadd.xlane.f32.xlu1 %v2345_v39 }
 0x242   : > { %v2308_v46 = vmax.f32 %v2282_v37, 0.0  ;;  %v2285_v17 = vadd.f32 %v4814_v44, %v2188_v57  ;;  %v4751_v59 = vpop.f32.mrb[156].mxu0  ;;  %v1594_v0 = vpop.xlane.xlu0 %1593 }
 0x243   : > { %v4815_v43 = vpop.f32.mrb[156].mxu1  ;;  %1625 = vst.msk [vmem:[#allocation2 + $0x40] sm:$0xff] %vm1616_vm3, %v1594_v0  ;;  %v4752_v60 = vpop.f32.mrb[157].mxu0 }
 0x244   : > { %v2309_v3 = vmax.f32 %v2285_v17, 0.0  ;;  %v4753_v4 = vadd.f32 %v4752_v60, %v4751_v59  ;;  %v4816_v20 = vpop.f32.mrb[157].mxu1  ;;  %v4754_v11 = vpop.f32.mrb[158].mxu0  ;;  %v2348_v36 = vsel %vm823_vm0, %v2308_v46, 0.0 }
 0x245   : > { %v4817_v6 = vadd.f32 %v4816_v20, %v4815_v43  ;;  %v4818_v2 = vpop.f32.mrb[158].mxu1  ;;  %v4755_v22 = vpop.f32.mrb[159].mxu0  ;;  %2349 = vadd.xlane.f32.xlu1 %v2348_v36 }
 0x246   : > { %v2193_v53 = vadd.f32 %v4753_v4, %v6410_v63  ;;  %v4756_v40 = vadd.f32 %v4755_v22, %v4754_v11  ;;  %v4819_v38 = vpop.f32.mrb[159].mxu1  ;;  %v1597_v7 = vpop.xlane.xlu0 %1596  ;;  %v2351_v35 = vsel %vm823_vm0, %v2309_v3, 0.0 }
 0x247   : > { %v4820_v18 = vadd.f32 %v4819_v38, %v4818_v2  ;;  %1626 = vst.msk [vmem:[#allocation2 + $0x48] sm:$0xff] %vm1616_vm3, %v1597_v7 }
 0x248   : > { %v2290_v21 = vadd.f32 %v4817_v6, %v2193_v53  ;;  %v2196_v1 = vadd.f32 %v4756_v40, %v6413_v19 }
 0x249   : > { %2352 = vadd.xlane.f32.xlu1 %v2351_v35 }
 0x24a   : > { %v2293_v62 = vadd.f32 %v4820_v18, %v2196_v1  ;;  %v4837_v51 = vpop.f32.mrb[160].mxu0  ;;  %v1600_v28 = vpop.xlane.xlu0 %1599  ;;  %v2310_v61 = vmax.f32 %v2290_v21, 0.0 }
 0x24b   : > { %v4901_v16 = vpop.f32.mrb[160].mxu1  ;;  %1627 = vst.msk [vmem:[#allocation2 + $0x50] sm:$0xff] %vm1616_vm3, %v1600_v28  ;;  %v4838_v42 = vpop.f32.mrb[161].mxu0 }
 0x24c   : > { %v2311_v47 = vmax.f32 %v2293_v62, 0.0  ;;  %v4839_v54 = vadd.f32 %v4838_v42, %v4837_v51  ;;  %v4902_v49 = vpop.f32.mrb[161].mxu1  ;;  %v4840_v12 = vpop.f32.mrb[162].mxu0  ;;  %v2354_v58 = vsel %vm823_vm0, %v2310_v61, 0.0 }
 0x24d   : > { %v4903_v23 = vadd.f32 %v4902_v49, %v4901_v16  ;;  %v4904_v10 = vpop.f32.mrb[162].mxu1  ;;  %v4841_v13 = vpop.f32.mrb[163].mxu0  ;;  %2355 = vadd.xlane.f32.xlu0 %v2354_v58 }
 0x24e   : > { %v2509_v50 = vadd.f32 %v4839_v54, %v6159_v5  ;;  %v4842_v45 = vadd.f32 %v4841_v13, %v4840_v12  ;;  %v4905_v31 = vpop.f32.mrb[163].mxu1  ;;  %v1603_v8 = vpop.xlane.xlu0 %1602  ;;  %v2357_v52 = vsel %vm823_vm0, %v2311_v47, 0.0 }
 0x24f   : > { %v4906_v34 = vadd.f32 %v4905_v31, %v4904_v10  ;;  %1628 = vst.msk [vmem:[#allocation2 + $0x58] sm:$0xff] %vm1616_vm3, %v1603_v8  ;;  %2358 = vadd.xlane.f32.xlu1 %v2357_v52 }
 0x250   : > { %v2606_v9 = vadd.f32 %v4903_v23, %v2509_v50  ;;  %v2512_v48 = vadd.f32 %v4842_v45, %v6198_v41 }
 0x252   : > { %v2609_v44 = vadd.f32 %v4906_v34, %v2512_v48  ;;  %v4843_v37 = vpop.f32.mrb[164].mxu0  ;;  %v1606_v57 = vpop.xlane.xlu0 %1605  ;;  %v2668_v39 = vmax.f32 %v2606_v9, 0.0 }
 0x253   : > { %v4907_v46 = vpop.f32.mrb[164].mxu1  ;;  %1629 = vst.msk [vmem:[#allocation2 + $0x60] sm:$0xff] %vm1616_vm3, %v1606_v57  ;;  %v4844_v17 = vpop.f32.mrb[165].mxu0 }
 0x254   : > { %v2669_v59 = vmax.f32 %v2609_v44, 0.0  ;;  %v4845_v0 = vadd.f32 %v4844_v17, %v4843_v37  ;;  %v4908_v43 = vpop.f32.mrb[165].mxu1  ;;  %v4846_v60 = vpop.f32.mrb[166].mxu0  ;;  %v2684_v3 = vsel %vm823_vm0, %v2668_v39, 0.0 }
 0x255   : > { %v4909_v4 = vadd.f32 %v4908_v43, %v4907_v46  ;;  %v4910_v20 = vpop.f32.mrb[166].mxu1  ;;  %v4847_v11 = vpop.f32.mrb[167].mxu0  ;;  %2685 = vadd.xlane.f32.xlu0 %v2684_v3 }
 0x256   : > { %v2517_v36 = vadd.f32 %v4845_v0, %v6195_v15  ;;  %v4848_v6 = vadd.f32 %v4847_v11, %v4846_v60  ;;  %v4911_v2 = vpop.f32.mrb[167].mxu1  ;;  %v1609_v22 = vpop.xlane.xlu0 %1608  ;;  %v2687_v53 = vsel %vm823_vm0, %v2669_v59, 0.0 }
 0x257   : > { %v4912_v40 = vadd.f32 %v4911_v2, %v4910_v20  ;;  %1630 = vst.msk [vmem:[#allocation2 + $0x68] sm:$0xff] %vm1616_vm3, %v1609_v22  ;;  %2688 = vadd.xlane.f32.xlu1 %v2687_v53 }
 0x258   : > { %v2614_v38 = vadd.f32 %v4909_v4, %v2517_v36  ;;  %v2520_v7 = vadd.f32 %v4848_v6, %v6241_v30 }
 0x25a   : > { %v2670_v18 = vmax.f32 %v2614_v38, 0.0  ;;  %v2617_v21 = vadd.f32 %v4912_v40, %v2520_v7  ;;  %v4849_v1 = vpop.f32.mrb[168].mxu0  ;;  %v1612_v35 = vpop.xlane.xlu0 %1611 }
 0x25b   : > { %v4913_v62 = vpop.f32.mrb[168].mxu1  ;;  %1631 = vst.msk [vmem:[#allocation2 + $0x70] sm:$0xff] %vm1616_vm3, %v1612_v35  ;;  %v4850_v51 = vpop.f32.mrb[169].mxu0 }
 0x25c   : > { %v2671_v28 = vmax.f32 %v2617_v21, 0.0  ;;  %v4851_v61 = vadd.f32 %v4850_v51, %v4849_v1  ;;  %v4914_v16 = vpop.f32.mrb[169].mxu1  ;;  %v4852_v42 = vpop.f32.mrb[170].mxu0  ;;  %v2690_v47 = vsel %vm823_vm0, %v2670_v18, 0.0 }
 0x25d   : > { %v4915_v54 = vadd.f32 %v4914_v16, %v4913_v62  ;;  %v4916_v49 = vpop.f32.mrb[170].mxu1  ;;  %v1615_v12 = vpop.xlane.xlu1 %1614  ;;  %2691 = vadd.xlane.f32.xlu1 %v2690_v47 }
 0x25e   : > { %v2525_v58 = vadd.f32 %v4851_v61, %v6265_v26  ;;  %1632 = vst.msk [vmem:[#allocation2 + $0x78] sm:$0xff] %vm1616_vm3, %v1615_v12  ;;  %v4853_v23 = vpop.f32.mrb[171].mxu0  ;;  %v4917_v10 = vpop.f32.mrb[171].mxu1  ;;  %v2693_v31 = vsel %vm823_vm0, %v2671_v28, 0.0 }
 0x25f   : > { %v4854_v13 = vadd.f32 %v4853_v23, %v4852_v42  ;;  %v4918_v50 = vadd.f32 %v4917_v10, %v4916_v49 }
 0x260   : > { %v2622_v45 = vadd.f32 %v4915_v54, %v2525_v58 }
 0x261   : > { %v2528_v8 = vadd.f32 %v4854_v13, %v6273_v27  ;;  %2694 = vadd.xlane.f32.xlu1 %v2693_v31 }
 0x262   : > { %v2672_v52 = vmax.f32 %v2622_v45, 0.0  ;;  %v4855_v34 = vpop.f32.mrb[172].mxu0  ;;  %v1942_v9 = vpop.xlane.xlu0 %1941 }
 0x263   : > { %v2625_v48 = vadd.f32 %v4918_v50, %v2528_v8  ;;  %v4919_v44 = vpop.f32.mrb[172].mxu1  ;;  %1989 = vst.msk [vmem:[#allocation2] sm:$0xff] %vm1988_vm4, %v1942_v9  ;;  %v4856_v37 = vpop.f32.mrb[173].mxu0 }
 0x264   : > { %v4857_v57 = vadd.f32 %v4856_v37, %v4855_v34  ;;  %v4920_v39 = vpop.f32.mrb[173].mxu1  ;;  %v4858_v46 = vpop.f32.mrb[174].mxu0  ;;  %v2696_v17 = vsel %vm823_vm0, %v2672_v52, 0.0 }
 0x265   : > { %v2673_v59 = vmax.f32 %v2625_v48, 0.0  ;;  %v4921_v0 = vadd.f32 %v4920_v39, %v4919_v44  ;;  %v4922_v43 = vpop.f32.mrb[174].mxu1  ;;  %v1945_v60 = vpop.xlane.xlu1 %1944  ;;  %2697 = vadd.xlane.f32.xlu1 %v2696_v17 }
 0x266   : > { %v2533_v3 = vadd.f32 %v4857_v57, %v7381_v24  ;;  %1990 = vst.msk [vmem:[#allocation2 + $0x8] sm:$0xff] %vm1988_vm4, %v1945_v60  ;;  %v4859_v4 = vpop.f32.mrb[175].mxu0  ;;  %v4923_v20 = vpop.f32.mrb[175].mxu1 }
 0x267   : > { %v4860_v11 = vadd.f32 %v4859_v4, %v4858_v46  ;;  %v4924_v36 = vadd.f32 %v4923_v20, %v4922_v43  ;;  %v2699_v2 = vsel %vm823_vm0, %v2673_v59, 0.0 }
 0x268   : > { %v2630_v6 = vadd.f32 %v4921_v0, %v2533_v3 }
 0x269   : > { %v2536_v22 = vadd.f32 %v4860_v11, %v7383_v14  ;;  %2700 = vadd.xlane.f32.xlu1 %v2699_v2 }
 0x26a   : > { %v2674_v53 = vmax.f32 %v2630_v6, 0.0  ;;  %v4861_v40 = vpop.f32.mrb[176].mxu0  ;;  %v1948_v38 = vpop.xlane.xlu0 %1947 }
 0x26b   : > { %v2633_v7 = vadd.f32 %v4924_v36, %v2536_v22  ;;  %v4925_v18 = vpop.f32.mrb[176].mxu1  ;;  %1991 = vst.msk [vmem:[#allocation2 + $0x10] sm:$0xff] %vm1988_vm4, %v1948_v38  ;;  %v4862_v21 = vpop.f32.mrb[177].mxu0 }
 0x26c   : > { %v4863_v1 = vadd.f32 %v4862_v21, %v4861_v40  ;;  %v4926_v35 = vpop.f32.mrb[177].mxu1  ;;  %v4864_v62 = vpop.f32.mrb[178].mxu0  ;;  %v2702_v51 = vsel %vm823_vm0, %v2674_v53, 0.0 }
 0x26d   : > { %v2675_v28 = vmax.f32 %v2633_v7, 0.0  ;;  %v4927_v61 = vadd.f32 %v4926_v35, %v4925_v18  ;;  %v4928_v16 = vpop.f32.mrb[178].mxu1  ;;  %v4865_v42 = vpop.f32.mrb[179].mxu0  ;;  %2703 = vadd.xlane.f32.xlu1 %v2702_v51 }
 0x26e   : > { %v2541_v47 = vadd.f32 %v4863_v1, %v7387_v25  ;;  %v4866_v54 = vadd.f32 %v4865_v42, %v4864_v62  ;;  %v4929_v49 = vpop.f32.mrb[179].mxu1  ;;  %v1951_v12 = vpop.xlane.xlu0 %1950 }
 0x26f   : > { %v4930_v58 = vadd.f32 %v4929_v49, %v4928_v16  ;;  %1992 = vst.msk [vmem:[#allocation2 + $0x18] sm:$0xff] %vm1988_vm4, %v1951_v12  ;;  %v2705_v13 = vsel %vm823_vm0, %v2675_v28, 0.0 }
 0x270   : > { %v2638_v23 = vadd.f32 %v4927_v61, %v2541_v47  ;;  %v2544_v10 = vadd.f32 %v4866_v54, %v7390_v33 }
 0x271   : > { %2706 = vadd.xlane.f32.xlu1 %v2705_v13 }
 0x272   : > { %v2676_v50 = vmax.f32 %v2638_v23, 0.0  ;;  %v2641_v45 = vadd.f32 %v4930_v58, %v2544_v10  ;;  %v4867_v31 = vpop.f32.mrb[180].mxu0  ;;  %v1954_v8 = vpop.xlane.xlu0 %1953 }
 0x273   : > { %v4931_v52 = vpop.f32.mrb[180].mxu1  ;;  %1993 = vst.msk [vmem:[#allocation2 + $0x20] sm:$0xff] %vm1988_vm4, %v1954_v8  ;;  %v4868_v34 = vpop.f32.mrb[181].mxu0 }
 0x274   : > { %v2677_v9 = vmax.f32 %v2641_v45, 0.0  ;;  %v4869_v48 = vadd.f32 %v4868_v34, %v4867_v31  ;;  %v4932_v44 = vpop.f32.mrb[181].mxu1  ;;  %v4870_v37 = vpop.f32.mrb[182].mxu0  ;;  %v2708_v57 = vsel %vm823_vm0, %v2676_v50, 0.0 }
 0x275   : > { %v4933_v39 = vadd.f32 %v4932_v44, %v4931_v52  ;;  %v4934_v46 = vpop.f32.mrb[182].mxu1  ;;  %v4871_v17 = vpop.f32.mrb[183].mxu0  ;;  %2709 = vadd.xlane.f32.xlu1 %v2708_v57 }
 0x276   : > { %v2549_v59 = vadd.f32 %v4869_v48, %v6356_v56  ;;  %v4872_v0 = vadd.f32 %v4871_v17, %v4870_v37  ;;  %v4935_v43 = vpop.f32.mrb[183].mxu1  ;;  %v1957_v60 = vpop.xlane.xlu0 %1956  ;;  %v2711_v11 = vsel %vm823_vm0, %v2677_v9, 0.0 }
 0x277   : > { %v4936_v3 = vadd.f32 %v4935_v43, %v4934_v46  ;;  %1994 = vst.msk [vmem:[#allocation2 + $0x28] sm:$0xff] %vm1988_vm4, %v1957_v60 }
 0x278   : > { %v2646_v4 = vadd.f32 %v4933_v39, %v2549_v59  ;;  %v2552_v20 = vadd.f32 %v4872_v0, %v6361_v55 }
 0x279   : > { %2712 = vadd.xlane.f32.xlu1 %v2711_v11 }
 0x27a   : > { %v2678_v36 = vmax.f32 %v2646_v4, 0.0  ;;  %v2649_v6 = vadd.f32 %v4936_v3, %v2552_v20  ;;  %v4873_v2 = vpop.f32.mrb[184].mxu0  ;;  %v1960_v22 = vpop.xlane.xlu0 %1959 }
 0x27b   : > { %v4937_v53 = vpop.f32.mrb[184].mxu1  ;;  %1995 = vst.msk [vmem:[#allocation2 + $0x30] sm:$0xff] %vm1988_vm4, %v1960_v22  ;;  %v4874_v40 = vpop.f32.mrb[185].mxu0 }
 0x27c   : > { %v2679_v38 = vmax.f32 %v2649_v6, 0.0  ;;  %v4875_v7 = vadd.f32 %v4874_v40, %v4873_v2  ;;  %v4938_v18 = vpop.f32.mrb[185].mxu1  ;;  %v4876_v21 = vpop.f32.mrb[186].mxu0  ;;  %v2714_v1 = vsel %vm823_vm0, %v2678_v36, 0.0 }
 0x27d   : > { %v4939_v35 = vadd.f32 %v4938_v18, %v4937_v53  ;;  %v4940_v62 = vpop.f32.mrb[186].mxu1  ;;  %v4877_v51 = vpop.f32.mrb[187].mxu0  ;;  %2715 = vadd.xlane.f32.xlu1 %v2714_v1 }
 0x27e   : > { %v2557_v28 = vadd.f32 %v4875_v7, %v6383_v29  ;;  %v4878_v61 = vadd.f32 %v4877_v51, %v4876_v21  ;;  %v4941_v16 = vpop.f32.mrb[187].mxu1  ;;  %v1963_v42 = vpop.xlane.xlu0 %1962  ;;  %v2717_v12 = vsel %vm823_vm0, %v2679_v38, 0.0 }
 0x27f   : > { %v4942_v47 = vadd.f32 %v4941_v16, %v4940_v62  ;;  %1996 = vst.msk [vmem:[#allocation2 + $0x38] sm:$0xff] %vm1988_vm4, %v1963_v42 }
 0x280   : > { %v2654_v54 = vadd.f32 %v4939_v35, %v2557_v28  ;;  %v2560_v49 = vadd.f32 %v4878_v61, %v6387_v32 }
 0x281   : > { %2718 = vadd.xlane.f32.xlu1 %v2717_v12 }
 0x282   : > { %v2680_v58 = vmax.f32 %v2654_v54, 0.0  ;;  %v2657_v23 = vadd.f32 %v4942_v47, %v2560_v49  ;;  %v4879_v10 = vpop.f32.mrb[188].mxu0  ;;  %v1966_v13 = vpop.xlane.xlu0 %1965 }
 0x283   : > { %v4943_v50 = vpop.f32.mrb[188].mxu1  ;;  %1997 = vst.msk [vmem:[#allocation2 + $0x40] sm:$0xff] %vm1988_vm4, %v1966_v13  ;;  %v4880_v45 = vpop.f32.mrb[189].mxu0 }
 0x284   : > { %v2681_v31 = vmax.f32 %v2657_v23, 0.0  ;;  %v4881_v8 = vadd.f32 %v4880_v45, %v4879_v10  ;;  %v4944_v52 = vpop.f32.mrb[189].mxu1  ;;  %v4882_v34 = vpop.f32.mrb[190].mxu0  ;;  %v2720_v9 = vsel %vm823_vm0, %v2680_v58, 0.0 }
 0x285   : > { %v4945_v48 = vadd.f32 %v4944_v52, %v4943_v50  ;;  %v4946_v44 = vpop.f32.mrb[190].mxu1  ;;  %v4883_v37 = vpop.f32.mrb[191].mxu0  ;;  %2721 = vadd.xlane.f32.xlu1 %v2720_v9 }
 0x286   : > { %v2565_v57 = vadd.f32 %v4881_v8, %v6410_v63  ;;  %v4884_v39 = vadd.f32 %v4883_v37, %v4882_v34  ;;  %v4947_v46 = vpop.f32.mrb[191].mxu1  ;;  %v1969_v17 = vpop.xlane.xlu0 %1968  ;;  %v2723_v60 = vsel %vm823_vm0, %v2681_v31, 0.0 }
 0x287   : > { %v4948_v59 = vadd.f32 %v4947_v46, %v4946_v44  ;;  %1998 = vst.msk [vmem:[#allocation2 + $0x48] sm:$0xff] %vm1988_vm4, %v1969_v17 }
 0x288   : > { %v2662_v0 = vadd.f32 %v4945_v48, %v2565_v57  ;;  %v2568_v43 = vadd.f32 %v4884_v39, %v6413_v19 }
 0x289   : > { %2724 = vadd.xlane.f32.xlu1 %v2723_v60 }
 0x28a   : > { %v2682_v3 = vmax.f32 %v2662_v0, 0.0  ;;  %v2665_v4 = vadd.f32 %v4948_v59, %v2568_v43  ;;  %v4965_v20 = vpop.f32.mrb[192].mxu0  ;;  %v1972_v11 = vpop.xlane.xlu0 %1971 }
 0x28b   : > { %v5029_v36 = vpop.f32.mrb[192].mxu1  ;;  %1999 = vst.msk [vmem:[#allocation2 + $0x50] sm:$0xff] %vm1988_vm4, %v1972_v11  ;;  %v4966_v6 = vpop.f32.mrb[193].mxu0 }
 0x28c   : > { %v2683_v2 = vmax.f32 %v2665_v4, 0.0  ;;  %v4967_v22 = vadd.f32 %v4966_v6, %v4965_v20  ;;  %v5030_v53 = vpop.f32.mrb[193].mxu1  ;;  %v4968_v40 = vpop.f32.mrb[194].mxu0  ;;  %v2726_v38 = vsel %vm823_vm0, %v2682_v3, 0.0 }
 0x28d   : > { %v5031_v7 = vadd.f32 %v5030_v53, %v5029_v36  ;;  %v5032_v18 = vpop.f32.mrb[194].mxu1  ;;  %v4969_v21 = vpop.f32.mrb[195].mxu0  ;;  %2727 = vadd.xlane.f32.xlu1 %v2726_v38 }
 0x28e   : > { %v2881_v1 = vadd.f32 %v4967_v22, %v6159_v5  ;;  %v4970_v35 = vadd.f32 %v4969_v21, %v4968_v40  ;;  %v5033_v62 = vpop.f32.mrb[195].mxu1  ;;  %v1975_v51 = vpop.xlane.xlu0 %1974  ;;  %v2729_v42 = vsel %vm823_vm0, %v2683_v2, 0.0 }
 0x28f   : > { %v5034_v28 = vadd.f32 %v5033_v62, %v5032_v18  ;;  %2000 = vst.msk [vmem:[#allocation2 + $0x58] sm:$0xff] %vm1988_vm4, %v1975_v51 }
 0x290   : > { %v2978_v61 = vadd.f32 %v5031_v7, %v2881_v1  ;;  %v2884_v16 = vadd.f32 %v4970_v35, %v6198_v41 }
 0x291   : > { %2730 = vadd.xlane.f32.xlu1 %v2729_v42 }
 0x292   : > { %v2981_v47 = vadd.f32 %v5034_v28, %v2884_v16  ;;  %v4971_v54 = vpop.f32.mrb[196].mxu0  ;;  %v1978_v49 = vpop.xlane.xlu0 %1977  ;;  %v3040_v12 = vmax.f32 %v2978_v61, 0.0 }
 0x293   : > { %v5035_v58 = vpop.f32.mrb[196].mxu1  ;;  %2001 = vst.msk [vmem:[#allocation2 + $0x60] sm:$0xff] %vm1988_vm4, %v1978_v49  ;;  %v4972_v23 = vpop.f32.mrb[197].mxu0 }
 0x294   : > { %v4973_v10 = vadd.f32 %v4972_v23, %v4971_v54  ;;  %v5036_v13 = vpop.f32.mrb[197].mxu1  ;;  %v4974_v50 = vpop.f32.mrb[198].mxu0  ;;  %v3056_v45 = vsel %vm823_vm0, %v3040_v12, 0.0  ;;  %v3041_v31 = vmax.f32 %v2981_v47, 0.0 }
 0x295   : > { %v5037_v8 = vadd.f32 %v5036_v13, %v5035_v58  ;;  %v5038_v52 = vpop.f32.mrb[198].mxu1  ;;  %v4975_v34 = vpop.f32.mrb[199].mxu0  ;;  %3057 = vadd.xlane.f32.xlu0 %v3056_v45 }
 0x296   : > { %v2889_v9 = vadd.f32 %v4973_v10, %v6195_v15  ;;  %v4976_v48 = vadd.f32 %v4975_v34, %v4974_v50  ;;  %v5039_v44 = vpop.f32.mrb[199].mxu1  ;;  %v1981_v37 = vpop.xlane.xlu0 %1980  ;;  %v3059_v17 = vsel %vm823_vm0, %v3041_v31, 0.0 }
 0x297   : > { %v5040_v57 = vadd.f32 %v5039_v44, %v5038_v52  ;;  %2002 = vst.msk [vmem:[#allocation2 + $0x68] sm:$0xff] %vm1988_vm4, %v1981_v37 }
 0x298   : > { %v2986_v39 = vadd.f32 %v5037_v8, %v2889_v9  ;;  %v2892_v46 = vadd.f32 %v4976_v48, %v6241_v30 }
 0x299   : > { %3060 = vadd.xlane.f32.xlu0 %v3059_v17 }
 0x29a   : > { %v2989_v59 = vadd.f32 %v5040_v57, %v2892_v46  ;;  %v4977_v0 = vpop.f32.mrb[200].mxu0  ;;  %v1984_v43 = vpop.xlane.xlu0 %1983  ;;  %v3042_v60 = vmax.f32 %v2986_v39, 0.0 }
 0x29b   : > { %v5041_v3 = vpop.f32.mrb[200].mxu1  ;;  %2003 = vst.msk [vmem:[#allocation2 + $0x70] sm:$0xff] %vm1988_vm4, %v1984_v43  ;;  %v4978_v4 = vpop.f32.mrb[201].mxu0 }
 0x29c   : > { %v4979_v20 = vadd.f32 %v4978_v4, %v4977_v0  ;;  %v5042_v11 = vpop.f32.mrb[201].mxu1  ;;  %v4980_v36 = vpop.f32.mrb[202].mxu0  ;;  %v3062_v6 = vsel %vm823_vm0, %v3042_v60, 0.0  ;;  %v3043_v2 = vmax.f32 %v2989_v59, 0.0 }
 0x29d   : > { %v5043_v22 = vadd.f32 %v5042_v11, %v5041_v3  ;;  %v5044_v53 = vpop.f32.mrb[202].mxu1  ;;  %v4981_v40 = vpop.f32.mrb[203].mxu0  ;;  %3063 = vadd.xlane.f32.xlu0 %v3062_v6 }
 0x29e   : > { %v2897_v38 = vadd.f32 %v4979_v20, %v6265_v26  ;;  %v4982_v7 = vadd.f32 %v4981_v40, %v4980_v36  ;;  %v5045_v18 = vpop.f32.mrb[203].mxu1  ;;  %v1987_v21 = vpop.xlane.xlu0 %1986  ;;  %v3065_v51 = vsel %vm823_vm0, %v3043_v2, 0.0 }
 0x29f   : > { %v5046_v1 = vadd.f32 %v5045_v18, %v5044_v53  ;;  %2004 = vst.msk [vmem:[#allocation2 + $0x78] sm:$0xff] %vm1988_vm4, %v1987_v21 }
 0x2a0   : > { %v2994_v35 = vadd.f32 %v5043_v22, %v2897_v38  ;;  %v2900_v62 = vadd.f32 %v4982_v7, %v6273_v27 }
 0x2a1   : > { %3066 = vadd.xlane.f32.xlu0 %v3065_v51 }
 0x2a2   : > { %v2997_v28 = vadd.f32 %v5046_v1, %v2900_v62  ;;  %v4983_v61 = vpop.f32.mrb[204].mxu0  ;;  %v2314_v16 = vpop.xlane.xlu1 %2313  ;;  %v3044_v42 = vmax.f32 %v2994_v35, 0.0 }
 0x2a3   : > { %v5047_v47 = vpop.f32.mrb[204].mxu1  ;;  %2361 = vst.msk [vmem:[#allocation2] sm:$0xff] %vm2360_vm5, %v2314_v16  ;;  %v4984_v54 = vpop.f32.mrb[205].mxu0 }
 0x2a4   : > { %v4985_v49 = vadd.f32 %v4984_v54, %v4983_v61  ;;  %v5048_v12 = vpop.f32.mrb[205].mxu1  ;;  %v4986_v58 = vpop.f32.mrb[206].mxu0  ;;  %v3068_v23 = vsel %vm823_vm0, %v3044_v42, 0.0  ;;  %v3045_v10 = vmax.f32 %v2997_v28, 0.0 }
 0x2a5   : > { %v5049_v13 = vadd.f32 %v5048_v12, %v5047_v47  ;;  %v5050_v50 = vpop.f32.mrb[206].mxu1  ;;  %v4987_v45 = vpop.f32.mrb[207].mxu0  ;;  %3069 = vadd.xlane.f32.xlu0 %v3068_v23 }
 0x2a6   : > { %v2905_v31 = vadd.f32 %v4985_v49, %v7381_v24  ;;  %v4988_v8 = vadd.f32 %v4987_v45, %v4986_v58  ;;  %v5051_v52 = vpop.f32.mrb[207].mxu1  ;;  %v2317_v34 = vpop.xlane.xlu1 %2316  ;;  %v3071_v37 = vsel %vm823_vm0, %v3045_v10, 0.0 }
 0x2a7   : > { %v5052_v9 = vadd.f32 %v5051_v52, %v5050_v50  ;;  %2362 = vst.msk [vmem:[#allocation2 + $0x8] sm:$0xff] %vm2360_vm5, %v2317_v34 }
 0x2a8   : > { %v3002_v48 = vadd.f32 %v5049_v13, %v2905_v31  ;;  %v2908_v44 = vadd.f32 %v4988_v8, %v7383_v14 }
 0x2a9   : > { %3072 = vadd.xlane.f32.xlu0 %v3071_v37 }
 0x2aa   : > { %v3046_v57 = vmax.f32 %v3002_v48, 0.0  ;;  %v3005_v39 = vadd.f32 %v5052_v9, %v2908_v44  ;;  %v4989_v46 = vpop.f32.mrb[208].mxu0  ;;  %v2320_v17 = vpop.xlane.xlu1 %2319 }
 0x2ab   : > { %v5053_v59 = vpop.f32.mrb[208].mxu1  ;;  %2363 = vst.msk [vmem:[#allocation2 + $0x10] sm:$0xff] %vm2360_vm5, %v2320_v17  ;;  %v4990_v0 = vpop.f32.mrb[209].mxu0 }
 0x2ac   : > { %v3047_v43 = vmax.f32 %v3005_v39, 0.0  ;;  %v4991_v60 = vadd.f32 %v4990_v0, %v4989_v46  ;;  %v5054_v3 = vpop.f32.mrb[209].mxu1  ;;  %v4992_v4 = vpop.f32.mrb[210].mxu0  ;;  %v3074_v20 = vsel %vm823_vm0, %v3046_v57, 0.0 }
 0x2ad   : > { %v5055_v11 = vadd.f32 %v5054_v3, %v5053_v59  ;;  %v5056_v36 = vpop.f32.mrb[210].mxu1  ;;  %v4993_v6 = vpop.f32.mrb[211].mxu0  ;;  %3075 = vadd.xlane.f32.xlu0 %v3074_v20 }
 0x2ae   : > { %v2913_v2 = vadd.f32 %v4991_v60, %v7387_v25  ;;  %v4994_v22 = vadd.f32 %v4993_v6, %v4992_v4  ;;  %v5057_v53 = vpop.f32.mrb[211].mxu1  ;;  %v2323_v40 = vpop.xlane.xlu1 %2322  ;;  %v3077_v21 = vsel %vm823_vm0, %v3047_v43, 0.0 }
 0x2af   : > { %v5058_v38 = vadd.f32 %v5057_v53, %v5056_v36  ;;  %2364 = vst.msk [vmem:[#allocation2 + $0x18] sm:$0xff] %vm2360_vm5, %v2323_v40 }
 0x2b0   : > { %v3010_v7 = vadd.f32 %v5055_v11, %v2913_v2  ;;  %v2916_v18 = vadd.f32 %v4994_v22, %v7390_v33 }
 0x2b1   : > { %3078 = vadd.xlane.f32.xlu0 %v3077_v21 }
 0x2b2   : > { %v3048_v1 = vmax.f32 %v3010_v7, 0.0  ;;  %v3013_v35 = vadd.f32 %v5058_v38, %v2916_v18  ;;  %v4995_v62 = vpop.f32.mrb[212].mxu0  ;;  %v2326_v51 = vpop.xlane.xlu1 %2325 }
 0x2b3   : > { %v5059_v28 = vpop.f32.mrb[212].mxu1  ;;  %2365 = vst.msk [vmem:[#allocation2 + $0x20] sm:$0xff] %vm2360_vm5, %v2326_v51  ;;  %v4996_v61 = vpop.f32.mrb[213].mxu0 }
 0x2b4   : > { %v3049_v16 = vmax.f32 %v3013_v35, 0.0  ;;  %v4997_v42 = vadd.f32 %v4996_v61, %v4995_v62  ;;  %v5060_v47 = vpop.f32.mrb[213].mxu1  ;;  %v4998_v54 = vpop.f32.mrb[214].mxu0  ;;  %v3080_v49 = vsel %vm823_vm0, %v3048_v1, 0.0 }
 0x2b5   : > { %v5061_v12 = vadd.f32 %v5060_v47, %v5059_v28  ;;  %v5062_v58 = vpop.f32.mrb[214].mxu1  ;;  %v4999_v23 = vpop.f32.mrb[215].mxu0  ;;  %3081 = vadd.xlane.f32.xlu0 %v3080_v49 }
 0x2b6   : > { %v2921_v10 = vadd.f32 %v4997_v42, %v6356_v56  ;;  %v5000_v13 = vadd.f32 %v4999_v23, %v4998_v54  ;;  %v5063_v50 = vpop.f32.mrb[215].mxu1  ;;  %v2329_v45 = vpop.xlane.xlu1 %2328  ;;  %v3083_v34 = vsel %vm823_vm0, %v3049_v16, 0.0 }
 0x2b7   : > { %v5064_v31 = vadd.f32 %v5063_v50, %v5062_v58  ;;  %2366 = vst.msk [vmem:[#allocation2 + $0x28] sm:$0xff] %vm2360_vm5, %v2329_v45 }
 0x2b8   : > { %v3018_v8 = vadd.f32 %v5061_v12, %v2921_v10  ;;  %v2924_v52 = vadd.f32 %v5000_v13, %v6361_v55 }
 0x2b9   : > { %3084 = vadd.xlane.f32.xlu0 %v3083_v34 }
 0x2ba   : > { %v3050_v9 = vmax.f32 %v3018_v8, 0.0  ;;  %v3021_v48 = vadd.f32 %v5064_v31, %v2924_v52  ;;  %v5001_v44 = vpop.f32.mrb[216].mxu0  ;;  %v2332_v37 = vpop.xlane.xlu1 %2331 }
 0x2bb   : > { %v5065_v57 = vpop.f32.mrb[216].mxu1  ;;  %2367 = vst.msk [vmem:[#allocation2 + $0x30] sm:$0xff] %vm2360_vm5, %v2332_v37  ;;  %v5002_v39 = vpop.f32.mrb[217].mxu0 }
 0x2bc   : > { %v3051_v46 = vmax.f32 %v3021_v48, 0.0  ;;  %v5003_v17 = vadd.f32 %v5002_v39, %v5001_v44  ;;  %v5066_v59 = vpop.f32.mrb[217].mxu1  ;;  %v5004_v0 = vpop.f32.mrb[218].mxu0  ;;  %v3086_v43 = vsel %vm823_vm0, %v3050_v9, 0.0 }
 0x2bd   : > { %v5067_v60 = vadd.f32 %v5066_v59, %v5065_v57  ;;  %v5068_v3 = vpop.f32.mrb[218].mxu1  ;;  %v5005_v4 = vpop.f32.mrb[219].mxu0  ;;  %3087 = vadd.xlane.f32.xlu0 %v3086_v43 }
 0x2be   : > { %v2929_v20 = vadd.f32 %v5003_v17, %v6383_v29  ;;  %v5006_v11 = vadd.f32 %v5005_v4, %v5004_v0  ;;  %v5069_v36 = vpop.f32.mrb[219].mxu1  ;;  %v2335_v6 = vpop.xlane.xlu1 %2334  ;;  %v3089_v40 = vsel %vm823_vm0, %v3051_v46, 0.0 }
 0x2bf   : > { %v5070_v2 = vadd.f32 %v5069_v36, %v5068_v3  ;;  %2368 = vst.msk [vmem:[#allocation2 + $0x38] sm:$0xff] %vm2360_vm5, %v2335_v6 }
 0x2c0   : > { %v3026_v22 = vadd.f32 %v5067_v60, %v2929_v20  ;;  %v2932_v53 = vadd.f32 %v5006_v11, %v6387_v32 }
 0x2c1   : > { %3090 = vadd.xlane.f32.xlu0 %v3089_v40 }
 0x2c2   : > { %v3052_v38 = vmax.f32 %v3026_v22, 0.0  ;;  %v3029_v7 = vadd.f32 %v5070_v2, %v2932_v53  ;;  %v5007_v18 = vpop.f32.mrb[220].mxu0  ;;  %v2338_v21 = vpop.xlane.xlu1 %2337 }
 0x2c3   : > { %v5071_v1 = vpop.f32.mrb[220].mxu1  ;;  %2369 = vst.msk [vmem:[#allocation2 + $0x40] sm:$0xff] %vm2360_vm5, %v2338_v21  ;;  %v5008_v35 = vpop.f32.mrb[221].mxu0 }
 0x2c4   : > { %v3053_v62 = vmax.f32 %v3029_v7, 0.0  ;;  %v5009_v51 = vadd.f32 %v5008_v35, %v5007_v18  ;;  %v5072_v28 = vpop.f32.mrb[221].mxu1  ;;  %v5010_v61 = vpop.f32.mrb[222].mxu0  ;;  %v3092_v16 = vsel %vm823_vm0, %v3052_v38, 0.0 }
 0x2c5   : > { %v5073_v42 = vadd.f32 %v5072_v28, %v5071_v1  ;;  %v5074_v47 = vpop.f32.mrb[222].mxu1  ;;  %v5011_v54 = vpop.f32.mrb[223].mxu0  ;;  %3093 = vadd.xlane.f32.xlu0 %v3092_v16 }
 0x2c6   : > { %v2937_v49 = vadd.f32 %v5009_v51, %v6410_v63  ;;  %v5012_v12 = vadd.f32 %v5011_v54, %v5010_v61  ;;  %v5075_v58 = vpop.f32.mrb[223].mxu1  ;;  %v2341_v23 = vpop.xlane.xlu1 %2340  ;;  %v3095_v10 = vsel %vm823_vm0, %v3053_v62, 0.0 }
 0x2c7   : > { %v5076_v13 = vadd.f32 %v5075_v58, %v5074_v47  ;;  %2370 = vst.msk [vmem:[#allocation2 + $0x48] sm:$0xff] %vm2360_vm5, %v2341_v23  ;;  %3096 = vadd.xlane.f32.xlu1 %v3095_v10 }
 0x2c8   : > { %v3034_v50 = vadd.f32 %v5073_v42, %v2937_v49  ;;  %v2940_v45 = vadd.f32 %v5012_v12, %v6413_v19 }
 0x2ca   : > { %v3054_v31 = vmax.f32 %v3034_v50, 0.0  ;;  %v3037_v8 = vadd.f32 %v5076_v13, %v2940_v45  ;;  %v5093_v52 = vpop.f32.mrb[224].mxu0  ;;  %v2344_v34 = vpop.xlane.xlu1 %2343 }
 0x2cb   : > { %v5157_v9 = vpop.f32.mrb[224].mxu1  ;;  %2371 = vst.msk [vmem:[#allocation2 + $0x50] sm:$0xff] %vm2360_vm5, %v2344_v34  ;;  %v5094_v48 = vpop.f32.mrb[225].mxu0 }
 0x2cc   : > { %v3055_v44 = vmax.f32 %v3037_v8, 0.0  ;;  %v5095_v37 = vadd.f32 %v5094_v48, %v5093_v52  ;;  %v5158_v57 = vpop.f32.mrb[225].mxu1  ;;  %v5096_v39 = vpop.f32.mrb[226].mxu0  ;;  %v3098_v46 = vsel %vm823_vm0, %v3054_v31, 0.0 }
 0x2cd   : > { %v5159_v17 = vadd.f32 %v5158_v57, %v5157_v9  ;;  %v5160_v59 = vpop.f32.mrb[226].mxu1  ;;  %v5097_v0 = vpop.f32.mrb[227].mxu0  ;;  %3099 = vadd.xlane.f32.xlu0 %v3098_v46 }
 0x2ce   : > { %v3253_v43 = vadd.f32 %v5095_v37, %v6159_v5  ;;  %v5098_v60 = vadd.f32 %v5097_v0, %v5096_v39  ;;  %v5161_v3 = vpop.f32.mrb[227].mxu1  ;;  %v2347_v4 = vpop.xlane.xlu1 %2346  ;;  %v3101_v20 = vsel %vm823_vm0, %v3055_v44, 0.0 }
 0x2cf   : > { %v5162_v11 = vadd.f32 %v5161_v3, %v5160_v59  ;;  %2372 = vst.msk [vmem:[#allocation2 + $0x58] sm:$0xff] %vm2360_vm5, %v2347_v4  ;;  %3102 = vadd.xlane.f32.xlu1 %v3101_v20 }
 0x2d0   : > { %v3350_v36 = vadd.f32 %v5159_v17, %v3253_v43  ;;  %v3256_v6 = vadd.f32 %v5098_v60, %v6198_v41 }
 0x2d2   : > { %v3412_v2 = vmax.f32 %v3350_v36, 0.0  ;;  %v3353_v22 = vadd.f32 %v5162_v11, %v3256_v6  ;;  %v5099_v53 = vpop.f32.mrb[228].mxu0  ;;  %v2350_v40 = vpop.xlane.xlu1 %2349 }
 0x2d3   : > { %v5163_v38 = vpop.f32.mrb[228].mxu1  ;;  %2373 = vst.msk [vmem:[#allocation2 + $0x60] sm:$0xff] %vm2360_vm5, %v2350_v40  ;;  %v5100_v5 = vpop.f32.mrb[229].mxu0 }
 0x2d4   : > { %v3413_v7 = vmax.f32 %v3353_v22, 0.0  ;;  %v5101_v18 = vadd.f32 %v5100_v5, %v5099_v53  ;;  %v5164_v21 = vpop.f32.mrb[229].mxu1  ;;  %v5102_v1 = vpop.f32.mrb[230].mxu0  ;;  %v3428_v35 = vsel %vm823_vm0, %v3412_v2, 0.0 }
 0x2d5   : > { %v5165_v62 = vadd.f32 %v5164_v21, %v5163_v38  ;;  %v5166_v51 = vpop.f32.mrb[230].mxu1  ;;  %v5103_v28 = vpop.f32.mrb[231].mxu0  ;;  %3429 = vadd.xlane.f32.xlu0 %v3428_v35 }
 0x2d6   : > { %v3261_v41 = vadd.f32 %v5101_v18, %v6195_v15  ;;  %v5104_v61 = vadd.f32 %v5103_v28, %v5102_v1  ;;  %v5167_v16 = vpop.f32.mrb[231].mxu1  ;;  %v2353_v42 = vpop.xlane.xlu1 %2352  ;;  %v3431_v12 = vsel %vm823_vm0, %v3413_v7, 0.0 }
 0x2d7   : > { %v5168_v47 = vadd.f32 %v5167_v16, %v5166_v51  ;;  %2374 = vst.msk [vmem:[#allocation2 + $0x68] sm:$0xff] %vm2360_vm5, %v2353_v42 }
 0x2d8   : > { %v3358_v54 = vadd.f32 %v5165_v62, %v3261_v41  ;;  %v3264_v49 = vadd.f32 %v5104_v61, %v6241_v30 }
 0x2d9   : > { %3432 = vadd.xlane.f32.xlu0 %v3431_v12 }
 0x2da   : > { %v3414_v58 = vmax.f32 %v3358_v54, 0.0  ;;  %v3361_v23 = vadd.f32 %v5168_v47, %v3264_v49  ;;  %v5105_v10 = vpop.f32.mrb[232].mxu0  ;;  %v2356_v13 = vpop.xlane.xlu0 %2355 }
 0x2db   : > { %v5169_v50 = vpop.f32.mrb[232].mxu1  ;;  %2375 = vst.msk [vmem:[#allocation2 + $0x70] sm:$0xff] %vm2360_vm5, %v2356_v13  ;;  %v5106_v15 = vpop.f32.mrb[233].mxu0 }
 0x2dc   : > { %v3415_v45 = vmax.f32 %v3361_v23, 0.0  ;;  %v5107_v31 = vadd.f32 %v5106_v15, %v5105_v10  ;;  %v5170_v8 = vpop.f32.mrb[233].mxu1  ;;  %v5108_v52 = vpop.f32.mrb[234].mxu0  ;;  %v3434_v34 = vsel %vm823_vm0, %v3414_v58, 0.0 }
 0x2dd   : > { %v5171_v9 = vadd.f32 %v5170_v8, %v5169_v50  ;;  %v5172_v48 = vpop.f32.mrb[234].mxu1  ;;  %v2359_v30 = vpop.xlane.xlu1 %2358  ;;  %3435 = vadd.xlane.f32.xlu0 %v3434_v34 }
 0x2de   : > { %v3269_v44 = vadd.f32 %v5107_v31, %v6265_v26  ;;  %2376 = vst.msk [vmem:[#allocation2 + $0x78] sm:$0xff] %vm2360_vm5, %v2359_v30  ;;  %v5109_v37 = vpop.f32.mrb[235].mxu0  ;;  %v5173_v57 = vpop.f32.mrb[235].mxu1  ;;  %v3437_v59 = vsel %vm823_vm0, %v3415_v45, 0.0 }
 0x2df   : > { %v5110_v39 = vadd.f32 %v5109_v37, %v5108_v52  ;;  %v5174_v46 = vadd.f32 %v5173_v57, %v5172_v48 }
 0x2e0   : > { %v3366_v17 = vadd.f32 %v5171_v9, %v3269_v44 }
 0x2e1   : > { %v3272_v0 = vadd.f32 %v5110_v39, %v6273_v27  ;;  %3438 = vadd.xlane.f32.xlu0 %v3437_v59 }
 0x2e2   : > { %v3416_v43 = vmax.f32 %v3366_v17, 0.0  ;;  %v5111_v60 = vpop.f32.mrb[236].mxu0  ;;  %v2686_v3 = vpop.xlane.xlu0 %2685 }
 0x2e3   : > { %v3369_v4 = vadd.f32 %v5174_v46, %v3272_v0  ;;  %v5175_v20 = vpop.f32.mrb[236].mxu1  ;;  %2733 = vst.msk [vmem:[#allocation2] sm:$0xff] %vm2732_vm6, %v2686_v3  ;;  %v5112_v26 = vpop.f32.mrb[237].mxu0 }
 0x2e4   : > { %v5113_v11 = vadd.f32 %v5112_v26, %v5111_v60  ;;  %v5176_v36 = vpop.f32.mrb[237].mxu1  ;;  %v5114_v6 = vpop.f32.mrb[238].mxu0  ;;  %v3440_v2 = vsel %vm823_vm0, %v3416_v43, 0.0 }
 0x2e5   : > { %v3417_v22 = vmax.f32 %v3369_v4, 0.0  ;;  %v5177_v53 = vadd.f32 %v5176_v36, %v5175_v20  ;;  %v5178_v40 = vpop.f32.mrb[238].mxu1  ;;  %v2689_v38 = vpop.xlane.xlu1 %2688  ;;  %3441 = vadd.xlane.f32.xlu0 %v3440_v2 }
 0x2e6   : > { %v3277_v27 = vadd.f32 %v5113_v11, %v7381_v24  ;;  %2734 = vst.msk [vmem:[#allocation2 + $0x8] sm:$0xff] %vm2732_vm6, %v2689_v38  ;;  %v5115_v5 = vpop.f32.mrb[239].mxu0  ;;  %v5179_v7 = vpop.f32.mrb[239].mxu1 }
 0x2e7   : > { %v5116_v18 = vadd.f32 %v5115_v5, %v5114_v6  ;;  %v5180_v21 = vadd.f32 %v5179_v7, %v5178_v40  ;;  %v3443_v35 = vsel %vm823_vm0, %v3417_v22, 0.0 }
 0x2e8   : > { %v3374_v1 = vadd.f32 %v5177_v53, %v3277_v27 }
 0x2e9   : > { %v3280_v62 = vadd.f32 %v5116_v18, %v7383_v14  ;;  %3444 = vadd.xlane.f32.xlu0 %v3443_v35 }
 0x2ea   : > { %v3418_v51 = vmax.f32 %v3374_v1, 0.0  ;;  %v5117_v28 = vpop.f32.mrb[240].mxu0  ;;  %v2692_v41 = vpop.xlane.xlu1 %2691 }
 0x2eb   : > { %v3377_v61 = vadd.f32 %v5180_v21, %v3280_v62  ;;  %v5181_v16 = vpop.f32.mrb[240].mxu1  ;;  %2735 = vst.msk [vmem:[#allocation2 + $0x10] sm:$0xff] %vm2732_vm6, %v2692_v41  ;;  %v5118_v24 = vpop.f32.mrb[241].mxu0 }
 0x2ec   : > { %v5119_v42 = vadd.f32 %v5118_v24, %v5117_v28  ;;  %v5182_v47 = vpop.f32.mrb[241].mxu1  ;;  %v5120_v54 = vpop.f32.mrb[242].mxu0  ;;  %v3446_v49 = vsel %vm823_vm0, %v3418_v51, 0.0 }
 0x2ed   : > { %v3419_v12 = vmax.f32 %v3377_v61, 0.0  ;;  %v5183_v58 = vadd.f32 %v5182_v47, %v5181_v16  ;;  %v5184_v23 = vpop.f32.mrb[242].mxu1  ;;  %v5121_v10 = vpop.f32.mrb[243].mxu0  ;;  %3447 = vadd.xlane.f32.xlu0 %v3446_v49 }
 0x2ee   : > { %v3285_v14 = vadd.f32 %v5119_v42, %v7387_v25  ;;  %v5122_v13 = vadd.f32 %v5121_v10, %v5120_v54  ;;  %v5185_v50 = vpop.f32.mrb[243].mxu1  ;;  %v2695_v15 = vpop.xlane.xlu1 %2694 }
 0x2ef   : > { %v5186_v45 = vadd.f32 %v5185_v50, %v5184_v23  ;;  %2736 = vst.msk [vmem:[#allocation2 + $0x18] sm:$0xff] %vm2732_vm6, %v2695_v15  ;;  %v3449_v52 = vsel %vm823_vm0, %v3419_v12, 0.0 }
 0x2f0   : > { %v3382_v31 = vadd.f32 %v5183_v58, %v3285_v14  ;;  %v3288_v8 = vadd.f32 %v5122_v13, %v7390_v33 }
 0x2f1   : > { %3450 = vadd.xlane.f32.xlu0 %v3449_v52 }
 0x2f2   : > { %v3420_v34 = vmax.f32 %v3382_v31, 0.0  ;;  %v3385_v9 = vadd.f32 %v5186_v45, %v3288_v8  ;;  %v5123_v48 = vpop.f32.mrb[244].mxu0  ;;  %v2698_v30 = vpop.xlane.xlu1 %2697 }
 0x2f3   : > { %v5187_v44 = vpop.f32.mrb[244].mxu1  ;;  %2737 = vst.msk [vmem:[#allocation2 + $0x20] sm:$0xff] %vm2732_vm6, %v2698_v30  ;;  %v5124_v25 = vpop.f32.mrb[245].mxu0 }
 0x2f4   : > { %v3421_v37 = vmax.f32 %v3385_v9, 0.0  ;;  %v5125_v57 = vadd.f32 %v5124_v25, %v5123_v48  ;;  %v5188_v39 = vpop.f32.mrb[245].mxu1  ;;  %v5126_v46 = vpop.f32.mrb[246].mxu0  ;;  %v3452_v17 = vsel %vm823_vm0, %v3420_v34, 0.0 }
 0x2f5   : > { %v5189_v59 = vadd.f32 %v5188_v39, %v5187_v44  ;;  %v5190_v0 = vpop.f32.mrb[246].mxu1  ;;  %v5127_v33 = vpop.f32.mrb[247].mxu0  ;;  %3453 = vadd.xlane.f32.xlu0 %v3452_v17 }
 0x2f6   : > { %v3293_v43 = vadd.f32 %v5125_v57, %v6356_v56  ;;  %v5128_v60 = vadd.f32 %v5127_v33, %v5126_v46  ;;  %v5191_v3 = vpop.f32.mrb[247].mxu1  ;;  %v2701_v4 = vpop.xlane.xlu1 %2700  ;;  %v3455_v36 = vsel %vm823_vm0, %v3421_v37, 0.0 }
 0x2f7   : > { %v5192_v20 = vadd.f32 %v5191_v3, %v5190_v0  ;;  %2738 = vst.msk [vmem:[#allocation2 + $0x28] sm:$0xff] %vm2732_vm6, %v2701_v4  ;;  %v3542_v3 = vld [vmem:[%s7335_s3 + $0x8] sm:$0xff]  ;;  %v3543_v4 = vld [vmem:[%s7335_s3 + $0x10] sm:$0xff] }
 0x2f8   : > { %v3390_v26 = vadd.f32 %v5189_v59, %v3293_v43  ;;  %v3296_v11 = vadd.f32 %v5128_v60, %v6361_v55  ;;  %v3541_v60 = vld [vmem:[%s7335_s3] sm:$0xff] }
 0x2f9   : > { %3456 = vadd.xlane.f32.xlu0 %v3455_v36  ;;  %v5450_v36 = vmov 0.0  }
 0x2fa   : > { %v3422_v6 = vmax.f32 %v3390_v26, 0.0  ;;  %v3393_v2 = vadd.f32 %v5192_v20, %v3296_v11  ;;  %v5129_v22 = vpop.f32.mrb[248].mxu0  ;;  %v2704_v53 = vpop.xlane.xlu1 %2703  ;;  %v5448_v20 = vmov 0.0|0.0   ;;  %v5258_v26 = vpack.c.bf16 %v3542_v3, %v3541_v60  ;;  %v3544_v11 = vld [vmem:[%s7335_s3 + $0x18] sm:$0xff]  ;;  %5254 = vmatprep.mubr.msk.f32.mxu0 %vm5449_vm8, %v5450_v36 }
 0x2fb   : > { %v5193_v40 = vpop.f32.mrb[248].mxu1  ;;  %2739 = vst.msk [vmem:[#allocation2 + $0x30] sm:$0xff] %vm2732_vm6, %v2704_v53  ;;  %v5130_v56 = vpop.f32.mrb[249].mxu0  ;;  %5257 = vmatprep.subr.bf16.mxu0 %v5448_v20  ;;  %v3546_v53 = vld [vmem:[%s7335_s3 + $0x28] sm:$0xff] }
 0x2fc   : > { %v3423_v38 = vmax.f32 %v3393_v2, 0.0  ;;  %v5131_v27 = vadd.f32 %v5130_v56, %v5129_v22  ;;  %v5194_v5 = vpop.f32.mrb[249].mxu1  ;;  %v5132_v7 = vpop.f32.mrb[250].mxu0  ;;  %v3458_v18 = vsel %vm823_vm0, %v3422_v6, 0.0  ;;  %5259 = vmatpush3.bf16.msra.mxu0 %v5258_v26  ;;  %v5261_v2 = vpack.c.bf16 %v3544_v11, %v3543_v4  ;;  %v3545_v22 = vld [vmem:[%s7335_s3 + $0x20] sm:$0xff] }
 0x2fd   : > { %v5195_v21 = vadd.f32 %v5194_v5, %v5193_v40  ;;  %v5196_v1 = vpop.f32.mrb[250].mxu1  ;;  %v5133_v55 = vpop.f32.mrb[251].mxu0  ;;  %3459 = vadd.xlane.f32.xlu0 %v3458_v18  ;;  %5260 = vmatprep.subr.bf16.mxu0 %v5448_v20  ;;  %v5264_v56 = vpack.c.bf16 %v3546_v53, %v3545_v22  ;;  %v3549_v18 = vld [vmem:[%s7335_s3 + $0x40] sm:$0xff] }
 0x2fe   : > { %v3301_v35 = vadd.f32 %v5131_v27, %v6383_v29  ;;  %v5134_v62 = vadd.f32 %v5133_v55, %v5132_v7  ;;  %v5197_v51 = vpop.f32.mrb[251].mxu1  ;;  %v2707_v28 = vpop.xlane.xlu1 %2706  ;;  %v3461_v24 = vsel %vm823_vm0, %v3423_v38, 0.0  ;;  %v3547_v38 = vld [vmem:[%s7335_s3 + $0x30] sm:$0xff]  ;;  %v3548_v27 = vld [vmem:[%s7335_s3 + $0x38] sm:$0xff]  ;;  %v4177_v22 = vld [vmem:[%s7336_s4] ss:$0 sm:$0xff] }
 0x2ff   : > { %v5198_v41 = vadd.f32 %v5197_v51, %v5196_v1  ;;  %2740 = vst.msk [vmem:[#allocation2 + $0x38] sm:$0xff] %vm2732_vm6, %v2707_v28  ;;  %v5267_v7 = vpack.c.bf16 %v3548_v27, %v3547_v38 }
 0x300   : > { %v3398_v61 = vadd.f32 %v5195_v21, %v3301_v35  ;;  %v3304_v16 = vadd.f32 %v5134_v62, %v6387_v32  ;;  %5262 = vmatpush3.bf16.msra.mxu0 %v5261_v2  ;;  %v3550_v21 = vld [vmem:[%s7335_s3 + $0x48] sm:$0xff]  ;;  %v3551_v35 = vld [vmem:[%s7335_s3 + $0x50] sm:$0xff]  ;;  %v3552_v62 = vld [vmem:[%s7335_s3 + $0x58] sm:$0xff] }
 0x301   : > { %3462 = vadd.xlane.f32.xlu0 %v3461_v24  ;;  %5263 = vmatprep.subr.bf16.mxu0 %v5448_v20  ;;  %v5270_v55 = vpack.c.bf16 %v3550_v21, %v3549_v18  ;;  %v5273_v28 = vpack.c.bf16 %v3552_v62, %v3551_v35 }
 0x302   : > { %v3424_v42 = vmax.f32 %v3398_v61, 0.0  ;;  %v3401_v47 = vadd.f32 %v5198_v41, %v3304_v16  ;;  %v5135_v54 = vpop.f32.mrb[252].mxu0  ;;  %v2710_v49 = vpop.xlane.xlu1 %2709  ;;  %v3553_v41 = vld [vmem:[%s7335_s3 + $0x60] sm:$0xff]  ;;  %v3554_v61 = vld [vmem:[%s7335_s3 + $0x68] sm:$0xff] }
 0x303   : > { %v5199_v12 = vpop.f32.mrb[252].mxu1  ;;  %2741 = vst.msk [vmem:[#allocation2 + $0x40] sm:$0xff] %vm2732_vm6, %v2710_v49  ;;  %v5136_v29 = vpop.f32.mrb[253].mxu0  ;;  %v5276_v24 = vpack.c.bf16 %v3554_v61, %v3553_v41 }
 0x304   : > { %v3425_v58 = vmax.f32 %v3401_v47, 0.0  ;;  %v5137_v23 = vadd.f32 %v5136_v29, %v5135_v54  ;;  %v5200_v10 = vpop.f32.mrb[253].mxu1  ;;  %v5138_v14 = vpop.f32.mrb[254].mxu0  ;;  %v3464_v13 = vsel %vm823_vm0, %v3424_v42, 0.0  ;;  %5265 = vmatpush3.bf16.msra.mxu0 %v5264_v56  ;;  %v3555_v42 = vld [vmem:[%s7335_s3 + $0x70] sm:$0xff]  ;;  %v3556_v47 = vld [vmem:[%s7335_s3 + $0x78] sm:$0xff] }
 0x305   : > { %v5201_v50 = vadd.f32 %v5200_v10, %v5199_v12  ;;  %v5202_v15 = vpop.f32.mrb[254].mxu1  ;;  %v5139_v32 = vpop.f32.mrb[255].mxu0  ;;  %3465 = vadd.xlane.f32.xlu0 %v3464_v13  ;;  %5266 = vmatprep.subr.bf16.mxu0 %v5448_v20  ;;  %v5279_v49 = vpack.c.bf16 %v3556_v47, %v3555_v42 }
 0x306   : > { %v3309_v45 = vadd.f32 %v5137_v23, %v6410_v63  ;;  %v5140_v31 = vadd.f32 %v5139_v32, %v5138_v14  ;;  %v5203_v8 = vpop.f32.mrb[255].mxu1  ;;  %v2713_v52 = vpop.xlane.xlu1 %2712  ;;  %v3467_v30 = vsel %vm823_vm0, %v3425_v58, 0.0 }
 0x307   : > { %v5204_v34 = vadd.f32 %v5203_v8, %v5202_v15  ;;  %2742 = vst.msk [vmem:[#allocation2 + $0x48] sm:$0xff] %vm2732_vm6, %v2713_v52 }
 0x308   : > { %v3406_v9 = vadd.f32 %v5201_v50, %v3309_v45  ;;  %v3312_v48 = vadd.f32 %v5140_v31, %v6413_v19  ;;  %5268 = vmatpush3.bf16.msra.mxu0 %v5267_v7 }
 0x309   : > { %3468 = vadd.xlane.f32.xlu0 %v3467_v30  ;;  %5269 = vmatprep.subr.bf16.mxu0 %v5448_v20 }
 0x30a   : > { %v3426_v44 = vmax.f32 %v3406_v9, 0.0  ;;  %v3409_v25 = vadd.f32 %v5204_v34, %v3312_v48  ;;  %v2716_v37 = vpop.xlane.xlu1 %2715 }
 0x30b   : > { %2743 = vst.msk [vmem:[#allocation2 + $0x50] sm:$0xff] %vm2732_vm6, %v2716_v37 }
 0x30c   : > { %v3427_v57 = vmax.f32 %v3409_v25, 0.0  ;;  %v3470_v63 = vsel %vm823_vm0, %v3426_v44, 0.0  ;;  %5271 = vmatpush3.bf16.msra.mxu0 %v5270_v55 }
 0x30d   : > { %3471 = vadd.xlane.f32.xlu0 %v3470_v63  ;;  %5272 = vmatprep.subr.bf16.mxu0 %v5448_v20 }
 0x30e   : > { %v2719_v39 = vpop.xlane.xlu1 %2718  ;;  %v3473_v46 = vsel %vm823_vm0, %v3427_v57, 0.0 }
 0x30f   : > { %2744 = vst.msk [vmem:[#allocation2 + $0x58] sm:$0xff] %vm2732_vm6, %v2719_v39 }
 0x310   : > { %5274 = vmatpush3.bf16.msra.mxu0 %v5273_v28 }
 0x311   : > { %3474 = vadd.xlane.f32.xlu0 %v3473_v46  ;;  %5275 = vmatprep.subr.bf16.mxu0 %v5448_v20 }
 0x312   : > { %v2722_v17 = vpop.xlane.xlu1 %2721 }
 0x313   : > { %2745 = vst.msk [vmem:[#allocation2 + $0x60] sm:$0xff] %vm2732_vm6, %v2722_v17 }
 0x314   : > { %5277 = vmatpush3.bf16.msra.mxu0 %v5276_v24 }
 0x315   : > { %5278 = vmatprep.subr.bf16.mxu0 %v5448_v20 }
 0x316   : > { %v2725_v19 = vpop.xlane.xlu1 %2724 }
 0x317   : > { %2746 = vst.msk [vmem:[#allocation2 + $0x68] sm:$0xff] %vm2732_vm6, %v2725_v19 }
 0x318   : > { %5280 = vmatpush3.bf16.msra.mxu0 %v5279_v49 }
 0x31a   : > { %v2728_v59 = vpop.xlane.xlu1 %2727 }
 0x31b   : > { %2747 = vst.msk [vmem:[#allocation2 + $0x70] sm:$0xff] %vm2732_vm6, %v2728_v59 }
 0x31e   : > { %v2731_v0 = vpop.xlane.xlu1 %2730 }
 0x31f   : > { %2748 = vst.msk [vmem:[#allocation2 + $0x78] sm:$0xff] %vm2732_vm6, %v2731_v0 }
 0x322   : > { %v3058_v33 = vpop.xlane.xlu0 %3057 }
 0x323   : > { %3105 = vst.msk [vmem:[#allocation2] sm:$0xff] %vm3104_vm7, %v3058_v33 }
 0x326   : > { %v3061_v43 = vpop.xlane.xlu0 %3060 }
 0x327   : > { %3106 = vst.msk [vmem:[#allocation2 + $0x8] sm:$0xff] %vm3104_vm7, %v3061_v43 }
 0x32a   : > { %v3064_v6 = vpop.xlane.xlu0 %3063 }
 0x32b   : > { %3107 = vst.msk [vmem:[#allocation2 + $0x10] sm:$0xff] %vm3104_vm7, %v3064_v6 }
 0x32e   : > { %v3067_v40 = vpop.xlane.xlu0 %3066 }
 0x32f   : > { %3108 = vst.msk [vmem:[#allocation2 + $0x18] sm:$0xff] %vm3104_vm7, %v3067_v40 }
 0x332   : > { %v3070_v5 = vpop.xlane.xlu0 %3069 }
 0x333   : > { %3109 = vst.msk [vmem:[#allocation2 + $0x20] sm:$0xff] %vm3104_vm7, %v3070_v5 }
 0x336   : > { %v3073_v1 = vpop.xlane.xlu0 %3072 }
 0x337   : > { %3110 = vst.msk [vmem:[#allocation2 + $0x28] sm:$0xff] %vm3104_vm7, %v3073_v1 }
 0x33a   : > { %v3076_v51 = vpop.xlane.xlu0 %3075 }
 0x33b   : > { %3111 = vst.msk [vmem:[#allocation2 + $0x30] sm:$0xff] %vm3104_vm7, %v3076_v51 }
 0x33e   : > { %v3079_v16 = vpop.xlane.xlu0 %3078 }
 0x33f   : > { %3112 = vst.msk [vmem:[#allocation2 + $0x38] sm:$0xff] %vm3104_vm7, %v3079_v16 }
 0x342   : > { %v3082_v54 = vpop.xlane.xlu0 %3081 }
 0x343   : > { %3113 = vst.msk [vmem:[#allocation2 + $0x40] sm:$0xff] %vm3104_vm7, %v3082_v54 }
 0x346   : > { %v3085_v12 = vpop.xlane.xlu0 %3084 }
 0x347   : > { %3114 = vst.msk [vmem:[#allocation2 + $0x48] sm:$0xff] %vm3104_vm7, %v3085_v12 }
 0x34a   : > { %v3088_v29 = vpop.xlane.xlu0 %3087 }
 0x34b   : > { %3115 = vst.msk [vmem:[#allocation2 + $0x50] sm:$0xff] %vm3104_vm7, %v3088_v29 }
 0x34e   : > { %v3091_v58 = vpop.xlane.xlu0 %3090 }
 0x34f   : > { %3116 = vst.msk [vmem:[#allocation2 + $0x58] sm:$0xff] %vm3104_vm7, %v3091_v58 }
 0x352   : > { %v3094_v23 = vpop.xlane.xlu0 %3093 }
 0x353   : > { %3117 = vst.msk [vmem:[#allocation2 + $0x60] sm:$0xff] %vm3104_vm7, %v3094_v23 }
 0x354   : > { %v3097_v10 = vpop.xlane.xlu1 %3096 }
 0x355   : > { %3118 = vst.msk [vmem:[#allocation2 + $0x68] sm:$0xff] %vm3104_vm7, %v3097_v10 }
 0x35a   : > { %v3100_v14 = vpop.xlane.xlu0 %3099 }
 0x35b   : > { %3119 = vst.msk [vmem:[#allocation2 + $0x70] sm:$0xff] %vm3104_vm7, %v3100_v14 }
 0x35c   : > { %v3103_v13 = vpop.xlane.xlu1 %3102 }
 0x35d   : > { %3120 = vst.msk [vmem:[#allocation2 + $0x78] sm:$0xff] %vm3104_vm7, %v3103_v13 }
 0x362   : > { %v3430_v50 = vpop.xlane.xlu0 %3429 }
 0x363   : > { %3477 = vst.msk [vmem:[#allocation2] sm:$0xff] %vm3476_vm9, %v3430_v50 }
 0x366   : > { %v3433_v15 = vpop.xlane.xlu0 %3432 }
 0x367   : > { %3478 = vst.msk [vmem:[#allocation2 + $0x8] sm:$0xff] %vm3476_vm9, %v3433_v15 }
 0x36a   : > { %v3436_v32 = vpop.xlane.xlu0 %3435  ;;  %v3493_v45 = vld [vmem:[#allocation2] sm:$0xff] }
 0x36b   : > { %3479 = vst.msk [vmem:[#allocation2 + $0x10] sm:$0xff] %vm3476_vm9, %v3436_v32  ;;  %3509 = vxpose.xlu1.b32.start [1/16] (narrow) %v3493_v45, 8 }
 0x36e   : > { %v3439_v31 = vpop.xlane.xlu0 %3438  ;;  %v3494_v8 = vld [vmem:[#allocation2 + $0x8] sm:$0xff] }
 0x36f   : > { %3480 = vst.msk [vmem:[#allocation2 + $0x18] sm:$0xff] %vm3476_vm9, %v3439_v31  ;;  %3510 = vxpose.xlu1.b32.cont [2/16] (narrow) %v3494_v8, 8 }
 0x372   : > { %v3442_v52 = vpop.xlane.xlu0 %3441  ;;  %v3495_v34 = vld [vmem:[#allocation2 + $0x10] sm:$0xff] }
 0x373   : > { %3481 = vst.msk [vmem:[#allocation2 + $0x20] sm:$0xff] %vm3476_vm9, %v3442_v52  ;;  %3511 = vxpose.xlu1.b32.cont [3/16] (narrow) %v3495_v34, 8 }
 0x376   : > { %v3445_v9 = vpop.xlane.xlu0 %3444  ;;  %v3496_v48 = vld [vmem:[#allocation2 + $0x18] sm:$0xff] }
 0x377   : > { %3482 = vst.msk [vmem:[#allocation2 + $0x28] sm:$0xff] %vm3476_vm9, %v3445_v9  ;;  %3512 = vxpose.xlu1.b32.cont [4/16] (narrow) %v3496_v48, 8 }
 0x37a   : > { %v3448_v30 = vpop.xlane.xlu0 %3447  ;;  %v3497_v44 = vld [vmem:[#allocation2 + $0x20] sm:$0xff] }
 0x37b   : > { %3483 = vst.msk [vmem:[#allocation2 + $0x30] sm:$0xff] %vm3476_vm9, %v3448_v30  ;;  %3513 = vxpose.xlu1.b32.cont [5/16] (narrow) %v3497_v44, 8 }
 0x37e   : > { %v3451_v25 = vpop.xlane.xlu0 %3450  ;;  %v3498_v37 = vld [vmem:[#allocation2 + $0x28] sm:$0xff] }
 0x37f   : > { %3484 = vst.msk [vmem:[#allocation2 + $0x38] sm:$0xff] %vm3476_vm9, %v3451_v25  ;;  %3514 = vxpose.xlu1.b32.cont [6/16] (narrow) %v3498_v37, 8 }
 0x382   : > { %v3454_v57 = vpop.xlane.xlu0 %3453  ;;  %v3499_v63 = vld [vmem:[#allocation2 + $0x30] sm:$0xff] }
 0x383   : > { %3485 = vst.msk [vmem:[#allocation2 + $0x40] sm:$0xff] %vm3476_vm9, %v3454_v57  ;;  %3515 = vxpose.xlu1.b32.cont [7/16] (narrow) %v3499_v63, 8 }
 0x386   : > { %v3457_v39 = vpop.xlane.xlu0 %3456  ;;  %v3500_v46 = vld [vmem:[#allocation2 + $0x38] sm:$0xff] }
 0x387   : > { %3486 = vst.msk [vmem:[#allocation2 + $0x48] sm:$0xff] %vm3476_vm9, %v3457_v39  ;;  %3516 = vxpose.xlu1.b32.cont [8/16] (narrow) %v3500_v46, 8 }
 0x38a   : > { %v3460_v17 = vpop.xlane.xlu0 %3459  ;;  %v3501_v19 = vld [vmem:[#allocation2 + $0x40] sm:$0xff] }
 0x38b   : > { %3487 = vst.msk [vmem:[#allocation2 + $0x50] sm:$0xff] %vm3476_vm9, %v3460_v17  ;;  %3517 = vxpose.xlu1.b32.cont [9/16] (narrow) %v3501_v19, 8 }
 0x38e   : > { %v3463_v59 = vpop.xlane.xlu0 %3462  ;;  %v3502_v0 = vld [vmem:[#allocation2 + $0x48] sm:$0xff] }
 0x38f   : > { %3488 = vst.msk [vmem:[#allocation2 + $0x58] sm:$0xff] %vm3476_vm9, %v3463_v59  ;;  %3518 = vxpose.xlu1.b32.cont [10/16] (narrow) %v3502_v0, 8 }
 0x392   : > { %v3466_v33 = vpop.xlane.xlu0 %3465  ;;  %v3503_v43 = vld [vmem:[#allocation2 + $0x50] sm:$0xff] }
 0x393   : > { %3489 = vst.msk [vmem:[#allocation2 + $0x60] sm:$0xff] %vm3476_vm9, %v3466_v33  ;;  %3519 = vxpose.xlu1.b32.cont [11/16] (narrow) %v3503_v43, 8 }
 0x396   : > { %v3469_v60 = vpop.xlane.xlu0 %3468  ;;  %v3504_v3 = vld [vmem:[#allocation2 + $0x58] sm:$0xff] }
 0x397   : > { %3490 = vst.msk [vmem:[#allocation2 + $0x68] sm:$0xff] %vm3476_vm9, %v3469_v60  ;;  %3520 = vxpose.xlu1.b32.cont [12/16] (narrow) %v3504_v3, 8 }
 0x39a   : > { %v3472_v4 = vpop.xlane.xlu0 %3471  ;;  %v3505_v20 = vld [vmem:[#allocation2 + $0x60] sm:$0xff] }
 0x39b   : > { %3491 = vst.msk [vmem:[#allocation2 + $0x70] sm:$0xff] %vm3476_vm9, %v3472_v4  ;;  %3521 = vxpose.xlu1.b32.cont [13/16] (narrow) %v3505_v20, 8 }
 0x39e   : > { %v3475_v26 = vpop.xlane.xlu0 %3474  ;;  %v3506_v11 = vld [vmem:[#allocation2 + $0x68] sm:$0xff] }
 0x39f   : > { %3492 = vst.msk [vmem:[#allocation2 + $0x78] sm:$0xff] %vm3476_vm9, %v3475_v26  ;;  %3522 = vxpose.xlu1.b32.cont [14/16] (narrow) %v3506_v11, 8 }
 0x3a2   : > { %v3507_v36 = vld [vmem:[#allocation2 + $0x70] sm:$0xff] }
 0x3a3   : > { %3523 = vxpose.xlu1.b32.cont [15/16] (narrow) %v3507_v36, 8 }
 0x3a6   : > { %v3508_v6 = vld [vmem:[#allocation2 + $0x78] sm:$0xff] }
 0x3a7   : > { %3524 = vxpose.xlu1.b32.end [16/16] (narrow) %v3508_v6, 8 }
 0x3eb   : > { %v3525_v2 = vpop.trf.xlu1 }
 0x3ec   : > { %5255 = vmatmul.mubr.f32.vlgmr.msra.gmra.mrb[0].mxu0 %v3525_v2 }
 0x4bf   : > { %v3630_v53 = vpop.f32.mrb[0].mxu0 }
 0x4c0   : > { %v3631_v40 = vadd.f32 %v4177_v22, %v3630_v53  ;;  %v5256_v56 = vpop.f32.mrb[1].mxu0 }
 0x4c2   : > { %3634 = vst [vmem:[%s227_s12] sm:$0xff] %v3631_v40 }
 0x4c3 PF: > { %s15_s18 = sadd.s32 1, %s5445_s18  }
 0x4c4   : > { %p12_p5 = scmp.ge.s32.totalorder %s15_s18, 6  }
 0x4c6   :  { %14 = sbr.rel (!%p12_p5) target bundleno = 1 (0x1), region = 77 }

</bundles_post_ra>
